<compile_context>
chip_gen: v5e
topology: v5e:2x2
jax: 0.10.0
libtpu: 0.0.40
codegen_flags: <defaults>
</compile_context>

<pallas_src>
import jax
import jax.numpy as jnp
from jax import lax
from jax.experimental import pallas as pl
from jax.experimental.pallas import tpu as pltpu


def _conv3x3_relu(x, w3, b_row):
    """3x3 VALID conv + bias + ReLU.

    x:     (H, W, C)          bf16 (MXU operand dtype)
    w3:    (3, 3*C, Cout)     bf16, rows within a kh-group ordered (kw, cin)
    b_row: (1, Cout)          f32
    returns (Ho, Wo, Cout)    f32
    """
    H, W, C = x.shape
    Ho, Wo = H - 2, W - 2
    Cout = w3.shape[-1]

    # Hoist the W-direction (sublane-axis) shifts: 3 slices per conv.
    xw = (x[:, 0:Wo, :], x[:, 1:1 + Wo, :], x[:, 2:2 + Wo, :])

    # Group the 9 taps by kh: 3 accumulating dot_generals of K = 3*C each.
    # Only a 3x im2col slab is ever live; accumulation happens in the MXU f32
    # accumulator (preferred_element_type) plus 2 f32 VPU adds.
    acc = jnp.zeros((Ho, Wo, Cout), jnp.float32)
    for kh in range(3):
        # H is the major (non-sublane/non-lane) axis -> these slices are cheap.
        patch = jnp.concatenate(
            [xw[kw][kh:kh + Ho, :, :] for kw in range(3)], axis=-1)  # (Ho,Wo,3C)
        acc = acc + lax.dot_general(
            patch, w3[kh],
            dimension_numbers=(((2,), (0,)), ((), ())),
            preferred_element_type=jnp.float32)                      # (Ho,Wo,Cout)
    acc = acc + b_row.astype(jnp.float32)[None, :, :]
    return jnp.maximum(acc, 0.0)


def contracting_block_kernel(x_ref, w0_ref, b0_ref, w1_ref, b1_ref, o_ref):
    # x_ref block: (1, H, W, Cin) bf16 -> one image per grid step.
    x = x_ref[0]                                        # (H, W, Cin) bf16

    # conv1 + ReLU; intermediate stays a value (no scratch roundtrip),
    # cast to bf16 so conv2 also feeds the MXU bf16 operands.
    h = _conv3x3_relu(x, w0_ref[...], b0_ref[...])      # (Ho1, Wo1, Cout) f32
    h = h.astype(jnp.bfloat16)

    # conv2 + ReLU -> output block (stored in f32).
    y = _conv3x3_relu(h, w1_ref[...], b1_ref[...])      # (Ho2, Wo2, Cout) f32
    o_ref[...] = y[None].astype(o_ref.dtype)


def contracting_block(x_nchw, w0_pt, b0, w1_pt, b1):
    """x_nchw: (N, Cin, H, W) f32. Weights in PyTorch layout (Cout, Cin, 3, 3)."""
    N, Cin, H, W = x_nchw.shape
    Cout = w0_pt.shape[0]
    Ho1, Wo1 = H - 2, W - 2
    Ho2, Wo2 = Ho1 - 2, Wo1 - 2

    # ---- layout glue (fuses with neighbouring XLA ops under jit) ----
    # NHWC, unpadded channels, bf16 MXU operand dtype.
    x_nhwc = jnp.transpose(x_nchw, (0, 2, 3, 1)).astype(jnp.bfloat16)

    def prep_w(w_pt):
        cout, cin = w_pt.shape[0], w_pt.shape[1]
        w = jnp.transpose(w_pt, (2, 3, 1, 0))           # (3, 3, cin, cout)
        return w.reshape(3, 3 * cin, cout).astype(jnp.bfloat16)

    w0_3 = prep_w(w0_pt)                                # (3, 3*Cin,  Cout) bf16
    w1_3 = prep_w(w1_pt)                                # (3, 3*Cout, Cout) bf16
    b0_p = b0.reshape(1, Cout).astype(jnp.float32)
    b1_p = b1.reshape(1, Cout).astype(jnp.float32)

    # Real FLOPs / HBM bytes (no zero padding anymore) as a scheduling hint.
    flops = 2 * N * (Ho1 * Wo1 * 9 * Cin * Cout + Ho2 * Wo2 * 9 * Cout * Cout)
    bytes_accessed = (x_nhwc.size * 2 + w0_3.size * 2 + w1_3.size * 2
                      + b0_p.size * 4 + b1_p.size * 4
                      + N * Ho2 * Wo2 * Cout * 4)
    cost = pl.CostEstimate(flops=flops, transcendentals=0,
                           bytes_accessed=bytes_accessed)

    out_nhwc = pl.pallas_call(
        contracting_block_kernel,
        out_shape=jax.ShapeDtypeStruct((N, Ho2, Wo2, Cout), jnp.float32),
        grid_spec=pltpu.PrefetchScalarGridSpec(
            num_scalar_prefetch=0,
            grid=(N,),
            in_specs=[
                pl.BlockSpec((1, H, W, Cin), lambda n: (n, 0, 0, 0)),
                pl.BlockSpec((3, 3 * Cin, Cout), lambda n: (0, 0, 0)),
                pl.BlockSpec((1, Cout), lambda n: (0, 0)),
                pl.BlockSpec((3, 3 * Cout, Cout), lambda n: (0, 0, 0)),
                pl.BlockSpec((1, Cout), lambda n: (0, 0)),
            ],
            out_specs=pl.BlockSpec((1, Ho2, Wo2, Cout),
                                   lambda n: (n, 0, 0, 0)),
        ),
        compiler_params=pltpu.CompilerParams(
            dimension_semantics=("parallel",)),
        cost_estimate=cost,
    )(x_nhwc, w0_3, b0_p, w1_3, b1_p)

    # Back to NCHW to match the PyTorch module's convention.
    return jnp.transpose(out_nhwc, (0, 3, 1, 2))


def _reference(x_nchw, w0_pt, b0, w1_pt, b1):
    """Plain-JAX f32 reference (NCHW, like PyTorch)."""
    dn = lax.conv_dimension_numbers(x_nchw.shape, w0_pt.shape,
                                    ("NCHW", "OIHW", "NCHW"))
    h = lax.conv_general_dilated(x_nchw, w0_pt, (1, 1), "VALID",
                                 dimension_numbers=dn)
    h = jnp.maximum(h + b0[None, :, None, None], 0.0)
    dn2 = lax.conv_dimension_numbers(h.shape, w1_pt.shape,
                                     ("NCHW", "OIHW", "NCHW"))
    y = lax.conv_general_dilated(h, w1_pt, (1, 1), "VALID",
                                 dimension_numbers=dn2)
    return jnp.maximum(y + b1[None, :, None, None], 0.0)


if __name__ == "__main__":
    key = jax.random.PRNGKey(0)
    N, Cin, Cout, H, W = 2, 4, 8, 16, 16

    k_x, k_w0, k_b0, k_w1, k_b1 = jax.random.split(key, 5)
    x = jax.random.normal(k_x, (N, Cin, H, W), jnp.float32)

    # Deterministic parameter init (PyTorch-style uniform fan-in bound).
    bound0 = 1.0 / (Cin * 9) ** 0.5
    w0 = jax.random.uniform(k_w0, (Cout, Cin, 3, 3), jnp.float32, -bound0, bound0)
    b0 = jax.random.uniform(k_b0, (Cout,), jnp.float32, -bound0, bound0)
    bound1 = 1.0 / (Cout * 9) ** 0.5
    w1 = jax.random.uniform(k_w1, (Cout, Cout, 3, 3), jnp.float32, -bound1, bound1)
    b1 = jax.random.uniform(k_b1, (Cout,), jnp.float32, -bound1, bound1)

    fn = jax.jit(contracting_block)
    out = fn(x, w0, b0, w1, b1)
    out = jax.block_until_ready(out)

    ref = _reference(x, w0, b0, w1, b1)
    assert out.shape == (N, Cout, H - 4, W - 4), out.shape
    # bf16 MXU operands (f32 accumulation): loosened tolerance vs f32 reference.
    assert jnp.allclose(out, ref, atol=5e-2, rtol=5e-2), "mismatch vs reference"

    print("KERNEL_OK")
</pallas_src>

<mosaic_0001>
module attributes {stable_mosaic.version = 11 : i64} {
  func.func @contracting_block_kernel(%arg0: i32, %arg1: memref<1x16x16x4xbf16, #tpu.memory_space<vmem>>, %arg2: memref<3x12x8xbf16, #tpu.memory_space<vmem>>, %arg3: memref<1x8xf32, #tpu.memory_space<vmem>>, %arg4: memref<3x24x8xbf16, #tpu.memory_space<vmem>>, %arg5: memref<1x8xf32, #tpu.memory_space<vmem>>, %arg6: memref<1x12x12x8xf32, #tpu.memory_space<vmem>>) attributes {dimension_semantics = [#tpu.dimension_semantics<parallel>], iteration_bounds = array<i64: 2>, scalar_prefetch = 0 : i64, scratch_operands = 0 : i64, tpu.core_type = #tpu.core_type<tc>, window_params = [{transform_indices = @transform_0, window_bounds = array<i64: 1, 16, 16, 4>}, {pipeline_mode = #tpu.pipeline_mode<synchronous>, transform_indices = @transform_1, window_bounds = array<i64: 3, 12, 8>}, {pipeline_mode = #tpu.pipeline_mode<synchronous>, transform_indices = @transform_2, window_bounds = array<i64: 1, 8>}, {pipeline_mode = #tpu.pipeline_mode<synchronous>, transform_indices = @transform_3, window_bounds = array<i64: 3, 24, 8>}, {pipeline_mode = #tpu.pipeline_mode<synchronous>, transform_indices = @transform_4, window_bounds = array<i64: 1, 8>}, {transform_indices = @transform_5, window_bounds = array<i64: 1, 12, 12, 8>}]} {
    %c0 = arith.constant 0 : index
    %c0_0 = arith.constant 0 : index
    %c0_1 = arith.constant 0 : index
    %c0_2 = arith.constant 0 : index
    %0 = vector.load %arg1[%c0, %c0_0, %c0_1, %c0_2] : memref<1x16x16x4xbf16, #tpu.memory_space<vmem>>, vector<1x16x16x4xbf16>
    %1 = vector.shape_cast %0 : vector<1x16x16x4xbf16> to vector<16x16x4xbf16>
    %c0_3 = arith.constant 0 : index
    %c0_4 = arith.constant 0 : index
    %c0_5 = arith.constant 0 : index
    %2 = vector.load %arg2[%c0_3, %c0_4, %c0_5] : memref<3x12x8xbf16, #tpu.memory_space<vmem>>, vector<3x12x8xbf16>
    %c0_6 = arith.constant 0 : index
    %c0_7 = arith.constant 0 : index
    %3 = vector.load %arg3[%c0_6, %c0_7] : memref<1x8xf32, #tpu.memory_space<vmem>>, vector<1x8xf32>
    %4 = vector.extract_strided_slice %1 {offsets = [0, 0, 0], sizes = [16, 14, 4], strides = [1, 1, 1]} : vector<16x16x4xbf16> to vector<16x14x4xbf16>
    %5 = vector.extract_strided_slice %1 {offsets = [0, 1, 0], sizes = [16, 14, 4], strides = [1, 1, 1]} : vector<16x16x4xbf16> to vector<16x14x4xbf16>
    %6 = vector.extract_strided_slice %1 {offsets = [0, 2, 0], sizes = [16, 14, 4], strides = [1, 1, 1]} : vector<16x16x4xbf16> to vector<16x14x4xbf16>
    %cst = arith.constant 0.000000e+00 : f32
    %7 = vector.broadcast %cst : f32 to vector<14x14x8xf32>
    %8 = vector.extract_strided_slice %4 {offsets = [0, 0, 0], sizes = [14, 14, 4], strides = [1, 1, 1]} : vector<16x14x4xbf16> to vector<14x14x4xbf16>
    %9 = vector.extract_strided_slice %5 {offsets = [0, 0, 0], sizes = [14, 14, 4], strides = [1, 1, 1]} : vector<16x14x4xbf16> to vector<14x14x4xbf16>
    %10 = vector.extract_strided_slice %6 {offsets = [0, 0, 0], sizes = [14, 14, 4], strides = [1, 1, 1]} : vector<16x14x4xbf16> to vector<14x14x4xbf16>
    %11 = tpu.concatenate %8, %9, %10 in 2 : vector<14x14x4xbf16>, vector<14x14x4xbf16>, vector<14x14x4xbf16> -> vector<14x14x12xbf16>
    %12 = vector.extract_strided_slice %2 {offsets = [0, 0, 0], sizes = [1, 12, 8], strides = [1, 1, 1]} : vector<3x12x8xbf16> to vector<1x12x8xbf16>
    %13 = vector.shape_cast %12 : vector<1x12x8xbf16> to vector<12x8xbf16>
    %cst_8 = arith.constant dense<0.000000e+00> : vector<14x14x8xf32>
    %14 = tpu.matmul %11, %13, %cst_8 {dimension_numbers = #tpu.dot_dimension_numbers<[2], [0], [0, 1], [1], [0, 0, 0, 1, 1, 1], [], []>} : vector<14x14x12xbf16>, vector<12x8xbf16>, vector<14x14x8xf32> -> vector<14x14x8xf32>
    %15 = arith.addf %7, %14 : vector<14x14x8xf32>
    %16 = vector.extract_strided_slice %4 {offsets = [1, 0, 0], sizes = [14, 14, 4], strides = [1, 1, 1]} : vector<16x14x4xbf16> to vector<14x14x4xbf16>
    %17 = vector.extract_strided_slice %5 {offsets = [1, 0, 0], sizes = [14, 14, 4], strides = [1, 1, 1]} : vector<16x14x4xbf16> to vector<14x14x4xbf16>
    %18 = vector.extract_strided_slice %6 {offsets = [1, 0, 0], sizes = [14, 14, 4], strides = [1, 1, 1]} : vector<16x14x4xbf16> to vector<14x14x4xbf16>
    %19 = tpu.concatenate %16, %17, %18 in 2 : vector<14x14x4xbf16>, vector<14x14x4xbf16>, vector<14x14x4xbf16> -> vector<14x14x12xbf16>
    %20 = vector.extract_strided_slice %2 {offsets = [1, 0, 0], sizes = [1, 12, 8], strides = [1, 1, 1]} : vector<3x12x8xbf16> to vector<1x12x8xbf16>
    %21 = vector.shape_cast %20 : vector<1x12x8xbf16> to vector<12x8xbf16>
    %cst_9 = arith.constant dense<0.000000e+00> : vector<14x14x8xf32>
    %22 = tpu.matmul %19, %21, %cst_9 {dimension_numbers = #tpu.dot_dimension_numbers<[2], [0], [0, 1], [1], [0, 0, 0, 1, 1, 1], [], []>} : vector<14x14x12xbf16>, vector<12x8xbf16>, vector<14x14x8xf32> -> vector<14x14x8xf32>
    %23 = arith.addf %15, %22 : vector<14x14x8xf32>
    %24 = vector.extract_strided_slice %4 {offsets = [2, 0, 0], sizes = [14, 14, 4], strides = [1, 1, 1]} : vector<16x14x4xbf16> to vector<14x14x4xbf16>
    %25 = vector.extract_strided_slice %5 {offsets = [2, 0, 0], sizes = [14, 14, 4], strides = [1, 1, 1]} : vector<16x14x4xbf16> to vector<14x14x4xbf16>
    %26 = vector.extract_strided_slice %6 {offsets = [2, 0, 0], sizes = [14, 14, 4], strides = [1, 1, 1]} : vector<16x14x4xbf16> to vector<14x14x4xbf16>
    %27 = tpu.concatenate %24, %25, %26 in 2 : vector<14x14x4xbf16>, vector<14x14x4xbf16>, vector<14x14x4xbf16> -> vector<14x14x12xbf16>
    %28 = vector.extract_strided_slice %2 {offsets = [2, 0, 0], sizes = [1, 12, 8], strides = [1, 1, 1]} : vector<3x12x8xbf16> to vector<1x12x8xbf16>
    %29 = vector.shape_cast %28 : vector<1x12x8xbf16> to vector<12x8xbf16>
    %cst_10 = arith.constant dense<0.000000e+00> : vector<14x14x8xf32>
    %30 = tpu.matmul %27, %29, %cst_10 {dimension_numbers = #tpu.dot_dimension_numbers<[2], [0], [0, 1], [1], [0, 0, 0, 1, 1, 1], [], []>} : vector<14x14x12xbf16>, vector<12x8xbf16>, vector<14x14x8xf32> -> vector<14x14x8xf32>
    %31 = arith.addf %23, %30 : vector<14x14x8xf32>
    %32 = vector.shape_cast %3 : vector<1x8xf32> to vector<1x1x8xf32>
    %33 = vector.broadcast %32 : vector<1x1x8xf32> to vector<14x14x8xf32>
    %34 = arith.addf %31, %33 : vector<14x14x8xf32>
    %cst_11 = arith.constant 0.000000e+00 : f32
    %35 = vector.broadcast %cst_11 : f32 to vector<14x14x8xf32>
    %36 = arith.maximumf %34, %35 : vector<14x14x8xf32>
    %37 = arith.truncf %36 : vector<14x14x8xf32> to vector<14x14x8xbf16>
    %c0_12 = arith.constant 0 : index
    %c0_13 = arith.constant 0 : index
    %c0_14 = arith.constant 0 : index
    %38 = vector.load %arg4[%c0_12, %c0_13, %c0_14] : memref<3x24x8xbf16, #tpu.memory_space<vmem>>, vector<3x24x8xbf16>
    %c0_15 = arith.constant 0 : index
    %c0_16 = arith.constant 0 : index
    %39 = vector.load %arg5[%c0_15, %c0_16] : memref<1x8xf32, #tpu.memory_space<vmem>>, vector<1x8xf32>
    %40 = vector.extract_strided_slice %37 {offsets = [0, 0, 0], sizes = [14, 12, 8], strides = [1, 1, 1]} : vector<14x14x8xbf16> to vector<14x12x8xbf16>
    %41 = vector.extract_strided_slice %37 {offsets = [0, 1, 0], sizes = [14, 12, 8], strides = [1, 1, 1]} : vector<14x14x8xbf16> to vector<14x12x8xbf16>
    %42 = vector.extract_strided_slice %37 {offsets = [0, 2, 0], sizes = [14, 12, 8], strides = [1, 1, 1]} : vector<14x14x8xbf16> to vector<14x12x8xbf16>
    %cst_17 = arith.constant 0.000000e+00 : f32
    %43 = vector.broadcast %cst_17 : f32 to vector<12x12x8xf32>
    %44 = vector.extract_strided_slice %40 {offsets = [0, 0, 0], sizes = [12, 12, 8], strides = [1, 1, 1]} : vector<14x12x8xbf16> to vector<12x12x8xbf16>
    %45 = vector.extract_strided_slice %41 {offsets = [0, 0, 0], sizes = [12, 12, 8], strides = [1, 1, 1]} : vector<14x12x8xbf16> to vector<12x12x8xbf16>
    %46 = vector.extract_strided_slice %42 {offsets = [0, 0, 0], sizes = [12, 12, 8], strides = [1, 1, 1]} : vector<14x12x8xbf16> to vector<12x12x8xbf16>
    %47 = tpu.concatenate %44, %45, %46 in 2 : vector<12x12x8xbf16>, vector<12x12x8xbf16>, vector<12x12x8xbf16> -> vector<12x12x24xbf16>
    %48 = vector.extract_strided_slice %38 {offsets = [0, 0, 0], sizes = [1, 24, 8], strides = [1, 1, 1]} : vector<3x24x8xbf16> to vector<1x24x8xbf16>
    %49 = vector.shape_cast %48 : vector<1x24x8xbf16> to vector<24x8xbf16>
    %cst_18 = arith.constant dense<0.000000e+00> : vector<12x12x8xf32>
    %50 = tpu.matmul %47, %49, %cst_18 {dimension_numbers = #tpu.dot_dimension_numbers<[2], [0], [0, 1], [1], [0, 0, 0, 1, 1, 1], [], []>} : vector<12x12x24xbf16>, vector<24x8xbf16>, vector<12x12x8xf32> -> vector<12x12x8xf32>
    %51 = arith.addf %43, %50 : vector<12x12x8xf32>
    %52 = vector.extract_strided_slice %40 {offsets = [1, 0, 0], sizes = [12, 12, 8], strides = [1, 1, 1]} : vector<14x12x8xbf16> to vector<12x12x8xbf16>
    %53 = vector.extract_strided_slice %41 {offsets = [1, 0, 0], sizes = [12, 12, 8], strides = [1, 1, 1]} : vector<14x12x8xbf16> to vector<12x12x8xbf16>
    %54 = vector.extract_strided_slice %42 {offsets = [1, 0, 0], sizes = [12, 12, 8], strides = [1, 1, 1]} : vector<14x12x8xbf16> to vector<12x12x8xbf16>
    %55 = tpu.concatenate %52, %53, %54 in 2 : vector<12x12x8xbf16>, vector<12x12x8xbf16>, vector<12x12x8xbf16> -> vector<12x12x24xbf16>
    %56 = vector.extract_strided_slice %38 {offsets = [1, 0, 0], sizes = [1, 24, 8], strides = [1, 1, 1]} : vector<3x24x8xbf16> to vector<1x24x8xbf16>
    %57 = vector.shape_cast %56 : vector<1x24x8xbf16> to vector<24x8xbf16>
    %cst_19 = arith.constant dense<0.000000e+00> : vector<12x12x8xf32>
    %58 = tpu.matmul %55, %57, %cst_19 {dimension_numbers = #tpu.dot_dimension_numbers<[2], [0], [0, 1], [1], [0, 0, 0, 1, 1, 1], [], []>} : vector<12x12x24xbf16>, vector<24x8xbf16>, vector<12x12x8xf32> -> vector<12x12x8xf32>
    %59 = arith.addf %51, %58 : vector<12x12x8xf32>
    %60 = vector.extract_strided_slice %40 {offsets = [2, 0, 0], sizes = [12, 12, 8], strides = [1, 1, 1]} : vector<14x12x8xbf16> to vector<12x12x8xbf16>
    %61 = vector.extract_strided_slice %41 {offsets = [2, 0, 0], sizes = [12, 12, 8], strides = [1, 1, 1]} : vector<14x12x8xbf16> to vector<12x12x8xbf16>
    %62 = vector.extract_strided_slice %42 {offsets = [2, 0, 0], sizes = [12, 12, 8], strides = [1, 1, 1]} : vector<14x12x8xbf16> to vector<12x12x8xbf16>
    %63 = tpu.concatenate %60, %61, %62 in 2 : vector<12x12x8xbf16>, vector<12x12x8xbf16>, vector<12x12x8xbf16> -> vector<12x12x24xbf16>
    %64 = vector.extract_strided_slice %38 {offsets = [2, 0, 0], sizes = [1, 24, 8], strides = [1, 1, 1]} : vector<3x24x8xbf16> to vector<1x24x8xbf16>
    %65 = vector.shape_cast %64 : vector<1x24x8xbf16> to vector<24x8xbf16>
    %cst_20 = arith.constant dense<0.000000e+00> : vector<12x12x8xf32>
    %66 = tpu.matmul %63, %65, %cst_20 {dimension_numbers = #tpu.dot_dimension_numbers<[2], [0], [0, 1], [1], [0, 0, 0, 1, 1, 1], [], []>} : vector<12x12x24xbf16>, vector<24x8xbf16>, vector<12x12x8xf32> -> vector<12x12x8xf32>
    %67 = arith.addf %59, %66 : vector<12x12x8xf32>
    %68 = vector.shape_cast %39 : vector<1x8xf32> to vector<1x1x8xf32>
    %69 = vector.broadcast %68 : vector<1x1x8xf32> to vector<12x12x8xf32>
    %70 = arith.addf %67, %69 : vector<12x12x8xf32>
    %cst_21 = arith.constant 0.000000e+00 : f32
    %71 = vector.broadcast %cst_21 : f32 to vector<12x12x8xf32>
    %72 = arith.maximumf %70, %71 : vector<12x12x8xf32>
    %73 = vector.shape_cast %72 : vector<12x12x8xf32> to vector<1x12x12x8xf32>
    %c0_22 = arith.constant 0 : index
    %c0_23 = arith.constant 0 : index
    %c0_24 = arith.constant 0 : index
    %c0_25 = arith.constant 0 : index
    %74 = vector.load %arg6[%c0_22, %c0_23, %c0_24, %c0_25] : memref<1x12x12x8xf32, #tpu.memory_space<vmem>>, vector<1x12x12x8xf32>
    tpu.vector_store %arg6[%c0_22, %c0_23, %c0_24, %c0_25], %73 {strides = array<i32>} : memref<1x12x12x8xf32, #tpu.memory_space<vmem>>, vector<1x12x12x8xf32>,
    return
  }
  func.func @transform_0(%arg0: i32) -> (i32, i32, i32, i32) {
    %c0_i32 = arith.constant 0 : i32
    %c0_i32_0 = arith.constant 0 : i32
    %c0_i32_1 = arith.constant 0 : i32
    %c0_i32_2 = arith.constant 0 : i32
    return %arg0, %c0_i32, %c0_i32_0, %c0_i32_1 : i32, i32, i32, i32
  }
  func.func @transform_1(%arg0: i32) -> (i32, i32, i32) {
    %c0_i32 = arith.constant 0 : i32
    %c0_i32_0 = arith.constant 0 : i32
    %c0_i32_1 = arith.constant 0 : i32
    %c0_i32_2 = arith.constant 0 : i32
    return %c0_i32, %c0_i32_0, %c0_i32_1 : i32, i32, i32
  }
  func.func @transform_2(%arg0: i32) -> (i32, i32) {
    %c0_i32 = arith.constant 0 : i32
    %c0_i32_0 = arith.constant 0 : i32
    %c0_i32_1 = arith.constant 0 : i32
    return %c0_i32, %c0_i32_0 : i32, i32
  }
  func.func @transform_3(%arg0: i32) -> (i32, i32, i32) {
    %c0_i32 = arith.constant 0 : i32
    %c0_i32_0 = arith.constant 0 : i32
    %c0_i32_1 = arith.constant 0 : i32
    %c0_i32_2 = arith.constant 0 : i32
    return %c0_i32, %c0_i32_0, %c0_i32_1 : i32, i32, i32
  }
  func.func @transform_4(%arg0: i32) -> (i32, i32) {
    %c0_i32 = arith.constant 0 : i32
    %c0_i32_0 = arith.constant 0 : i32
    %c0_i32_1 = arith.constant 0 : i32
    return %c0_i32, %c0_i32_0 : i32, i32
  }
  func.func @transform_5(%arg0: i32) -> (i32, i32, i32, i32) {
    %c0_i32 = arith.constant 0 : i32
    %c0_i32_0 = arith.constant 0 : i32
    %c0_i32_1 = arith.constant 0 : i32
    %c0_i32_2 = arith.constant 0 : i32
    return %arg0, %c0_i32, %c0_i32_0, %c0_i32_1 : i32, i32, i32, i32
  }
}

</mosaic_0001>

<bundles_post_ra>
// kernel: contracting_block.1
= control target key start
LH: loop header
LB: loop body
LE: loop exit
PB: predicated region body
PF: predicated region fallthrough
CT: control target
= control target key end

     0   :  { %s3877_s18 = smov 0   ;;  %s5543_s0 = inlined_call_operand.vmem [shape: bf16[2,16,16,4], index: 0, kind: input, shape index: {}]   ;;  %s5544_s1 = inlined_call_operand.vmem [shape: bf16[3,12,8], index: 1, kind: input, shape index: {}]   ;;  %s5545_s2 = inlined_call_operand.vmem [shape: f32[1,8], index: 2, kind: input, shape index: {}]   ;;  %s5546_s3 = inlined_call_operand.vmem [shape: bf16[3,24,8], index: 3, kind: input, shape index: {}]   ;;  %s5547_s4 = inlined_call_operand.vmem [shape: f32[1,8], index: 4, kind: input, shape index: {}]   ;;  %s5548_s5 = inlined_call_operand.vmem [shape: f32[2,12,12,8], index: 5, kind: output, shape index: {}]  }
   0x1 LB: > { %s3630_s19 = sadd.s32 4294967295, %s3842_s18   ;;  %p3634_p0 = scmp.ge.s32.totalorder %s3842_s18, 1  ;;  %s3842_s18 = sphi %s3877_s18, %s15_s18  }
   0x2   : > { %p187_p1 = scmp.lt.s32.totalorder %s3842_s18, 3 }
   0x4   : > { %p188_p2 = pnand %p3634_p0, %p187_p1 }
   0x6   : > { %191 = sbr.rel (%p188_p2) target bundleno = 1376 (0x560), region = 40 }
   0xb   : > { %p215_p3 = scmp.lt.s32.totalorder %s3630_s19, 1  ;;  %s3844_s24 = smov 4   ;;  %vm914_vm0 = vcmask 1045504   ;;  %vm503_vm1 = vcmask 31744   ;;  %vm532_vm2 = vcmask 64512   ;;  %vm887_vm3 = vcmask 97280  }
   0xc   : > { %s3845_s25 = smov 8   ;;  %s3846_s15 = smov 16   ;;  %vm2843_vm4 = vcmask 1043456   ;;  %vm2657_vm5 = vcmask 130048   ;;  %vm2824_vm6 = vcmask 195584   ;;  %vm3551_vm7 = vcmask 60416  }
   0xd   : > { %s5763_s19 = smov (!%p215_p3, %s3630_s19), 1 }
   0xe   : > { %s3794_s20 = sshll.u32 %s5763_s19, 7  ;;  %s3821_s9 = smul.u32 192, %s5763_s19 }
   0xf   : > { %s3891_s23 = scalar_lea.vmem %s5543_s0, %s3794_s20 }
  0x10   : > { %v3894_v0 = vld [vmem:[%s3891_s23 + $0x10] sm:$0xff]  ;;  %v3897_v1 = vld [vmem:[%s3891_s23 + $0x8] sm:$0xff]  ;;  %v3900_v2 = vld [vmem:[%s3891_s23 + $0x18] sm:$0xff]  ;;  %s5443_s12 = scalar_lea.vmem %s5548_s5, %s3821_s9 }
  0x11   : > { %v350_v3 = vshrl.u32 %v3894_v0, 16  ;;  %v352_v4 = vshll.u32 %v3894_v0, 16  ;;  %v343_v5 = vshrl.u32 %v3897_v1, 16  ;;  %v345_v6 = vshll.u32 %v3897_v1, 16  ;;  %v3911_v14 = vld [vmem:[%s3891_s23 + $0x20] sm:$0xff]  ;;  %v3918_v19 = vld [vmem:[%s3891_s23 + $0x28] sm:$0xff] }
  0x12   : > { %v357_v9 = vshrl.u32 %v3900_v2, 16  ;;  %v359_v10 = vshll.u32 %v3900_v2, 16  ;;  %v463_v16 = vrot.slane %v3894_v0, 1  ;;  %v462_v17 = vrot.slane %v3897_v1, 1  ;;  %v3926_v24 = vld [vmem:[%s3891_s23 + $0x30] sm:$0xff]  ;;  %v3936_v33 = vld [vmem:[%s3891_s23 + $0x38] sm:$0xff] }
  0x13   : > { %v354_v7 = vrot.slane %v352_v4, 1  ;;  %v347_v8 = vrot.slane %v345_v6, 1  ;;  %v366_v18 = vshll.u32 %v3911_v14, 16  ;;  %v464_v20 = vrot.slane %v3900_v2, 1  ;;  %v3942_v37 = vld [vmem:[%s3891_s23 + $0x40] sm:$0xff]  ;;  %v3949_v41 = vld [vmem:[%s3891_s23 + $0x48] sm:$0xff] }
  0x14   : > { %v361_v13 = vrot.slane %v359_v10, 1  ;;  %v373_v21 = vshll.u32 %v3918_v19, 16  ;;  %v364_v22 = vshrl.u32 %v3911_v14, 16  ;;  %v371_v25 = vshrl.u32 %v3918_v19, 16  ;;  %v3960_v51 = vld [vmem:[%s3891_s23 + $0x50] sm:$0xff]  ;;  %v3966_v55 = vld [vmem:[%s3891_s23 + $0x58] sm:$0xff] }
  0x15   : > { %v355_v11 = vor.u32 %v354_v7, %v350_v3  ;;  %v348_v12 = vor.u32 %v347_v8, %v343_v5  ;;  %v368_v23 = vrot.slane %v366_v18, 1  ;;  %v465_v28 = vrot.slane %v3911_v14, 1  ;;  %v3974_v60 = vld [vmem:[%s3891_s23 + $0x60] sm:$0xff]  ;;  %v3984_v8 = vld [vmem:[%s3891_s23 + $0x68] sm:$0xff] }
  0x16   : > { %v362_v15 = vor.u32 %v361_v13, %v357_v9  ;;  %v375_v26 = vrot.slane %v373_v21, 1  ;;  %v380_v29 = vshll.u32 %v3926_v24, 16  ;;  %v378_v31 = vshrl.u32 %v3926_v24, 16  ;;  %v4002_v21 = vld [vmem:[%s3891_s23 + $0x70] sm:$0xff] }
  0x17   : > { %437 = vrot.lane.b32.xlu1 %v355_v11, %s3844_s24  ;;  %435 = vrot.lane.b32.xlu0 %v348_v12, %s3844_s24  ;;  %v369_v27 = vor.u32 %v368_v23, %v364_v22  ;;  %v466_v34 = vrot.slane %v3918_v19, 1  ;;  %v387_v36 = vshll.u32 %v3936_v33, 16  ;;  %v467_v38 = vrot.slane %v3926_v24, 1 }
  0x18   : > { %439 = vrot.lane.b32.xlu2 %v362_v15, %s3844_s24  ;;  %v376_v30 = vor.u32 %v375_v26, %v371_v25  ;;  %v382_v32 = vrot.slane %v380_v29, 1  ;;  %v385_v39 = vshrl.u32 %v3936_v33, 16  ;;  %v394_v42 = vshll.u32 %v3942_v37, 16 }
  0x19   : > { %v389_v40 = vrot.slane %v387_v36, 1  ;;  %v392_v43 = vshrl.u32 %v3942_v37, 16  ;;  %v468_v46 = vrot.slane %v3936_v33, 1  ;;  %v401_v47 = vshll.u32 %v3949_v41, 16 }
  0x1a   : > { %v383_v35 = vor.u32 %v382_v32, %v378_v31  ;;  %v396_v44 = vrot.slane %v394_v42, 1  ;;  %v399_v49 = vshrl.u32 %v3949_v41, 16  ;;  %v469_v52 = vrot.slane %v3942_v37, 1  ;;  %v3700_v31 = vld [vmem:[%s5544_s1 + $0x8] sm:$0xf] }
  0x1b   : > { %v390_v45 = vor.u32 %v389_v40, %v385_v39  ;;  %v403_v50 = vrot.slane %v401_v47, 1  ;;  %v408_v54 = vshll.u32 %v3960_v51, 16  ;;  %v470_v56 = vrot.slane %v3949_v41, 1  ;;  %v3812_v32 = vld [vmem:[%s5544_s1 + $0x8] sm:$0x30] }
  0x1c   : > { %v397_v48 = vor.u32 %v396_v44, %v392_v43  ;;  %v415_v57 = vshll.u32 %v3966_v55, 16  ;;  %v406_v58 = vshrl.u32 %v3960_v51, 16  ;;  %v413_v61 = vshrl.u32 %v3966_v55, 16 }
  0x1d   : > { %v404_v53 = vor.u32 %v403_v50, %v399_v49  ;;  %v410_v59 = vrot.slane %v408_v54, 1  ;;  %v471_v3 = vrot.slane %v3960_v51, 1  ;;  %v422_v4 = vshll.u32 %v3974_v60, 16 }
  0x1e   : > { %v417_v62 = vrot.slane %v415_v57, 1  ;;  %v420_v6 = vshrl.u32 %v3974_v60, 16  ;;  %v472_v9 = vrot.slane %v3966_v55, 1  ;;  %v429_v11 = vshll.u32 %v3984_v8, 16 }
  0x1f   : > { %479 = vrot.lane.b32.xlu1 %v463_v16, %s3845_s25  ;;  %477 = vrot.lane.b32.xlu0 %v462_v17, %s3845_s25  ;;  %v411_v63 = vor.u32 %v410_v59, %v406_v58  ;;  %v424_v7 = vrot.slane %v422_v4, 1  ;;  %v473_v12 = vrot.slane %v3974_v60, 1  ;;  %v427_v13 = vshrl.u32 %v3984_v8, 16  ;;  %v3994_v16 = vld [vmem:[%s3891_s23] sm:$0xff] }
  0x20   : > { %481 = vrot.lane.b32.xlu2 %v464_v20, %s3845_s25  ;;  %v418_v5 = vor.u32 %v417_v62, %v413_v61  ;;  %v431_v15 = vrot.slane %v429_v11, 1  ;;  %v474_v18 = vrot.slane %v3984_v8, 1  ;;  %v338_v20 = vshll.u32 %v3994_v16, 16 }
  0x21   : > { %v425_v10 = vor.u32 %v424_v7, %v420_v6  ;;  %v336_v22 = vshrl.u32 %v3994_v16, 16  ;;  %v575_v25 = vrot.slane %v4002_v21, 1  ;;  %v461_v39 = vrot.slane %v3994_v16, 1 }
  0x22   : > { %v432_v17 = vor.u32 %v431_v15, %v427_v13  ;;  %v340_v23 = vrot.slane %v338_v20, 1 }
  0x24   : > { %v341_v26 = vor.u32 %v340_v23, %v336_v22 }
  0x27   : > { %441 = vrot.lane.b32.xlu0 %v369_v27, %s3844_s24  ;;  %483 = vrot.lane.b32.xlu1 %v465_v28, %s3845_s25  ;;  %v569_v27 = vshll.u32 %v4002_v21, 16  ;;  %v567_v28 = vshrl.u32 %v4002_v21, 16 }
  0x28   : > { %443 = vrot.lane.b32.xlu2 %v376_v30, %s3844_s24 }
  0x29   : > { %v571_v29 = vrot.slane %v569_v27, 1 }
  0x2b   : > { %v572_v30 = vor.u32 %v571_v29, %v567_v28 }
  0x2f   : > { %485 = vrot.lane.b32.xlu0 %v466_v34, %s3845_s25  ;;  %445 = vrot.lane.b32.xlu1 %v383_v35, %s3844_s24  ;;  %v3701_v34 = vor.u32 %v3812_v32, %v3700_v31 }
  0x30   : > { %487 = vrot.lane.b32.xlu2 %v467_v38, %s3845_s25 }
  0x31   : > { %v916_v38 = vsel %vm914_vm0, %v3701_v34, 0 }
  0x32   : > { %925 = vmatpush.bf16.msra.mxu0 %v916_v38  ;;  %3817 = vmatpush.bf16.msra.mxu1 %v916_v38 }
  0x33   : > { %3818 = vmatpush.bf16.msra.mxu2 %v916_v38 }
  0x37   : > { %447 = vrot.lane.b32.xlu0 %v390_v45, %s3844_s24  ;;  %489 = vrot.lane.b32.xlu1 %v468_v46, %s3845_s25 }
  0x38   : > { %449 = vrot.lane.b32.xlu2 %v397_v48, %s3844_s24 }
  0x3f   : > { %491 = vrot.lane.b32.xlu0 %v469_v52, %s3845_s25  ;;  %451 = vrot.lane.b32.xlu1 %v404_v53, %s3844_s24 }
  0x40   : > { %493 = vrot.lane.b32.xlu2 %v470_v56, %s3845_s25 }
  0x47   : > { %453 = vrot.lane.b32.xlu0 %v411_v63, %s3844_s24  ;;  %495 = vrot.lane.b32.xlu1 %v471_v3, %s3845_s25 }
  0x48   : > { %455 = vrot.lane.b32.xlu2 %v418_v5, %s3844_s24 }
  0x4f   : > { %497 = vrot.lane.b32.xlu0 %v472_v9, %s3845_s25  ;;  %457 = vrot.lane.b32.xlu1 %v425_v10, %s3844_s24 }
  0x50   : > { %499 = vrot.lane.b32.xlu2 %v473_v12, %s3845_s25 }
  0x57   : > { %459 = vrot.lane.b32.xlu0 %v432_v17, %s3844_s24  ;;  %501 = vrot.lane.b32.xlu1 %v474_v18, %s3845_s25 }
  0x58   : > { %573 = vrot.lane.b32.xlu2 %v572_v30, %s3844_s24 }
  0x5f   : > { %576 = vrot.lane.b32.xlu0 %v575_v25, %s3845_s25  ;;  %433 = vrot.lane.b32.xlu1 %v341_v26, %s3844_s24 }
  0x60   : > { %475 = vrot.lane.b32.xlu2 %v461_v39, %s3845_s25 }
  0x72   : > { %v440_v52 = vpop.permute.xlu2 %439 }
  0x73   : > { %v511_v54 = vsel %vm503_vm1, %v3900_v2, %v440_v52 }
  0x7a   : > { %v482_v58 = vpop.permute.xlu2 %481 }
  0x7b   : > { %v4072_v2 = vsel %vm532_vm2, %v511_v54, %v482_v58 }
  0x7c   : > { %v4081_v3 = vrot.slane %v4072_v2, 1  ;;  %v4088_v7 = vrot.slane %v4072_v2, 2  ;;  %v4091_v9 = vrot.slane %v4072_v2, 3  ;;  %v4097_v12 = vrot.slane %v4072_v2, 4 }
  0x7d   : > { %v4101_v13 = vrot.slane %v4072_v2, 5 }
  0x82   : > { %v444_v18 = vpop.permute.xlu2 %443 }
  0x83   : > { %v515_v20 = vsel %vm503_vm1, %v3918_v19, %v444_v18 }
  0x89   : > { %v438_v35 = vpop.permute.xlu1 %437  ;;  %v436_v36 = vpop.permute.xlu0 %435 }
  0x8a   : > { %v509_v40 = vsel %vm503_vm1, %v3894_v0, %v438_v35  ;;  %v507_v42 = vsel %vm503_vm1, %v3897_v1, %v436_v36  ;;  %v488_v35 = vpop.permute.xlu2 %487 }
  0x91   : > { %v480_v43 = vpop.permute.xlu1 %479  ;;  %v478_v44 = vpop.permute.xlu0 %477 }
  0x92   : > { %v4025_v45 = vsel %vm532_vm2, %v509_v40, %v480_v43  ;;  %v4028_v46 = vsel %vm532_vm2, %v507_v42, %v478_v44 }
  0x93   : > { %700 = vst [vmem:[#allocation1 + $0x7] ss:$9 sm:$0xff] %v4025_v45  ;;  %v5554_v47 = vrot.slane %v4028_v46, 1  ;;  %v5553_v48 = vrot.slane %v4028_v46, 2  ;;  %v5552_v0 = vrot.slane %v4028_v46, 3  ;;  %v5551_v1 = vrot.slane %v4028_v46, 4 }
  0x94   : > { %680 = vst [vmem:[#allocation1] ss:$9 sm:$0xff] %v4028_v46  ;;  %v5550_v49 = vrot.slane %v4028_v46, 5  ;;  %v5549_v50 = vrot.slane %v4028_v46, 6  ;;  %v4051_v53 = vrot.slane %v4025_v45, 1  ;;  %v4056_v56 = vrot.slane %v4025_v45, 2 }
  0x95   : > { %683 = vst [vmem:[#allocation1 + $0x1] ss:$9 sm:$0xff] %v5554_v47  ;;  %v4059_v59 = vrot.slane %v4025_v45, 3  ;;  %v4064_v61 = vrot.slane %v4025_v45, 4  ;;  %v4068_v62 = vrot.slane %v4025_v45, 5  ;;  %v4075_v63 = vrot.slane %v4025_v45, 6 }
  0x96   : > { %686 = vst [vmem:[#allocation1 + $0x2] ss:$9 sm:$0xff] %v5553_v48 }
  0x97   : > { %689 = vst [vmem:[#allocation1 + $0x3] ss:$9 sm:$0xff] %v5552_v0 }
  0x98   : > { %692 = vst [vmem:[#allocation1 + $0x4] ss:$9 sm:$0xff] %v5551_v1 }
  0x99   : > { %695 = vst [vmem:[#allocation1 + $0x5] ss:$9 sm:$0xff] %v5550_v49  ;;  %v442_v4 = vpop.permute.xlu0 %441  ;;  %v484_v6 = vpop.permute.xlu1 %483 }
  0x9a   : > { %698 = vst [vmem:[#allocation1 + $0x6] ss:$9 sm:$0xff] %v5549_v50  ;;  %v513_v5 = vsel %vm503_vm1, %v3911_v14, %v442_v4  ;;  %v4106_v14 = vrot.slane %v4072_v2, 6 }
  0x9b   : > { %v4094_v11 = vsel %vm532_vm2, %v513_v5, %v484_v6 }
  0x9c   : > { %v4110_v15 = vrot.slane %v4094_v11, 1  ;;  %v4114_v17 = vrot.slane %v4094_v11, 2  ;;  %v4123_v23 = vrot.slane %v4094_v11, 3  ;;  %v4129_v26 = vrot.slane %v4094_v11, 4 }
  0x9d   : > { %v4132_v28 = vrot.slane %v4094_v11, 5  ;;  %v4136_v29 = vrot.slane %v4094_v11, 6 }
  0xa1   : > { %v701_v57 = vld [vmem:[#allocation1] sm:$0xff]  ;;  %v486_v22 = vpop.permute.xlu0 %485  ;;  %v446_v32 = vpop.permute.xlu1 %445 }
  0xa2   : > { %703 = vst [vmem:[#allocation1] ss:$9 sm:$0xff] %v4051_v53  ;;  %3702 = vmatmul.msk.bf16.vlgmr.msra.gmra.mxu0 %vm887_vm3, %v701_v57  ;;  %v4126_v25 = vsel %vm532_vm2, %v515_v20, %v486_v22  ;;  %v517_v34 = vsel %vm503_vm1, %v3926_v24, %v446_v32  ;;  %v450_v32 = vpop.permute.xlu2 %449 }
  0xa3   : > { %705 = vst [vmem:[#allocation1 + $0x1] ss:$9 sm:$0xff] %v4056_v56  ;;  %v4140_v19 = vrot.slane %v4126_v25, 1  ;;  %v4144_v30 = vrot.slane %v4126_v25, 2  ;;  %v4149_v31 = vrot.slane %v4126_v25, 3  ;;  %v4158_v36 = vsel %vm532_vm2, %v517_v34, %v488_v35 }
  0xa4   : > { %707 = vst [vmem:[#allocation1 + $0x2] ss:$9 sm:$0xff] %v4059_v59  ;;  %v4161_v38 = vrot.slane %v4126_v25, 4  ;;  %v4164_v39 = vrot.slane %v4126_v25, 5  ;;  %v4167_v42 = vrot.slane %v4126_v25, 6  ;;  %v4171_v43 = vrot.slane %v4158_v36, 1 }
  0xa5   : > { %709 = vst [vmem:[#allocation1 + $0x3] ss:$9 sm:$0xff] %v4064_v61  ;;  %v4175_v24 = vrot.slane %v4158_v36, 2  ;;  %v4179_v44 = vrot.slane %v4158_v36, 3  ;;  %v4182_v52 = vrot.slane %v4158_v36, 4  ;;  %v4196_v5 = vrot.slane %v4158_v36, 5 }
  0xa6   : > { %711 = vst [vmem:[#allocation1 + $0x4] ss:$9 sm:$0xff] %v4068_v62  ;;  %v4199_v6 = vrot.slane %v4158_v36, 6  ;;  %v521_v34 = vsel %vm503_vm1, %v3942_v37, %v450_v32 }
  0xa7   : > { %713 = vst [vmem:[#allocation1 + $0x5] ss:$9 sm:$0xff] %v4075_v63 }
  0xa8   : > { %714 = vst [vmem:[#allocation1 + $0x6] ss:$9 sm:$0xff] %v4072_v2 }
  0xa9   : > { %716 = vst [vmem:[#allocation1 + $0x7] ss:$9 sm:$0xff] %v4081_v3  ;;  %v448_v54 = vpop.permute.xlu0 %447  ;;  %v490_v58 = vpop.permute.xlu1 %489 }
  0xaa   : > { %v519_v57 = vsel %vm503_vm1, %v3936_v33, %v448_v54  ;;  %v494_v1 = vpop.permute.xlu2 %493 }
  0xab   : > { %v4193_v4 = vsel %vm532_vm2, %v519_v57, %v490_v58 }
  0xac   : > { %v4202_v18 = vrot.slane %v4193_v4, 1  ;;  %v4206_v20 = vrot.slane %v4193_v4, 2  ;;  %v4210_v33 = vrot.slane %v4193_v4, 3  ;;  %v4213_v22 = vrot.slane %v4193_v4, 4 }
  0xb0   : > { %v717_v10 = vld [vmem:[#allocation1] sm:$0xff] }
  0xb1   : > { %719 = vst [vmem:[#allocation1] ss:$9 sm:$0xff] %v4088_v7  ;;  %v492_v35 = vpop.permute.xlu0 %491 }
  0xb2   : > { %721 = vst [vmem:[#allocation1 + $0x1] ss:$9 sm:$0xff] %v4091_v9  ;;  %3703 = vmatmul.msk.bf16.gmra.mxu0 %vm887_vm3, %v717_v10 }
  0xb3   : > { %723 = vst [vmem:[#allocation1 + $0x2] ss:$9 sm:$0xff] %v4097_v12 }
  0xb4   : > { %725 = vst [vmem:[#allocation1 + $0x3] ss:$9 sm:$0xff] %v4101_v13 }
  0xb5   : > { %727 = vst [vmem:[#allocation1 + $0x4] ss:$9 sm:$0xff] %v4106_v14 }
  0xb6   : > { %728 = vst [vmem:[#allocation1 + $0x5] ss:$9 sm:$0xff] %v4094_v11 }
  0xb7   : > { %730 = vst [vmem:[#allocation1 + $0x6] ss:$9 sm:$0xff] %v4110_v15 }
  0xb8   : > { %732 = vst [vmem:[#allocation1 + $0x7] ss:$9 sm:$0xff] %v4114_v17 }
  0xb9   : > { %v454_v48 = vpop.permute.xlu0 %453 }
  0xbf   : > { %v733_v27 = vld [vmem:[#allocation1] sm:$0xff] }
  0xc0   : > { %735 = vst [vmem:[#allocation1] ss:$9 sm:$0xff] %v4123_v23 }
  0xc1   : > { %737 = vst [vmem:[#allocation1 + $0x1] ss:$9 sm:$0xff] %v4129_v26 }
  0xc2   : > { %739 = vst [vmem:[#allocation1 + $0x2] ss:$9 sm:$0xff] %v4132_v28  ;;  %3704 = vmatmul.msk.bf16.gmra.mxu0 %vm887_vm3, %v733_v27  ;;  %v4217_v27 = vrot.slane %v4193_v4, 5 }
  0xc3   : > { %741 = vst [vmem:[#allocation1 + $0x3] ss:$9 sm:$0xff] %v4136_v29 }
  0xc4   : > { %742 = vst [vmem:[#allocation1 + $0x4] ss:$9 sm:$0xff] %v4126_v25 }
  0xc5   : > { %744 = vst [vmem:[#allocation1 + $0x5] ss:$9 sm:$0xff] %v4140_v19 }
  0xc6   : > { %746 = vst [vmem:[#allocation1 + $0x6] ss:$9 sm:$0xff] %v4144_v30 }
  0xc7   : > { %748 = vst [vmem:[#allocation1 + $0x7] ss:$9 sm:$0xff] %v4149_v31 }
  0xce   : > { %v749_v40 = vld [vmem:[#allocation1] sm:$0xff] }
  0xcf   : > { %751 = vst [vmem:[#allocation1] ss:$9 sm:$0xff] %v4161_v38 }
  0xd0   : > { %753 = vst [vmem:[#allocation1 + $0x1] ss:$9 sm:$0xff] %v4164_v39 }
  0xd1   : > { %755 = vst [vmem:[#allocation1 + $0x2] ss:$9 sm:$0xff] %v4167_v42 }
  0xd2   : > { %756 = vst [vmem:[#allocation1 + $0x3] ss:$9 sm:$0xff] %v4158_v36  ;;  %3705 = vmatmul.msk.bf16.gmra.mxu0 %vm887_vm3, %v749_v40  ;;  %v4228_v40 = vsel %vm532_vm2, %v521_v34, %v492_v35  ;;  %v4253_v34 = vrot.slane %v4193_v4, 6  ;;  %v452_v35 = vpop.permute.xlu1 %451 }
  0xd3   : > { %758 = vst [vmem:[#allocation1 + $0x4] ss:$9 sm:$0xff] %v4171_v43  ;;  %v4231_v54 = vrot.slane %v4228_v40, 1  ;;  %v4234_v57 = vrot.slane %v4228_v40, 2  ;;  %v4240_v50 = vrot.slane %v4228_v40, 4  ;;  %v4244_v37 = vrot.slane %v4228_v40, 5 }
  0xd4   : > { %760 = vst [vmem:[#allocation1 + $0x5] ss:$9 sm:$0xff] %v4175_v24  ;;  %v4249_v32 = vrot.slane %v4228_v40, 6  ;;  %v523_v49 = vsel %vm503_vm1, %v3949_v41, %v452_v35  ;;  %v525_v41 = vsel %vm503_vm1, %v3960_v51, %v454_v48  ;;  %v456_v51 = vpop.permute.xlu2 %455 }
  0xd5   : > { %762 = vst [vmem:[#allocation1 + $0x6] ss:$9 sm:$0xff] %v4179_v44  ;;  %v4263_v0 = vsel %vm532_vm2, %v523_v49, %v494_v1  ;;  %v527_v48 = vsel %vm503_vm1, %v3966_v55, %v456_v51 }
  0xd6   : > { %764 = vst [vmem:[#allocation1 + $0x7] ss:$9 sm:$0xff] %v4182_v52  ;;  %v4266_v47 = vrot.slane %v4263_v0, 1  ;;  %v4279_v49 = vrot.slane %v4263_v0, 4  ;;  %v4283_v35 = vrot.slane %v4263_v0, 5 }
  0xd7   : > { %5637 = vst [vmem:[#allocation2_spill] sm:$0xff] %v4231_v54 }
  0xd8   : > { %5639 = vst [vmem:[#allocation4_spill] sm:$0xff] %v4240_v50 }
  0xd9   : > { %5640 = vst [vmem:[#allocation5_spill] sm:$0xff] %v4244_v37 }
  0xda   : > { %5641 = vst [vmem:[#allocation6_spill] sm:$0xff] %v4249_v32  ;;  %v496_v1 = vpop.permute.xlu1 %495 }
  0xdb   : > { %5642 = vst [vmem:[#allocation7_spill] sm:$0xff] %v4263_v0 }
  0xdc   : > { %5643 = vst [vmem:[#allocation8_spill] sm:$0xff] %v4266_v47 }
  0xdd   : > { %v765_v10 = vld [vmem:[#allocation1] sm:$0xff]  ;;  %5646 = vst [vmem:[#allocation11_spill] sm:$0xff] %v4279_v49 }
  0xde   : > { %767 = vst [vmem:[#allocation1] ss:$9 sm:$0xff] %v4196_v5 }
  0xdf   : > { %769 = vst [vmem:[#allocation1 + $0x1] ss:$9 sm:$0xff] %v4199_v6 }
  0xe0   : > { %770 = vst [vmem:[#allocation1 + $0x2] ss:$9 sm:$0xff] %v4193_v4 }
  0xe1   : > { %772 = vst [vmem:[#allocation1 + $0x3] ss:$9 sm:$0xff] %v4202_v18 }
  0xe2   : > { %774 = vst [vmem:[#allocation1 + $0x4] ss:$9 sm:$0xff] %v4206_v20  ;;  %3706 = vmatmul.msk.bf16.gmra.mxu0 %vm887_vm3, %v765_v10  ;;  %v4237_v10 = vrot.slane %v4228_v40, 3 }
  0xe3   : > { %776 = vst [vmem:[#allocation1 + $0x5] ss:$9 sm:$0xff] %v4210_v33 }
  0xe4   : > { %778 = vst [vmem:[#allocation1 + $0x6] ss:$9 sm:$0xff] %v4213_v22 }
  0xe5   : > { %780 = vst [vmem:[#allocation1 + $0x7] ss:$9 sm:$0xff] %v4217_v27 }
  0xe6   : > { %5638 = vst [vmem:[#allocation3_spill] sm:$0xff] %v4237_v10 }
  0xe7   : > { %5647 = vst [vmem:[#allocation12_spill] sm:$0xff] %v4283_v35 }
  0xec   : > { %v781_v58 = vld [vmem:[#allocation1] sm:$0xff] }
  0xed   : > { %784 = vst [vmem:[#allocation1 + $0x1] ss:$9 sm:$0xff] %v4228_v40 }
  0xee   : > { %786 = vst [vmem:[#allocation1 + $0x2] ss:$9 sm:$0xff] %v4231_v54 }
  0xef   : > { %788 = vst [vmem:[#allocation1 + $0x3] ss:$9 sm:$0xff] %v4234_v57 }
  0xf0   : > { %790 = vst [vmem:[#allocation1 + $0x4] ss:$9 sm:$0xff] %v4237_v10 }
  0xf1   : > { %792 = vst [vmem:[#allocation1 + $0x5] ss:$9 sm:$0xff] %v4240_v50 }
  0xf2   : > { %794 = vst [vmem:[#allocation1 + $0x6] ss:$9 sm:$0xff] %v4244_v37  ;;  %3707 = vmatmul.msk.bf16.gmra.mxu0 %vm887_vm3, %v781_v58  ;;  %v4269_v37 = vrot.slane %v4263_v0, 2  ;;  %v4273_v58 = vrot.slane %v4263_v0, 3 }
  0xf3   : > { %783 = vst [vmem:[#allocation1] ss:$9 sm:$0xff] %v4253_v34 }
  0xf4   : > { %796 = vst [vmem:[#allocation1 + $0x7] ss:$9 sm:$0xff] %v4249_v32  ;;  %v4287_v32 = vrot.slane %v4263_v0, 6 }
  0xf5   : > { %5644 = vst [vmem:[#allocation9_spill] sm:$0xff] %v4269_v37 }
  0xf6   : > { %5645 = vst [vmem:[#allocation10_spill] sm:$0xff] %v4273_v58 }
  0xf7   : > { %5648 = vst [vmem:[#allocation13_spill] sm:$0xff] %v4287_v32 }
  0xfb   : > { %v797_v50 = vld [vmem:[#allocation1] sm:$0xff] }
  0xfc   : > { %798 = vst [vmem:[#allocation1] ss:$9 sm:$0xff] %v4263_v0 }
  0xfd   : > { %800 = vst [vmem:[#allocation1 + $0x1] ss:$9 sm:$0xff] %v4266_v47  ;;  %v4291_v47 = vsel %vm532_vm2, %v525_v41, %v496_v1 }
  0xfe   : > { %802 = vst [vmem:[#allocation1 + $0x2] ss:$9 sm:$0xff] %v4269_v37  ;;  %v4300_v37 = vrot.slane %v4291_v47, 1  ;;  %v4306_v1 = vrot.slane %v4291_v47, 3  ;;  %v4317_v55 = vrot.slane %v4291_v47, 5  ;;  %v4321_v51 = vrot.slane %v4291_v47, 6 }
  0xff   : > { %804 = vst [vmem:[#allocation1 + $0x3] ss:$9 sm:$0xff] %v4273_v58  ;;  %v498_v58 = vpop.permute.xlu0 %497 }
 0x100   : > { %806 = vst [vmem:[#allocation1 + $0x4] ss:$9 sm:$0xff] %v4279_v49  ;;  %v4303_v49 = vrot.slane %v4291_v47, 2 }
 0x101   : > { %5649 = vst [vmem:[#allocation14_spill] sm:$0xff] %v4291_v47 }
 0x102   : > { %808 = vst [vmem:[#allocation1 + $0x5] ss:$9 sm:$0xff] %v4283_v35  ;;  %3708 = vmatmul.msk.bf16.gmra.mxu0 %vm887_vm3, %v797_v50  ;;  %v4310_v50 = vsel %vm532_vm2, %v527_v48, %v498_v58  ;;  %v458_v58 = vpop.permute.xlu1 %457 }
 0x103   : > { %810 = vst [vmem:[#allocation1 + $0x6] ss:$9 sm:$0xff] %v4287_v32  ;;  %v4313_v32 = vrot.slane %v4291_v47, 4  ;;  %v529_v48 = vsel %vm503_vm1, %v3974_v60, %v458_v58  ;;  %v4349_v60 = vrot.slane %v4310_v50, 5 }
 0x104   : > { %811 = vst [vmem:[#allocation1 + $0x7] ss:$9 sm:$0xff] %v4291_v47  ;;  %v4344_v47 = vrot.slane %v4310_v50, 4 }
 0x105   : > { %5650 = vst [vmem:[#allocation15_spill] sm:$0xff] %v4300_v37 }
 0x106   : > { %5651 = vst [vmem:[#allocation16_spill] sm:$0xff] %v4303_v49 }
 0x107   : > { %5652 = vst [vmem:[#allocation17_spill] sm:$0xff] %v4306_v1 }
 0x108   : > { %5653 = vst [vmem:[#allocation18_spill] sm:$0xff] %v4310_v50 }
 0x109   : > { %5654 = vst [vmem:[#allocation19_spill] sm:$0xff] %v4313_v32 }
 0x10a   : > { %5655 = vst [vmem:[#allocation20_spill] sm:$0xff] %v4317_v55 }
 0x10b   : > { %v812_v41 = vld [vmem:[#allocation1] sm:$0xff]  ;;  %5656 = vst [vmem:[#allocation21_spill] sm:$0xff] %v4321_v51 }
 0x10c   : > { %814 = vst [vmem:[#allocation1] ss:$9 sm:$0xff] %v4300_v37  ;;  %v4325_v37 = vrot.slane %v4310_v50, 1 }
 0x10d   : > { %816 = vst [vmem:[#allocation1 + $0x1] ss:$9 sm:$0xff] %v4303_v49  ;;  %v4338_v49 = vrot.slane %v4310_v50, 3 }
 0x10e   : > { %818 = vst [vmem:[#allocation1 + $0x2] ss:$9 sm:$0xff] %v4306_v1  ;;  %v500_v1 = vpop.permute.xlu2 %499 }
 0x10f   : > { %820 = vst [vmem:[#allocation1 + $0x3] ss:$9 sm:$0xff] %v4313_v32  ;;  %v4335_v32 = vrot.slane %v4310_v50, 2 }
 0x110   : > { %5657 = vst [vmem:[#allocation22_spill] sm:$0xff] %v4325_v37 }
 0x111   : > { %822 = vst [vmem:[#allocation1 + $0x4] ss:$9 sm:$0xff] %v4317_v55 }
 0x112   : > { %824 = vst [vmem:[#allocation1 + $0x5] ss:$9 sm:$0xff] %v4321_v51  ;;  %3709 = vmatmul.msk.bf16.gmra.mxu0 %vm887_vm3, %v812_v41  ;;  %v4341_v51 = vsel %vm532_vm2, %v529_v48, %v500_v1  ;;  %v4353_v41 = vrot.slane %v4310_v50, 6 }
 0x113   : > { %825 = vst [vmem:[#allocation1 + $0x6] ss:$9 sm:$0xff] %v4310_v50  ;;  %v4357_v1 = vrot.slane %v4341_v51, 1  ;;  %v4361_v58 = vrot.slane %v4341_v51, 2 }
 0x114   : > { %827 = vst [vmem:[#allocation1 + $0x7] ss:$9 sm:$0xff] %v4325_v37  ;;  %v4379_v37 = vrot.slane %v4341_v51, 5 }
 0x115   : > { %5658 = vst [vmem:[#allocation23_spill] sm:$0xff] %v4335_v32 }
 0x116   : > { %5659 = vst [vmem:[#allocation24_spill] sm:$0xff] %v4338_v49 }
 0x117   : > { %5660 = vst [vmem:[#allocation25_spill] sm:$0xff] %v4341_v51 }
 0x118   : > { %5661 = vst [vmem:[#allocation26_spill] sm:$0xff] %v4344_v47 }
 0x119   : > { %5662 = vst [vmem:[#allocation27_spill] sm:$0xff] %v4349_v60 }
 0x11a   : > { %5663 = vst [vmem:[#allocation28_spill] sm:$0xff] %v4353_v41 }
 0x11b   : > { %v828_v55 = vld [vmem:[#allocation1] sm:$0xff]  ;;  %5664 = vst [vmem:[#allocation29_spill] sm:$0xff] %v4357_v1 }
 0x11c   : > { %830 = vst [vmem:[#allocation1] ss:$9 sm:$0xff] %v4335_v32  ;;  %3710 = vmatmul.msk.bf16.vlgmr.msra.gmra.mxu1 %vm887_vm3, %v828_v55  ;;  %v460_v55 = vpop.permute.xlu0 %459  ;;  %v4376_v32 = vrot.slane %v4341_v51, 4 }
 0x11d   : > { %832 = vst [vmem:[#allocation1 + $0x1] ss:$9 sm:$0xff] %v4338_v49  ;;  %v531_v48 = vsel %vm503_vm1, %v3984_v8, %v460_v55  ;;  %v4370_v49 = vrot.slane %v4341_v51, 3 }
 0x11e   : > { %834 = vst [vmem:[#allocation1 + $0x2] ss:$9 sm:$0xff] %v4344_v47  ;;  %v502_v47 = vpop.permute.xlu1 %501 }
 0x11f   : > { %836 = vst [vmem:[#allocation1 + $0x3] ss:$9 sm:$0xff] %v4349_v60  ;;  %v4373_v60 = vsel %vm532_vm2, %v531_v48, %v502_v47  ;;  %v574_v48 = vpop.permute.xlu2 %573 }
 0x120   : > { %5665 = vst [vmem:[#allocation30_spill] sm:$0xff] %v4361_v58  ;;  %v4387_v8 = vrot.slane %v4373_v60, 1  ;;  %v4392_v47 = vrot.slane %v4373_v60, 2  ;;  %v4396_v55 = vrot.slane %v4373_v60, 3 }
 0x121   : > { %838 = vst [vmem:[#allocation1 + $0x4] ss:$9 sm:$0xff] %v4353_v41 }
 0x122   : > { %839 = vst [vmem:[#allocation1 + $0x5] ss:$9 sm:$0xff] %v4341_v51 }
 0x123   : > { %841 = vst [vmem:[#allocation1 + $0x6] ss:$9 sm:$0xff] %v4357_v1 }
 0x124   : > { %843 = vst [vmem:[#allocation1 + $0x7] ss:$9 sm:$0xff] %v4361_v58  ;;  %v4383_v58 = vrot.slane %v4341_v51, 6 }
 0x125   : > { %5666 = vst [vmem:[#allocation31_spill] sm:$0xff] %v4370_v49 }
 0x126   : > { %5667 = vst [vmem:[#allocation32_spill] sm:$0xff] %v4373_v60 }
 0x127   : > { %5668 = vst [vmem:[#allocation33_spill] sm:$0xff] %v4376_v32 }
 0x128   : > { %5669 = vst [vmem:[#allocation34_spill] sm:$0xff] %v4379_v37 }
 0x129   : > { %5670 = vst [vmem:[#allocation35_spill] sm:$0xff] %v4383_v58 }
 0x12a   : > { %5671 = vst [vmem:[#allocation36_spill] sm:$0xff] %v4387_v8 }
 0x12b   : > { %v844_v41 = vld [vmem:[#allocation1] sm:$0xff]  ;;  %5672 = vst [vmem:[#allocation37_spill] sm:$0xff] %v4392_v47 }
 0x12c   : > { %846 = vst [vmem:[#allocation1] ss:$9 sm:$0xff] %v4370_v49  ;;  %3711 = vmatmul.msk.bf16.gmra.mxu1 %vm887_vm3, %v844_v41  ;;  %v579_v41 = vsel %vm503_vm1, %v4002_v21, %v574_v48  ;;  %v4411_v49 = vrot.slane %v4373_v60, 5 }
 0x12d   : > { %848 = vst [vmem:[#allocation1 + $0x1] ss:$9 sm:$0xff] %v4376_v32 }
 0x12e   : > { %850 = vst [vmem:[#allocation1 + $0x2] ss:$9 sm:$0xff] %v4379_v37  ;;  %v577_v37 = vpop.permute.xlu0 %576 }
 0x12f   : > { %852 = vst [vmem:[#allocation1 + $0x3] ss:$9 sm:$0xff] %v4383_v58  ;;  %v4405_v32 = vsel %vm532_vm2, %v579_v41, %v577_v37  ;;  %v4408_v58 = vrot.slane %v4373_v60, 4 }
 0x130   : > { %5673 = vst [vmem:[#allocation38_spill] sm:$0xff] %v4396_v55  ;;  %v5617_v21 = vrot.slane %v4405_v32, 2  ;;  %v5620_v37 = vrot.slane %v4405_v32, 3  ;;  %v5619_v48 = vrot.slane %v4405_v32, 4  ;;  %v5627_v41 = vrot.slane %v4405_v32, 5 }
 0x131   : > { %853 = vst [vmem:[#allocation1 + $0x4] ss:$9 sm:$0xff] %v4373_v60 }
 0x132   : > { %855 = vst [vmem:[#allocation1 + $0x5] ss:$9 sm:$0xff] %v4387_v8  ;;  %v4414_v8 = vrot.slane %v4373_v60, 6 }
 0x133   : > { %857 = vst [vmem:[#allocation1 + $0x6] ss:$9 sm:$0xff] %v4392_v47 }
 0x134   : > { %859 = vst [vmem:[#allocation1 + $0x7] ss:$9 sm:$0xff] %v4396_v55  ;;  %v5618_v55 = vrot.slane %v4405_v32, 1 }
 0x135   : > { %5674 = vst [vmem:[#allocation39_spill] sm:$0xff] %v4405_v32 }
 0x136   : > { %5675 = vst [vmem:[#allocation40_spill] sm:$0xff] %v4408_v58 }
 0x137   : > { %5676 = vst [vmem:[#allocation41_spill] sm:$0xff] %v4411_v49 }
 0x138   : > { %5677 = vst [vmem:[#allocation42_spill] sm:$0xff] %v4414_v8 }
 0x13b   : > { %v860_v1 = vld [vmem:[#allocation1] sm:$0xff] }
 0x13c   : > { %862 = vst [vmem:[#allocation1] ss:$9 sm:$0xff] %v4408_v58  ;;  %3712 = vmatmul.msk.bf16.gmra.mxu1 %vm887_vm3, %v860_v1  ;;  %v5630_v1 = vrot.slane %v4405_v32, 6 }
 0x13d   : > { %864 = vst [vmem:[#allocation1 + $0x1] ss:$9 sm:$0xff] %v4411_v49 }
 0x13e   : > { %866 = vst [vmem:[#allocation1 + $0x2] ss:$9 sm:$0xff] %v4414_v8  ;;  %v434_v8 = vpop.permute.xlu1 %433 }
 0x13f   : > { %867 = vst [vmem:[#allocation1 + $0x3] ss:$9 sm:$0xff] %v4405_v32 }
 0x140   : > { %869 = vst [vmem:[#allocation1 + $0x4] ss:$9 sm:$0xff] %v5618_v55  ;;  %v476_v55 = vpop.permute.xlu2 %475 }
 0x141   : > { %871 = vst [vmem:[#allocation1 + $0x5] ss:$9 sm:$0xff] %v5617_v21  ;;  %v505_v21 = vsel %vm503_vm1, %v3994_v16, %v434_v8  ;;  %v5679_v8 = vrot.slane %v4028_v46, 2 }
 0x142   : > { %873 = vst [vmem:[#allocation1 + $0x6] ss:$9 sm:$0xff] %v5620_v37 }
 0x143   : > { %875 = vst [vmem:[#allocation1 + $0x7] ss:$9 sm:$0xff] %v5619_v48  ;;  %v534_v48 = vsel %vm532_vm2, %v505_v21, %v476_v55  ;;  %v5681_v55 = vrot.slane %v4028_v46, 4 }
 0x144   : > { %v992_v37 = vrot.slane %v534_v48, 1  ;;  %v993_v47 = vrot.slane %v534_v48, 2  ;;  %v994_v60 = vrot.slane %v534_v48, 3  ;;  %v996_v32 = vrot.slane %v534_v48, 5 }
 0x14a   : > { %v876_v49 = vld [vmem:[#allocation1] sm:$0xff] }
 0x14b   : > { %878 = vst [vmem:[#allocation1] ss:$9 sm:$0xff] %v5627_v41  ;;  %v995_v41 = vrot.slane %v534_v48, 4 }
 0x14c   : > { %880 = vst [vmem:[#allocation1 + $0x1] ss:$9 sm:$0xff] %v5630_v1  ;;  %3713 = vmatmul.msk.bf16.gmra.mxu1 %vm887_vm3, %v876_v49  ;;  %v997_v1 = vrot.slane %v534_v48, 6  ;;  %v5678_v49 = vrot.slane %v4028_v46, 1 }
 0x153   : > { %v881_v58 = vld [vmem:[#allocation1] sm:$0xff] }
 0x154   : > { %1018 = vst [vmem:[#allocation1 + $0x7] ss:$9 sm:$0xff] %v4028_v46  ;;  %3714 = vmatmul.msk.bf16.vlgmr.msra.gmra.mxu2 %vm887_vm3, %v881_v58  ;;  %v5680_v58 = vrot.slane %v4028_v46, 3 }
 0x155   : > { %998 = vst [vmem:[#allocation1] ss:$9 sm:$0xff] %v534_v48 }
 0x156   : > { %1001 = vst [vmem:[#allocation1 + $0x1] ss:$9 sm:$0xff] %v992_v37 }
 0x157   : > { %1004 = vst [vmem:[#allocation1 + $0x2] ss:$9 sm:$0xff] %v993_v47  ;;  %v5682_v47 = vrot.slane %v4028_v46, 5 }
 0x158   : > { %1007 = vst [vmem:[#allocation1 + $0x3] ss:$9 sm:$0xff] %v994_v60 }
 0x159   : > { %1010 = vst [vmem:[#allocation1 + $0x4] ss:$9 sm:$0xff] %v995_v41 }
 0x15a   : > { %1013 = vst [vmem:[#allocation1 + $0x5] ss:$9 sm:$0xff] %v996_v32  ;;  %v5683_v32 = vrot.slane %v4028_v46, 6 }
 0x15b   : > { %1016 = vst [vmem:[#allocation1 + $0x6] ss:$9 sm:$0xff] %v997_v1  ;;  %v5684_v1 = vld [vmem:[#allocation4_spill] sm:$0xff] }
 0x162   : > { %v4445_v16 = vld [vmem:[#allocation1] sm:$0xff] }
 0x163   : > { %1020 = vst [vmem:[#allocation1] ss:$9 sm:$0xff] %v5678_v49  ;;  %v5685_v49 = vld [vmem:[#allocation5_spill] sm:$0xff] }
 0x164   : > { %1021 = vst [vmem:[#allocation1 + $0x1] ss:$9 sm:$0xff] %v5679_v8  ;;  %v5686_v8 = vld [vmem:[#allocation6_spill] sm:$0xff] }
 0x165   : > { %1022 = vst [vmem:[#allocation1 + $0x2] ss:$9 sm:$0xff] %v5680_v58 }
 0x166   : > { %1023 = vst [vmem:[#allocation1 + $0x3] ss:$9 sm:$0xff] %v5681_v55  ;;  %v5688_v55 = vld [vmem:[#allocation8_spill] sm:$0xff] }
 0x167   : > { %1024 = vst [vmem:[#allocation1 + $0x4] ss:$9 sm:$0xff] %v5682_v47  ;;  %v5689_v47 = vld [vmem:[#allocation9_spill] sm:$0xff] }
 0x168   : > { %1025 = vst [vmem:[#allocation1 + $0x5] ss:$9 sm:$0xff] %v5683_v32  ;;  %v5690_v32 = vld [vmem:[#allocation10_spill] sm:$0xff] }
 0x169   : > { %1026 = vst [vmem:[#allocation1 + $0x6] ss:$9 sm:$0xff] %v4025_v45 }
 0x16a   : > { %1027 = vst [vmem:[#allocation1 + $0x7] ss:$9 sm:$0xff] %v4051_v53 }
 0x171   : > { %v4461_v60 = vld [vmem:[#allocation1] sm:$0xff] }
 0x172   : > { %1029 = vst [vmem:[#allocation1] ss:$9 sm:$0xff] %v4056_v56 }
 0x173   : > { %1030 = vst [vmem:[#allocation1 + $0x1] ss:$9 sm:$0xff] %v4059_v59 }
 0x174   : > { %1031 = vst [vmem:[#allocation1 + $0x2] ss:$9 sm:$0xff] %v4064_v61 }
 0x175   : > { %1032 = vst [vmem:[#allocation1 + $0x3] ss:$9 sm:$0xff] %v4068_v62 }
 0x176   : > { %1033 = vst [vmem:[#allocation1 + $0x4] ss:$9 sm:$0xff] %v4075_v63 }
 0x177   : > { %1034 = vst [vmem:[#allocation1 + $0x5] ss:$9 sm:$0xff] %v4072_v2 }
 0x178   : > { %1035 = vst [vmem:[#allocation1 + $0x6] ss:$9 sm:$0xff] %v4081_v3 }
 0x179   : > { %1036 = vst [vmem:[#allocation1 + $0x7] ss:$9 sm:$0xff] %v4088_v7 }
 0x180   : > { %v4471_v46 = vld [vmem:[#allocation1] sm:$0xff] }
 0x181   : > { %1038 = vst [vmem:[#allocation1] ss:$9 sm:$0xff] %v4091_v9 }
 0x182   : > { %1039 = vst [vmem:[#allocation1 + $0x1] ss:$9 sm:$0xff] %v4097_v12 }
 0x183   : > { %1040 = vst [vmem:[#allocation1 + $0x2] ss:$9 sm:$0xff] %v4101_v13 }
 0x184   : > { %1041 = vst [vmem:[#allocation1 + $0x3] ss:$9 sm:$0xff] %v4106_v14 }
 0x185   : > { %1042 = vst [vmem:[#allocation1 + $0x4] ss:$9 sm:$0xff] %v4094_v11 }
 0x186   : > { %1043 = vst [vmem:[#allocation1 + $0x5] ss:$9 sm:$0xff] %v4110_v15 }
 0x187   : > { %1044 = vst [vmem:[#allocation1 + $0x6] ss:$9 sm:$0xff] %v4114_v17 }
 0x188   : > { %1045 = vst [vmem:[#allocation1 + $0x7] ss:$9 sm:$0xff] %v4123_v23 }
 0x18f   : > { %v4481_v21 = vld [vmem:[#allocation1] sm:$0xff] }
 0x190   : > { %1047 = vst [vmem:[#allocation1] ss:$9 sm:$0xff] %v4129_v26 }
 0x191   : > { %1048 = vst [vmem:[#allocation1 + $0x1] ss:$9 sm:$0xff] %v4132_v28 }
 0x192   : > { %1049 = vst [vmem:[#allocation1 + $0x2] ss:$9 sm:$0xff] %v4136_v29 }
 0x193   : > { %1050 = vst [vmem:[#allocation1 + $0x3] ss:$9 sm:$0xff] %v4126_v25 }
 0x194   : > { %1051 = vst [vmem:[#allocation1 + $0x4] ss:$9 sm:$0xff] %v4140_v19 }
 0x195   : > { %1052 = vst [vmem:[#allocation1 + $0x5] ss:$9 sm:$0xff] %v4144_v30 }
 0x196   : > { %1053 = vst [vmem:[#allocation1 + $0x6] ss:$9 sm:$0xff] %v4149_v31 }
 0x197   : > { %1054 = vst [vmem:[#allocation1 + $0x7] ss:$9 sm:$0xff] %v4161_v38 }
 0x19e   : > { %v4491_v37 = vld [vmem:[#allocation1] sm:$0xff] }
 0x19f   : > { %1056 = vst [vmem:[#allocation1] ss:$9 sm:$0xff] %v4164_v39 }
 0x1a0   : > { %1057 = vst [vmem:[#allocation1 + $0x1] ss:$9 sm:$0xff] %v4167_v42 }
 0x1a1   : > { %1058 = vst [vmem:[#allocation1 + $0x2] ss:$9 sm:$0xff] %v4158_v36 }
 0x1a2   : > { %1059 = vst [vmem:[#allocation1 + $0x3] ss:$9 sm:$0xff] %v4171_v43 }
 0x1a3   : > { %1060 = vst [vmem:[#allocation1 + $0x4] ss:$9 sm:$0xff] %v4175_v24 }
 0x1a4   : > { %1061 = vst [vmem:[#allocation1 + $0x5] ss:$9 sm:$0xff] %v4179_v44 }
 0x1a5   : > { %1062 = vst [vmem:[#allocation1 + $0x6] ss:$9 sm:$0xff] %v4182_v52 }
 0x1a6   : > { %1063 = vst [vmem:[#allocation1 + $0x7] ss:$9 sm:$0xff] %v4196_v5 }
 0x1ad   : > { %v4501_v48 = vld [vmem:[#allocation1] sm:$0xff] }
 0x1ae   : > { %1065 = vst [vmem:[#allocation1] ss:$9 sm:$0xff] %v4199_v6 }
 0x1af   : > { %1066 = vst [vmem:[#allocation1 + $0x1] ss:$9 sm:$0xff] %v4193_v4 }
 0x1b0   : > { %1067 = vst [vmem:[#allocation1 + $0x2] ss:$9 sm:$0xff] %v4202_v18 }
 0x1b1   : > { %1068 = vst [vmem:[#allocation1 + $0x3] ss:$9 sm:$0xff] %v4206_v20 }
 0x1b2   : > { %1069 = vst [vmem:[#allocation1 + $0x4] ss:$9 sm:$0xff] %v4210_v33 }
 0x1b3   : > { %1070 = vst [vmem:[#allocation1 + $0x5] ss:$9 sm:$0xff] %v4213_v22 }
 0x1b4   : > { %1071 = vst [vmem:[#allocation1 + $0x6] ss:$9 sm:$0xff] %v4217_v27 }
 0x1b5   : > { %1072 = vst [vmem:[#allocation1 + $0x7] ss:$9 sm:$0xff] %v4253_v34 }
 0x1bc   : > { %v4511_v41 = vld [vmem:[#allocation1] sm:$0xff] }
 0x1bd   : > { %1074 = vst [vmem:[#allocation1] ss:$9 sm:$0xff] %v4228_v40 }
 0x1be   : > { %1075 = vst [vmem:[#allocation1 + $0x1] ss:$9 sm:$0xff] %v4231_v54  ;;  %v5691_v54 = vld [vmem:[#allocation11_spill] sm:$0xff] }
 0x1bf   : > { %1076 = vst [vmem:[#allocation1 + $0x2] ss:$9 sm:$0xff] %v4234_v57 }
 0x1c0   : > { %1077 = vst [vmem:[#allocation1 + $0x3] ss:$9 sm:$0xff] %v4237_v10  ;;  %v5692_v10 = vld [vmem:[#allocation13_spill] sm:$0xff] }
 0x1c1   : > { %1078 = vst [vmem:[#allocation1 + $0x4] ss:$9 sm:$0xff] %v5684_v1  ;;  %v5693_v1 = vld [vmem:[#allocation14_spill] sm:$0xff] }
 0x1c2   : > { %1079 = vst [vmem:[#allocation1 + $0x5] ss:$9 sm:$0xff] %v5685_v49  ;;  %v5694_v49 = vld [vmem:[#allocation15_spill] sm:$0xff] }
 0x1c3   : > { %1080 = vst [vmem:[#allocation1 + $0x6] ss:$9 sm:$0xff] %v5686_v8 }
 0x1c4   : > { %1081 = vst [vmem:[#allocation1 + $0x7] ss:$9 sm:$0xff] %v4263_v0  ;;  %v5696_v0 = vld [vmem:[#allocation16_spill] sm:$0xff] }
 0x1cb   : > { %v4521_v58 = vld [vmem:[#allocation1] sm:$0xff] }
 0x1cc   : > { %5687 = vst [vmem:[#allocation43_spill] sm:$0xff] %v4521_v58  ;;  %v5697_v58 = vld [vmem:[#allocation17_spill] sm:$0xff] }
 0x1cd   : > { %1083 = vst [vmem:[#allocation1] ss:$9 sm:$0xff] %v5688_v55  ;;  %v5698_v55 = vld [vmem:[#allocation19_spill] sm:$0xff] }
 0x1ce   : > { %1084 = vst [vmem:[#allocation1 + $0x1] ss:$9 sm:$0xff] %v5689_v47  ;;  %v5699_v47 = vld [vmem:[#allocation20_spill] sm:$0xff] }
 0x1cf   : > { %1085 = vst [vmem:[#allocation1 + $0x2] ss:$9 sm:$0xff] %v5690_v32  ;;  %v5700_v32 = vld [vmem:[#allocation21_spill] sm:$0xff] }
 0x1d0   : > { %1086 = vst [vmem:[#allocation1 + $0x3] ss:$9 sm:$0xff] %v5691_v54 }
 0x1d1   : > { %1087 = vst [vmem:[#allocation1 + $0x4] ss:$9 sm:$0xff] %v4283_v35  ;;  %v5701_v35 = vld [vmem:[#allocation22_spill] sm:$0xff] }
 0x1d2   : > { %1088 = vst [vmem:[#allocation1 + $0x5] ss:$9 sm:$0xff] %v5692_v10  ;;  %v5702_v10 = vld [vmem:[#allocation23_spill] sm:$0xff] }
 0x1d3   : > { %1089 = vst [vmem:[#allocation1 + $0x6] ss:$9 sm:$0xff] %v5693_v1 }
 0x1d4   : > { %1090 = vst [vmem:[#allocation1 + $0x7] ss:$9 sm:$0xff] %v5694_v49  ;;  %v5704_v49 = vld [vmem:[#allocation24_spill] sm:$0xff] }
 0x1db   : > { %v4531_v8 = vld [vmem:[#allocation1] sm:$0xff] }
 0x1dc   : > { %5695 = vst [vmem:[#allocation11_spill] sm:$0xff] %v4531_v8  ;;  %v5705_v8 = vld [vmem:[#allocation26_spill] sm:$0xff] }
 0x1dd   : > { %1092 = vst [vmem:[#allocation1] ss:$9 sm:$0xff] %v5696_v0  ;;  %v5706_v0 = vld [vmem:[#allocation27_spill] sm:$0xff] }
 0x1de   : > { %1093 = vst [vmem:[#allocation1 + $0x1] ss:$9 sm:$0xff] %v5697_v58  ;;  %v5707_v58 = vld [vmem:[#allocation28_spill] sm:$0xff] }
 0x1df   : > { %1094 = vst [vmem:[#allocation1 + $0x2] ss:$9 sm:$0xff] %v5698_v55 }
 0x1e0   : > { %1095 = vst [vmem:[#allocation1 + $0x3] ss:$9 sm:$0xff] %v5699_v47  ;;  %v5708_v47 = vld [vmem:[#allocation29_spill] sm:$0xff] }
 0x1e1   : > { %1096 = vst [vmem:[#allocation1 + $0x4] ss:$9 sm:$0xff] %v5700_v32  ;;  %v5714_v32 = vld [vmem:[#allocation32_spill] sm:$0xff] }
 0x1e2   : > { %1097 = vst [vmem:[#allocation1 + $0x5] ss:$9 sm:$0xff] %v4310_v50  ;;  %v5713_v50 = vld [vmem:[#allocation35_spill] sm:$0xff] }
 0x1e3   : > { %1098 = vst [vmem:[#allocation1 + $0x6] ss:$9 sm:$0xff] %v5701_v35  ;;  %v3717_v35 = vld [vmem:[%s5544_s1] sm:$0xf] }
 0x1e4   : > { %1099 = vst [vmem:[#allocation1 + $0x7] ss:$9 sm:$0xff] %v5702_v10  ;;  %v3811_v10 = vld [vmem:[%s5544_s1] sm:$0x30] }
 0x1eb   : > { %v4541_v1 = vld [vmem:[#allocation1] sm:$0xff] }
 0x1ec   : > { %5703 = vst [vmem:[#allocation19_spill] sm:$0xff] %v4541_v1  ;;  %v5709_v1 = vld [vmem:[#allocation30_spill] sm:$0xff] }
 0x1ed   : > { %1101 = vst [vmem:[#allocation1] ss:$9 sm:$0xff] %v5704_v49  ;;  %v3718_v49 = vor.u32 %v3811_v10, %v3717_v35  ;;  %v5716_v10 = vld [vmem:[#allocation37_spill] sm:$0xff]  ;;  %v5717_v35 = vld [vmem:[#allocation38_spill] sm:$0xff] }
 0x1ee   : > { %1102 = vst [vmem:[#allocation1 + $0x1] ss:$9 sm:$0xff] %v5705_v8  ;;  %v5710_v8 = vld [vmem:[#allocation31_spill] sm:$0xff] }
 0x1ef   : > { %1103 = vst [vmem:[#allocation1 + $0x2] ss:$9 sm:$0xff] %v5706_v0  ;;  %v1154_v0 = vsel %vm914_vm0, %v3718_v49, 0  ;;  %v5719_v49 = vld [vmem:[#allocation41_spill] sm:$0xff] }
 0x1f0   : > { %1104 = vst [vmem:[#allocation1 + $0x3] ss:$9 sm:$0xff] %v5707_v58  ;;  %1163 = vmatpush.bf16.msrb.mxu1 %v1154_v0  ;;  %v5712_v58 = vld [vmem:[#allocation34_spill] sm:$0xff]  ;;  %v5718_v0 = vld [vmem:[#allocation40_spill] sm:$0xff] }
 0x1f1   : > { %1105 = vst [vmem:[#allocation1 + $0x4] ss:$9 sm:$0xff] %v4341_v51  ;;  %v5711_v51 = vld [vmem:[#allocation33_spill] sm:$0xff] }
 0x1f2   : > { %1106 = vst [vmem:[#allocation1 + $0x5] ss:$9 sm:$0xff] %v5708_v47 }
 0x1f3   : > { %1107 = vst [vmem:[#allocation1 + $0x6] ss:$9 sm:$0xff] %v5709_v1  ;;  %3719 = vmatmul.msk.bf16.vlgmr.msrb.gmra.mxu1 %vm887_vm3, %v4445_v16  ;;  %v5715_v1 = vld [vmem:[#allocation36_spill] sm:$0xff] }
 0x1f4   : > { %1108 = vst [vmem:[#allocation1 + $0x7] ss:$9 sm:$0xff] %v5710_v8 }
 0x1fb   : > { %v4560_v47 = vld [vmem:[#allocation1] sm:$0xff] }
 0x1fc   : > { %1110 = vst [vmem:[#allocation1] ss:$9 sm:$0xff] %v5711_v51 }
 0x1fd   : > { %1111 = vst [vmem:[#allocation1 + $0x1] ss:$9 sm:$0xff] %v5712_v58  ;;  %v5720_v58 = vld [vmem:[#allocation42_spill] sm:$0xff] }
 0x1fe   : > { %1112 = vst [vmem:[#allocation1 + $0x2] ss:$9 sm:$0xff] %v5713_v50 }
 0x1ff   : > { %1113 = vst [vmem:[#allocation1 + $0x3] ss:$9 sm:$0xff] %v5714_v32 }
 0x200   : > { %1114 = vst [vmem:[#allocation1 + $0x4] ss:$9 sm:$0xff] %v5715_v1 }
 0x201   : > { %1115 = vst [vmem:[#allocation1 + $0x5] ss:$9 sm:$0xff] %v5716_v10 }
 0x202   : > { %1116 = vst [vmem:[#allocation1 + $0x6] ss:$9 sm:$0xff] %v5717_v35 }
 0x203   : > { %1117 = vst [vmem:[#allocation1 + $0x7] ss:$9 sm:$0xff] %v5718_v0  ;;  %3720 = vmatmul.msk.bf16.gmra.mxu1 %vm887_vm3, %v4461_v60  ;;  %v4588_v60 = vld [vmem:[%s3891_s23 + $0x78] sm:$0xff] }
 0x20a   : > { %v4572_v16 = vld [vmem:[#allocation1] sm:$0xff] }
 0x20b   : > { %1119 = vst [vmem:[#allocation1] ss:$9 sm:$0xff] %v5719_v49 }
 0x20c   : > { %1120 = vst [vmem:[#allocation1 + $0x1] ss:$9 sm:$0xff] %v5720_v58 }
 0x213   : > { %v4576_v50 = vld [vmem:[#allocation1] sm:$0xff]  ;;  %3721 = vmatmul.msk.bf16.gmra.mxu1 %vm887_vm3, %v4471_v46  ;;  %v5741_v46 = vld [vmem:[#allocation18_spill] sm:$0xff] }
 0x214   : > { %5721 = vst [vmem:[#allocation31_spill] sm:$0xff] %v4576_v50 }
 0x215   : > { %1428 = vst [vmem:[#allocation1] ss:$9 sm:$0xff] %v4025_v45  ;;  %v1408_v45 = vshll.u32 %v4588_v60, 16 }
 0x216   : > { %1430 = vst [vmem:[#allocation1 + $0x1] ss:$9 sm:$0xff] %v4051_v53  ;;  %v1406_v53 = vshrl.u32 %v4588_v60, 16 }
 0x217   : > { %1432 = vst [vmem:[#allocation1 + $0x2] ss:$9 sm:$0xff] %v4056_v56  ;;  %v1410_v56 = vrot.slane %v1408_v45, 1  ;;  %v5744_v45 = vld [vmem:[#allocation23_spill] sm:$0xff] }
 0x218   : > { %1434 = vst [vmem:[#allocation1 + $0x3] ss:$9 sm:$0xff] %v4059_v59  ;;  %v1414_v59 = vrot.slane %v4588_v60, 1 }
 0x219   : > { %1436 = vst [vmem:[#allocation1 + $0x4] ss:$9 sm:$0xff] %v4064_v61  ;;  %v1411_v50 = vor.u32 %v1410_v56, %v1406_v53  ;;  %v5745_v53 = vld [vmem:[#allocation24_spill] sm:$0xff]  ;;  %v5746_v56 = vld [vmem:[#allocation26_spill] sm:$0xff] }
 0x21a   : > { %1438 = vst [vmem:[#allocation1 + $0x5] ss:$9 sm:$0xff] %v4068_v62  ;;  %1415 = vrot.lane.b32.xlu1 %v1414_v59, %s3845_s25  ;;  %v5747_v59 = vld [vmem:[#allocation27_spill] sm:$0xff] }
 0x21b   : > { %1440 = vst [vmem:[#allocation1 + $0x6] ss:$9 sm:$0xff] %v4075_v63  ;;  %1412 = vrot.lane.b32.xlu0 %v1411_v50, %s3844_s24  ;;  %v5740_v50 = vld [vmem:[#allocation21_spill] sm:$0xff] }
 0x21c   : > { %1442 = vst [vmem:[#allocation1 + $0x7] ss:$9 sm:$0xff] %v4072_v2  ;;  %v4611_v2 = vpop.f32.mrf.mxu1 }
 0x223   : > { %v1443_v61 = vld [vmem:[#allocation1] sm:$0xff]  ;;  %3722 = vmatmul.msk.bf16.gmra.mxu1 %vm887_vm3, %v4481_v21 }
 0x224   : > { %1444 = vst [vmem:[#allocation1] ss:$9 sm:$0xff] %v4081_v3  ;;  %v4618_v63 = vpop.f32.mrf.mxu1 }
 0x225   : > { %1445 = vst [vmem:[#allocation1 + $0x1] ss:$9 sm:$0xff] %v4088_v7  ;;  %v3738_v7 = vld [vmem:[%s5544_s1 + $0x10] sm:$0xf] }
 0x226   : > { %1446 = vst [vmem:[#allocation1 + $0x2] ss:$9 sm:$0xff] %v4091_v9  ;;  %v3813_v9 = vld [vmem:[%s5544_s1 + $0x10] sm:$0x30] }
 0x227   : > { %1447 = vst [vmem:[#allocation1 + $0x3] ss:$9 sm:$0xff] %v4097_v12 }
 0x228   : > { %1448 = vst [vmem:[#allocation1 + $0x4] ss:$9 sm:$0xff] %v4101_v13 }
 0x229   : > { %1449 = vst [vmem:[#allocation1 + $0x5] ss:$9 sm:$0xff] %v4106_v14 }
 0x22a   : > { %1450 = vst [vmem:[#allocation1 + $0x6] ss:$9 sm:$0xff] %v4094_v11  ;;  %v3739_v11 = vor.u32 %v3813_v9, %v3738_v7 }
 0x22b   : > { %1451 = vst [vmem:[#allocation1 + $0x7] ss:$9 sm:$0xff] %v4110_v15 }
 0x22c   : > { %v1584_v12 = vsel %vm914_vm0, %v3739_v11, 0  ;;  %v4633_v13 = vpop.f32.mrf.mxu1  ;;  %v5751_v11 = vld [vmem:[#allocation30_spill] sm:$0xff] }
 0x22d   : > { %1593 = vmatpush.bf16.msrb.mxu2 %v1584_v12  ;;  %v5752_v12 = vld [vmem:[#allocation34_spill] sm:$0xff] }
 0x230   : > { %3740 = vmatmul.msk.bf16.vlgmr.msrb.gmra.mxu2 %vm887_vm3, %v1443_v61  ;;  %v5748_v61 = vld [vmem:[#allocation28_spill] sm:$0xff] }
 0x232   : > { %v1452_v62 = vld [vmem:[#allocation1] sm:$0xff] }
 0x233   : > { %1453 = vst [vmem:[#allocation1] ss:$9 sm:$0xff] %v4114_v17  ;;  %3723 = vmatmul.msk.bf16.gmra.mxu1 %vm887_vm3, %v4491_v37  ;;  %v5742_v37 = vld [vmem:[#allocation19_spill] sm:$0xff] }
 0x234   : > { %1454 = vst [vmem:[#allocation1 + $0x1] ss:$9 sm:$0xff] %v4123_v23  ;;  %v4640_v14 = vpop.f32.mrf.mxu1  ;;  %v4655_v23 = vpop.f32.mrf.mxu2 }
 0x235   : > { %1455 = vst [vmem:[#allocation1 + $0x2] ss:$9 sm:$0xff] %v4129_v26 }
 0x236   : > { %1456 = vst [vmem:[#allocation1 + $0x3] ss:$9 sm:$0xff] %v4132_v28  ;;  %v5722_v28 = vld [vmem:[#allocation2_spill] sm:$0xff] }
 0x237   : > { %1457 = vst [vmem:[#allocation1 + $0x4] ss:$9 sm:$0xff] %v4136_v29  ;;  %v5723_v29 = vld [vmem:[#allocation3_spill] sm:$0xff] }
 0x238   : > { %1458 = vst [vmem:[#allocation1 + $0x5] ss:$9 sm:$0xff] %v4126_v25 }
 0x239   : > { %1459 = vst [vmem:[#allocation1 + $0x6] ss:$9 sm:$0xff] %v4140_v19 }
 0x23a   : > { %1460 = vst [vmem:[#allocation1 + $0x7] ss:$9 sm:$0xff] %v4144_v30  ;;  %v5724_v30 = vld [vmem:[#allocation4_spill] sm:$0xff] }
 0x23c   : > { %v4649_v17 = vpop.f32.mrf.mxu1  ;;  %v989_v19 = vpop.f32.mrf.mxu2 }
 0x240   : > { %3741 = vmatmul.msk.bf16.gmra.mxu2 %vm887_vm3, %v1452_v62  ;;  %v5749_v62 = vld [vmem:[#allocation25_spill] sm:$0xff] }
 0x241   : > { %v1461_v3 = vld [vmem:[#allocation1] sm:$0xff] }
 0x242   : > { %1462 = vst [vmem:[#allocation1] ss:$9 sm:$0xff] %v4149_v31  ;;  %v5725_v31 = vld [vmem:[#allocation5_spill] sm:$0xff] }
 0x243   : > { %1463 = vst [vmem:[#allocation1 + $0x1] ss:$9 sm:$0xff] %v4161_v38  ;;  %3724 = vmatmul.msk.bf16.gmra.mxu1 %vm887_vm3, %v4501_v48  ;;  %v5726_v38 = vld [vmem:[#allocation43_spill] sm:$0xff] }
 0x244   : > { %1464 = vst [vmem:[#allocation1 + $0x2] ss:$9 sm:$0xff] %v4164_v39  ;;  %v4657_v26 = vpop.f32.mrf.mxu1 }
 0x245   : > { %1465 = vst [vmem:[#allocation1 + $0x3] ss:$9 sm:$0xff] %v4167_v42  ;;  %v5727_v42 = vld [vmem:[#allocation6_spill] sm:$0xff] }
 0x246   : > { %1466 = vst [vmem:[#allocation1 + $0x4] ss:$9 sm:$0xff] %v4158_v36 }
 0x247   : > { %1467 = vst [vmem:[#allocation1 + $0x5] ss:$9 sm:$0xff] %v4171_v43 }
 0x248   : > { %1468 = vst [vmem:[#allocation1 + $0x6] ss:$9 sm:$0xff] %v4175_v24  ;;  %v5728_v24 = vld [vmem:[#allocation7_spill] sm:$0xff] }
 0x249   : > { %1469 = vst [vmem:[#allocation1 + $0x7] ss:$9 sm:$0xff] %v4179_v44  ;;  %v5729_v44 = vld [vmem:[#allocation8_spill] sm:$0xff] }
 0x24c   : > { %v4667_v36 = vpop.f32.mrf.mxu1 }
 0x250   : > { %v1470_v15 = vld [vmem:[#allocation1] sm:$0xff]  ;;  %3742 = vmatmul.msk.bf16.gmra.mxu2 %vm887_vm3, %v1461_v3 }
 0x251   : > { %1471 = vst [vmem:[#allocation1] ss:$9 sm:$0xff] %v4182_v52  ;;  %v5730_v52 = vld [vmem:[#allocation9_spill] sm:$0xff] }
 0x252   : > { %1472 = vst [vmem:[#allocation1 + $0x1] ss:$9 sm:$0xff] %v4196_v5  ;;  %v5732_v5 = vld [vmem:[#allocation12_spill] sm:$0xff]  ;;  %v5750_v3 = vld [vmem:[#allocation29_spill] sm:$0xff] }
 0x253   : > { %1473 = vst [vmem:[#allocation1 + $0x2] ss:$9 sm:$0xff] %v4199_v6  ;;  %3725 = vmatmul.msk.bf16.gmra.mxu1 %vm887_vm3, %v4511_v41  ;;  %v5733_v6 = vld [vmem:[#allocation13_spill] sm:$0xff]  ;;  %v5743_v41 = vld [vmem:[#allocation22_spill] sm:$0xff] }
 0x254   : > { %1474 = vst [vmem:[#allocation1 + $0x3] ss:$9 sm:$0xff] %v4193_v4  ;;  %v4673_v43 = vpop.f32.mrf.mxu1  ;;  %v5731_v4 = vld [vmem:[#allocation10_spill] sm:$0xff] }
 0x255   : > { %1475 = vst [vmem:[#allocation1 + $0x4] ss:$9 sm:$0xff] %v4202_v18 }
 0x256   : > { %1476 = vst [vmem:[#allocation1 + $0x5] ss:$9 sm:$0xff] %v4206_v20  ;;  %v5734_v20 = vld [vmem:[#allocation11_spill] sm:$0xff] }
 0x257   : > { %1477 = vst [vmem:[#allocation1 + $0x6] ss:$9 sm:$0xff] %v4210_v33 }
 0x258   : > { %1478 = vst [vmem:[#allocation1 + $0x7] ss:$9 sm:$0xff] %v4213_v22  ;;  %v5735_v22 = vld [vmem:[#allocation14_spill] sm:$0xff] }
 0x25f   : > { %v1479_v25 = vld [vmem:[#allocation1] sm:$0xff] }
 0x260   : > { %1480 = vst [vmem:[#allocation1] ss:$9 sm:$0xff] %v4217_v27  ;;  %3743 = vmatmul.msk.bf16.gmra.mxu2 %vm887_vm3, %v1470_v15  ;;  %v5736_v27 = vld [vmem:[#allocation15_spill] sm:$0xff] }
 0x261   : > { %1481 = vst [vmem:[#allocation1 + $0x1] ss:$9 sm:$0xff] %v4253_v34  ;;  %v5739_v34 = vld [vmem:[#allocation20_spill] sm:$0xff] }
 0x262   : > { %1482 = vst [vmem:[#allocation1 + $0x2] ss:$9 sm:$0xff] %v4228_v40 }
 0x263   : > { %1483 = vst [vmem:[#allocation1 + $0x3] ss:$9 sm:$0xff] %v5722_v28  ;;  %3726 = vmatmul.msk.bf16.gmra.mxu1 %vm887_vm3, %v5726_v38  ;;  %v927_v28 = vpop.f32.mrf.mxu0  ;;  %v5758_v38 = vld [vmem:[#allocation31_spill] sm:$0xff] }
 0x264   : > { %1484 = vst [vmem:[#allocation1 + $0x4] ss:$9 sm:$0xff] %v4234_v57  ;;  %v5737_v57 = vld [vmem:[#allocation16_spill] sm:$0xff] }
 0x265   : > { %1485 = vst [vmem:[#allocation1 + $0x5] ss:$9 sm:$0xff] %v5723_v29 }
 0x266   : > { %1486 = vst [vmem:[#allocation1 + $0x6] ss:$9 sm:$0xff] %v5724_v30 }
 0x267   : > { %1487 = vst [vmem:[#allocation1 + $0x7] ss:$9 sm:$0xff] %v5725_v31 }
 0x26e   : > { %v1488_v39 = vld [vmem:[#allocation1] sm:$0xff] }
 0x26f   : > { %1489 = vst [vmem:[#allocation1] ss:$9 sm:$0xff] %v5727_v42 }
 0x270   : > { %1490 = vst [vmem:[#allocation1 + $0x1] ss:$9 sm:$0xff] %v5728_v24  ;;  %v4682_v18 = vpop.f32.mrf.mxu1  ;;  %3744 = vmatmul.msk.bf16.gmra.mxu2 %vm887_vm3, %v1479_v25  ;;  %v5753_v25 = vld [vmem:[#allocation35_spill] sm:$0xff] }
 0x271   : > { %1491 = vst [vmem:[#allocation1 + $0x2] ss:$9 sm:$0xff] %v5729_v44 }
 0x272   : > { %1492 = vst [vmem:[#allocation1 + $0x3] ss:$9 sm:$0xff] %v5730_v52 }
 0x273   : > { %1493 = vst [vmem:[#allocation1 + $0x4] ss:$9 sm:$0xff] %v5731_v4  ;;  %3727 = vmatmul.msk.bf16.gmra.mxu1 %vm887_vm3, %v5734_v20 }
 0x274   : > { %1494 = vst [vmem:[#allocation1 + $0x5] ss:$9 sm:$0xff] %v5691_v54  ;;  %v5738_v54 = vld [vmem:[#allocation17_spill] sm:$0xff] }
 0x275   : > { %1495 = vst [vmem:[#allocation1 + $0x6] ss:$9 sm:$0xff] %v5732_v5 }
 0x276   : > { %1496 = vst [vmem:[#allocation1 + $0x7] ss:$9 sm:$0xff] %v5733_v6 }
 0x278   : > { %v4689_v40 = vpop.f32.mrf.mxu1 }
 0x27d   : > { %v1497_v33 = vld [vmem:[#allocation1] sm:$0xff] }
 0x27e   : > { %1498 = vst [vmem:[#allocation1] ss:$9 sm:$0xff] %v5735_v22 }
 0x27f   : > { %1499 = vst [vmem:[#allocation1 + $0x1] ss:$9 sm:$0xff] %v5736_v27  ;;  %v1166_v27 = vadd.f32 %v4682_v18, %v927_v28 }
 0x280   : > { %1500 = vst [vmem:[#allocation1 + $0x2] ss:$9 sm:$0xff] %v5737_v57  ;;  %v4697_v21 = vpop.f32.mrf.mxu1  ;;  %3745 = vmatmul.msk.bf16.gmra.mxu2 %vm887_vm3, %v1488_v39 }
 0x281   : > { %1501 = vst [vmem:[#allocation1 + $0x3] ss:$9 sm:$0xff] %v5738_v54  ;;  %v4777_v54 = vld [vmem:[%s5545_s2] ss:$0 sm:$0xff] }
 0x282   : > { %1502 = vst [vmem:[#allocation1 + $0x4] ss:$9 sm:$0xff] %v5698_v55  ;;  %v4784_v18 = vrot.slane %v4777_v54, 4 }
 0x283   : > { %1503 = vst [vmem:[#allocation1 + $0x5] ss:$9 sm:$0xff] %v5739_v34  ;;  %3728 = vmatmul.msk.bf16.gmra.mxu1 %vm887_vm3, %v5742_v37  ;;  %v1254_v34 = vrot.slane %v1166_v27, 2 }
 0x284   : > { %1504 = vst [vmem:[#allocation1 + $0x6] ss:$9 sm:$0xff] %v5740_v50  ;;  %v1255_v50 = vrot.slane %v1166_v27, 4 }
 0x285   : > { %1505 = vst [vmem:[#allocation1 + $0x7] ss:$9 sm:$0xff] %v5741_v46  ;;  %v1256_v46 = vrot.slane %v1166_v27, 6 }
 0x288   : > { %v4705_v55 = vpop.f32.mrf.mxu1 }
 0x28c   : > { %v1506_v48 = vld [vmem:[#allocation1] sm:$0xff] }
 0x28d   : > { %1507 = vst [vmem:[#allocation1] ss:$9 sm:$0xff] %v5743_v41  ;;  %v4787_v41 = vrot.slane %v4777_v54, 6 }
 0x28e   : > { %1508 = vst [vmem:[#allocation1 + $0x1] ss:$9 sm:$0xff] %v5744_v45 }
 0x28f   : > { %1509 = vst [vmem:[#allocation1 + $0x2] ss:$9 sm:$0xff] %v5745_v53 }
 0x290   : > { %1510 = vst [vmem:[#allocation1 + $0x3] ss:$9 sm:$0xff] %v5746_v56  ;;  %v4712_v7 = vpop.f32.mrf.mxu1  ;;  %3746 = vmatmul.msk.bf16.gmra.mxu2 %vm887_vm3, %v1497_v33 }
 0x291   : > { %1511 = vst [vmem:[#allocation1 + $0x4] ss:$9 sm:$0xff] %v5747_v59 }
 0x292   : > { %1512 = vst [vmem:[#allocation1 + $0x5] ss:$9 sm:$0xff] %v5748_v61 }
 0x293   : > { %1513 = vst [vmem:[#allocation1 + $0x6] ss:$9 sm:$0xff] %v5749_v62  ;;  %3729 = vmatmul.msk.bf16.gmra.mxu1 %vm887_vm3, %v4560_v47 }
 0x294   : > { %1514 = vst [vmem:[#allocation1 + $0x7] ss:$9 sm:$0xff] %v5750_v3 }
 0x298   : > { %v4721_v15 = vpop.f32.mrf.mxu1 }
 0x29b   : > { %v1515_v9 = vld [vmem:[#allocation1] sm:$0xff] }
 0x29c   : > { %1516 = vst [vmem:[#allocation1] ss:$9 sm:$0xff] %v5751_v11 }
 0x29d   : > { %1517 = vst [vmem:[#allocation1 + $0x1] ss:$9 sm:$0xff] %v5710_v8 }
 0x29e   : > { %1518 = vst [vmem:[#allocation1 + $0x2] ss:$9 sm:$0xff] %v5711_v51  ;;  %v5754_v51 = vld [vmem:[#allocation39_spill] sm:$0xff] }
 0x29f   : > { %1519 = vst [vmem:[#allocation1 + $0x3] ss:$9 sm:$0xff] %v5752_v12  ;;  %v5755_v8 = vrot.slane %v5754_v51, 1  ;;  %v5759_v39 = vrot.slane %v5754_v51, 4  ;;  %v5760_v24 = vrot.slane %v5754_v51, 5  ;;  %v5761_v52 = vrot.slane %v5754_v51, 6 }
 0x2a0   : > { %1520 = vst [vmem:[#allocation1 + $0x4] ss:$9 sm:$0xff] %v5753_v25  ;;  %v4727_v47 = vpop.f32.mrf.mxu1  ;;  %3747 = vmatmul.msk.bf16.gmra.mxu2 %vm887_vm3, %v1506_v48  ;;  %v4781_v48 = vrot.slane %v4777_v54, 2 }
 0x2a1   : > { %1521 = vst [vmem:[#allocation1 + $0x5] ss:$9 sm:$0xff] %v5714_v32  ;;  %v5756_v32 = vrot.slane %v5754_v51, 2 }
 0x2a2   : > { %1522 = vst [vmem:[#allocation1 + $0x6] ss:$9 sm:$0xff] %v5715_v1 }
 0x2a3   : > { %1523 = vst [vmem:[#allocation1 + $0x7] ss:$9 sm:$0xff] %v5716_v10  ;;  %3730 = vmatmul.msk.bf16.gmra.mxu1 %vm887_vm3, %v4572_v16  ;;  %v1413_v10 = vpop.permute.xlu0 %1412  ;;  %v5757_v16 = vrot.slane %v5754_v51, 3 }
 0x2a8   : > { %v4739_v1 = vpop.f32.mrf.mxu1 }
 0x2aa   : > { %v4729_v29 = vld [vmem:[#allocation1] sm:$0xff] }
 0x2ab   : > { %1525 = vst [vmem:[#allocation1] ss:$9 sm:$0xff] %v5717_v35  ;;  %v929_v35 = vpop.f32.mrf.mxu0 }
 0x2ac   : > { %1526 = vst [vmem:[#allocation1 + $0x1] ss:$9 sm:$0xff] %v5718_v0  ;;  %v1418_v0 = vsel %vm503_vm1, %v4588_v60, %v1413_v10  ;;  %v1168_v25 = vadd.f32 %v4689_v40, %v929_v35 }
 0x2ad   : > { %1527 = vst [vmem:[#allocation1 + $0x2] ss:$9 sm:$0xff] %v5719_v49  ;;  %v1416_v49 = vpop.permute.xlu1 %1415 }
 0x2ae   : > { %1528 = vst [vmem:[#allocation1 + $0x3] ss:$9 sm:$0xff] %v5720_v58  ;;  %v1420_v58 = vsel %vm532_vm2, %v1418_v0, %v1416_v49 }
 0x2af   : > { %1529 = vst [vmem:[#allocation1 + $0x4] ss:$9 sm:$0xff] %v5754_v51  ;;  %v1422_v31 = vrot.slane %v1420_v58, 1  ;;  %v1423_v42 = vrot.slane %v1420_v58, 2  ;;  %v1424_v44 = vrot.slane %v1420_v58, 3  ;;  %v1425_v4 = vrot.slane %v1420_v58, 4 }
 0x2b0   : > { %1530 = vst [vmem:[#allocation1 + $0x5] ss:$9 sm:$0xff] %v5755_v8  ;;  %v4750_v19 = vpop.f32.mrf.mxu1  ;;  %v1426_v6 = vrot.slane %v1420_v58, 5  ;;  %v1427_v33 = vrot.slane %v1420_v58, 6  ;;  %3748 = vmatmul.msk.bf16.gmra.mxu2 %vm887_vm3, %v1515_v9 }
 0x2b1   : > { %1531 = vst [vmem:[#allocation1 + $0x6] ss:$9 sm:$0xff] %v5756_v32 }
 0x2b2   : > { %1532 = vst [vmem:[#allocation1 + $0x7] ss:$9 sm:$0xff] %v5757_v16 }
 0x2b3   : > { %3731 = vmatmul.msk.bf16.gmra.mxu1 %vm887_vm3, %v5758_v38  ;;  %v4761_v60 = vpop.f32.mrf.mxu0  ;;  %v1595_v37 = vpop.f32.mrf.mxu2  ;;  %v1259_v38 = vrot.slane %v1168_v25, 6 }
 0x2b4   : > { %v1684_v45 = vrot.slane %v1595_v37, 2  ;;  %v1685_v53 = vrot.slane %v1595_v37, 4  ;;  %v1686_v56 = vrot.slane %v1595_v37, 6  ;;  %v1830_v59 = vadd.f32 %v1595_v37, %v1166_v27 }
 0x2b5   : > { %v1171_v27 = vadd.f32 %v4697_v21, %v4761_v60 }
 0x2b6   : > { %v1831_v3 = vadd.f32 %v1684_v45, %v1254_v34  ;;  %v1832_v9 = vadd.f32 %v1685_v53, %v1255_v50  ;;  %v1833_v11 = vadd.f32 %v1686_v56, %v1256_v46  ;;  %v1937_v12 = vadd.f32 %v4777_v54, %v1830_v59 }
 0x2b8   : > { %v4765_v5 = vpop.f32.mrf.mxu1  ;;  %v1938_v28 = vadd.f32 %v4781_v48, %v1831_v3  ;;  %v1939_v51 = vadd.f32 %v4784_v18, %v1832_v9  ;;  %v1940_v8 = vadd.f32 %v4787_v41, %v1833_v11  ;;  %v2035_v32 = vmax.f32 %v1937_v12, 0.0 }
 0x2b9   : > { %v4752_v30 = vld [vmem:[#allocation1] sm:$0xff]  ;;  %v1260_v3 = vrot.slane %v1171_v27, 2  ;;  %v1261_v9 = vrot.slane %v1171_v27, 4  ;;  %v1262_v11 = vrot.slane %v1171_v27, 6 }
 0x2ba   : > { %1534 = vst [vmem:[#allocation1] ss:$9 sm:$0xff] %v5759_v39  ;;  %v2036_v16 = vmax.f32 %v1938_v28, 0.0  ;;  %v2037_v0 = vmax.f32 %v1939_v51, 0.0  ;;  %v2038_v49 = vmax.f32 %v1940_v8, 0.0 }
 0x2bb   : > { %1535 = vst [vmem:[#allocation1 + $0x1] ss:$9 sm:$0xff] %v5760_v24  ;;  %v4767_v20 = vpop.f32.mrf.mxu0  ;;  %v1597_v39 = vpop.f32.mrf.mxu2 }
 0x2bc   : > { %1536 = vst [vmem:[#allocation1 + $0x2] ss:$9 sm:$0xff] %v5761_v52  ;;  %v1688_v24 = vrot.slane %v1597_v39, 4  ;;  %v1689_v40 = vrot.slane %v1597_v39, 6  ;;  %v1834_v35 = vadd.f32 %v1597_v39, %v1168_v25 }
 0x2bd   : > { %1537 = vst [vmem:[#allocation1 + $0x3] ss:$9 sm:$0xff] %v1420_v58  ;;  %v1257_v58 = vrot.slane %v1168_v25, 2 }
 0x2be   : > { %1539 = vst [vmem:[#allocation1 + $0x4] ss:$9 sm:$0xff] %v1422_v31  ;;  %v1258_v31 = vrot.slane %v1168_v25, 4 }
 0x2bf   : > { %1541 = vst [vmem:[#allocation1 + $0x5] ss:$9 sm:$0xff] %v1423_v42  ;;  %v1687_v42 = vrot.slane %v1597_v39, 2 }
 0x2c0   : > { %1543 = vst [vmem:[#allocation1 + $0x6] ss:$9 sm:$0xff] %v1424_v44  ;;  %v4769_v22 = vpop.f32.mrf.mxu1  ;;  %3749 = vmatmul.msk.bf16.gmra.mxu2 %vm887_vm3, %v4729_v29 }
 0x2c1   : > { %1545 = vst [vmem:[#allocation1 + $0x7] ss:$9 sm:$0xff] %v1425_v4  ;;  %v1835_v52 = vadd.f32 %v1687_v42, %v1257_v58  ;;  %v1836_v4 = vadd.f32 %v1688_v24, %v1258_v31 }
 0x2c3   : > { %v4791_v62 = vpop.f32.mrf.mxu0  ;;  %v1942_v50 = vadd.f32 %v4781_v48, %v1835_v52  ;;  %v1943_v46 = vadd.f32 %v4784_v18, %v1836_v4  ;;  %v1600_v21 = vpop.f32.mrf.mxu2 }
 0x2c4   : > { %v1690_v60 = vrot.slane %v1600_v21, 2  ;;  %v1691_v12 = vrot.slane %v1600_v21, 4  ;;  %v1692_v25 = vrot.slane %v1600_v21, 6  ;;  %v1838_v28 = vadd.f32 %v1600_v21, %v1171_v27 }
 0x2c5   : > { %v2040_v53 = vmax.f32 %v1942_v50, 0.0  ;;  %v2041_v56 = vmax.f32 %v1943_v46, 0.0 }
 0x2c6   : > { %v1840_v29 = vadd.f32 %v1691_v12, %v1261_v9 }
 0x2c8   : > { %v4772_v57 = vld [vmem:[#allocation1] sm:$0xff]  ;;  %v4789_v61 = vpop.f32.mrf.mxu1  ;;  %v1947_v31 = vadd.f32 %v4787_v41, %v1840_v29 }
 0x2c9   : > { %1548 = vst [vmem:[#allocation1] ss:$9 sm:$0xff] %v1426_v6  ;;  %v1837_v6 = vadd.f32 %v1689_v40, %v1259_v38 }
 0x2ca   : > { %1550 = vst [vmem:[#allocation1 + $0x1] ss:$9 sm:$0xff] %v1427_v33  ;;  %v1941_v33 = vadd.f32 %v4777_v54, %v1834_v35 }
 0x2cb   : > { %v4805_v34 = vpop.f32.mrf.mxu0  ;;  %v1944_v37 = vadd.f32 %v4777_v54, %v1837_v6  ;;  %2241 = vst [vmem:[#allocation1 + $0x21] ss:$4 sm:$0xff] %v2040_v53  ;;  %v2045_v6 = vmax.f32 %v1947_v31, 0.0 }
 0x2cc   : > { %v2039_v45 = vmax.f32 %v1941_v33, 0.0  ;;  %2243 = vst [vmem:[#allocation1 + $0x22] ss:$4 sm:$0xff] %v2041_v56  ;;  %v1602_v33 = vpop.f32.mrf.mxu2 }
 0x2cd   : > { %v2042_v59 = vmax.f32 %v1944_v37, 0.0  ;;  %v1695_v50 = vrot.slane %v1602_v33, 6  ;;  %v1176_v37 = vadd.f32 %v4712_v7, %v4791_v62 }
 0x2ce   : > { %2239 = vst [vmem:[#allocation1 + $0x20] ss:$4 sm:$0xff] %v2039_v45 }
 0x2cf   : > { %v1266_v7 = vrot.slane %v1176_v37, 2  ;;  %v1267_v12 = vrot.slane %v1176_v37, 4 }
 0x2d0   : > { %v4800_v44 = vpop.f32.mrf.mxu1  ;;  %3750 = vmatmul.msk.bf16.gmra.mxu2 %vm887_vm3, %v4752_v30 }
 0x2d1   : > { %v4798_v10 = vld [vmem:[#allocation1] sm:$0xff] }
 0x2d2   : > { %2231 = vst [vmem:[#allocation1] ss:$4 sm:$0xff] %v2035_v32  ;;  %v1839_v32 = vadd.f32 %v1690_v60, %v1260_v3 }
 0x2d3   : > { %2233 = vst [vmem:[#allocation1 + $0x1] ss:$4 sm:$0xff] %v2036_v16  ;;  %v1841_v16 = vadd.f32 %v1692_v25, %v1262_v11  ;;  %v4822_v42 = vpop.f32.mrf.mxu0  ;;  %v1268_v25 = vrot.slane %v1176_v37, 6 }
 0x2d4   : > { %2235 = vst [vmem:[#allocation1 + $0x2] ss:$4 sm:$0xff] %v2037_v0  ;;  %v1945_v0 = vadd.f32 %v4781_v48, %v1838_v28  ;;  %v1946_v58 = vadd.f32 %v4784_v18, %v1839_v32  ;;  %v1605_v29 = vpop.f32.mrf.mxu2 }
 0x2d5   : > { %2237 = vst [vmem:[#allocation1 + $0x3] ss:$4 sm:$0xff] %v2038_v49  ;;  %v1173_v49 = vadd.f32 %v4705_v55, %v4767_v20  ;;  %v1948_v38 = vadd.f32 %v4777_v54, %v1841_v16  ;;  %v4824_v27 = vld.sshfl [vmem:[#allocation1 + $0x20] sm:$0xff pattern:$0x73625140]  ;;  %v1693_v55 = vrot.slane %v1602_v33, 2  ;;  %v1846_v31 = vadd.f32 %v1605_v29, %v1176_v37 }
 0x2d6   : > { %v2043_v39 = vmax.f32 %v1945_v0, 0.0  ;;  %v2044_v24 = vmax.f32 %v1946_v58, 0.0  ;;  %v1694_v20 = vrot.slane %v1602_v33, 4  ;;  %v1696_v0 = vrot.slane %v1605_v29, 2 }
 0x2d7   : > { %v2046_v40 = vmax.f32 %v1948_v38, 0.0  ;;  %v1263_v35 = vrot.slane %v1173_v49, 2  ;;  %v1264_v52 = vrot.slane %v1173_v49, 4  ;;  %v1265_v4 = vrot.slane %v1173_v49, 6 }
 0x2d8   : > { %v4812_v51 = vpop.f32.mrf.mxu1  ;;  %v1842_v46 = vadd.f32 %v1602_v33, %v1173_v49  ;;  %v1697_v49 = vrot.slane %v1605_v29, 4  ;;  %v1698_v58 = vrot.slane %v1605_v29, 6  ;;  %v1847_v30 = vadd.f32 %v1696_v0, %v1266_v7 }
 0x2d9   : > { %2250 = vst [vmem:[#allocation1 + $0x20] ss:$4 sm:$0xff] %v2046_v40  ;;  %v1843_v53 = vadd.f32 %v1693_v55, %v1263_v35  ;;  %v1844_v56 = vadd.f32 %v1694_v20, %v1264_v52  ;;  %v1953_v35 = vadd.f32 %v4784_v18, %v1846_v31  ;;  %v1178_v52 = vadd.f32 %v4721_v15, %v4805_v34 }
 0x2da   : > { %v1949_v3 = vadd.f32 %v4781_v48, %v1842_v46  ;;  %v1849_v40 = vadd.f32 %v1698_v58, %v1268_v25 }
 0x2db   : > { %v1950_v9 = vadd.f32 %v4784_v18, %v1843_v53  ;;  %v1951_v11 = vadd.f32 %v4777_v54, %v1844_v56  ;;  %v4836_v16 = vpop.f32.mrf.mxu0  ;;  %v2051_v55 = vmax.f32 %v1953_v35, 0.0  ;;  %v1269_v37 = vrot.slane %v1178_v52, 2 }
 0x2dc   : > { %v4814_v8 = vld.sshfl [vmem:[#allocation1] sm:$0xff pattern:$0x73625140]  ;;  %v2047_v60 = vmax.f32 %v1949_v3, 0.0  ;;  %v1956_v33 = vadd.f32 %v4781_v48, %v1849_v40  ;;  %v1270_v53 = vrot.slane %v1178_v52, 4  ;;  %v1271_v56 = vrot.slane %v1178_v52, 6  ;;  %v1607_v3 = vpop.f32.mrf.mxu2 }
 0x2dd   : > { %2246 = vst [vmem:[#allocation1] ss:$4 sm:$0xff] %v2042_v59  ;;  %v1845_v59 = vadd.f32 %v1695_v50, %v1265_v4  ;;  %v2048_v62 = vmax.f32 %v1950_v9, 0.0  ;;  %v2049_v28 = vmax.f32 %v1951_v11, 0.0  ;;  %v1954_v4 = vadd.f32 %v4787_v41, %v1847_v30 }
 0x2de   : > { %2247 = vst [vmem:[#allocation1 + $0x1] ss:$4 sm:$0xff] %v2043_v39  ;;  %v2054_v46 = vmax.f32 %v1956_v33, 0.0  ;;  %v1699_v15 = vrot.slane %v1607_v3, 2  ;;  %v1700_v34 = vrot.slane %v1607_v3, 4  ;;  %v1701_v9 = vrot.slane %v1607_v3, 6 }
 0x2df   : > { %2248 = vst [vmem:[#allocation1 + $0x2] ss:$4 sm:$0xff] %v2044_v24  ;;  %v1952_v21 = vadd.f32 %v4781_v48, %v1845_v59  ;;  %v1848_v24 = vadd.f32 %v1697_v49, %v1267_v12  ;;  %v2052_v20 = vmax.f32 %v1954_v4, 0.0  ;;  %v1850_v11 = vadd.f32 %v1607_v3, %v1178_v52 }
 0x2e0   : > { %v4828_v45 = vpop.f32.mrf.mxu1  ;;  %2249 = vst [vmem:[#allocation1 + $0x3] ss:$4 sm:$0xff] %v2045_v6  ;;  %v1851_v7 = vadd.f32 %v1699_v15, %v1269_v37  ;;  %v1853_v12 = vadd.f32 %v1701_v9, %v1271_v56  ;;  %3751 = vmatmul.msk.bf16.gmra.mxu2 %vm887_vm3, %v4772_v57  ;;  %v1183_v37 = vadd.f32 %v4739_v1, %v4836_v16 }
 0x2e1   : > { %2251 = vst [vmem:[#allocation1 + $0x21] ss:$4 sm:$0xff] %v2047_v60  ;;  %v2050_v32 = vmax.f32 %v1952_v21, 0.0  ;;  %v1955_v6 = vadd.f32 %v4777_v54, %v1848_v24  ;;  %v1957_v25 = vadd.f32 %v4784_v18, %v1850_v11 }
 0x2e2   : > { %2252 = vst [vmem:[#allocation1 + $0x22] ss:$4 sm:$0xff] %v2048_v62  ;;  %v1852_v62 = vadd.f32 %v1700_v34, %v1270_v53  ;;  %v1960_v0 = vadd.f32 %v4784_v18, %v1853_v12 }
 0x2e3   : > { %v2053_v50 = vmax.f32 %v1955_v6, 0.0  ;;  %v947_v60 = vpop.f32.mrf.mxu0  ;;  %v2055_v49 = vmax.f32 %v1957_v25, 0.0 }
 0x2e4   : > { %v1959_v29 = vadd.f32 %v4781_v48, %v1852_v62  ;;  %v2058_v30 = vmax.f32 %v1960_v0, 0.0  ;;  %v1610_v4 = vpop.f32.mrf.mxu2 }
 0x2e5   : > { %v1704_v6 = vrot.slane %v1610_v4, 6 }
 0x2e6   : > { %v2057_v31 = vmax.f32 %v1959_v29, 0.0  ;;  %v1277_v29 = vrot.slane %v1183_v37, 6 }
 0x2e7   : > { %v4840_v39 = vld.sshfl [vmem:[#allocation1] sm:$0xff pattern:$0x73625140] }
 0x2e8   : > { %v4838_v38 = vpop.f32.mrf.mxu1  ;;  %2255 = vst [vmem:[#allocation1] ss:$4 sm:$0xff] %v2049_v28  ;;  %v1181_v28 = vadd.f32 %v4727_v47, %v4822_v42  ;;  %v1702_v47 = vrot.slane %v1610_v4, 2  ;;  %v1703_v42 = vrot.slane %v1610_v4, 4 }
 0x2e9   : > { %2256 = vst [vmem:[#allocation1 + $0x1] ss:$4 sm:$0xff] %v2050_v32  ;;  %v4848_v59 = vld.sshfl [vmem:[#allocation1 + $0x20] sm:$0xff pattern:$0x73625140]  ;;  %v1958_v32 = vadd.f32 %v4777_v54, %v1851_v7 }
 0x2ea   : > { %2257 = vst [vmem:[#allocation1 + $0x2] ss:$4 sm:$0xff] %v2051_v55  ;;  %v1272_v24 = vrot.slane %v1181_v28, 2  ;;  %v1273_v40 = vrot.slane %v1181_v28, 4  ;;  %v1274_v35 = vrot.slane %v1181_v28, 6  ;;  %v1854_v33 = vadd.f32 %v1610_v4, %v1181_v28 }
 0x2eb   : > { %2258 = vst [vmem:[#allocation1 + $0x3] ss:$4 sm:$0xff] %v2052_v20  ;;  %v2056_v58 = vmax.f32 %v1958_v32, 0.0  ;;  %v4865_v53 = vpop.f32.mrf.mxu0  ;;  %v1275_v28 = vrot.slane %v1183_v37, 2  ;;  %v1276_v32 = vrot.slane %v1183_v37, 4 }
 0x2ec   : > { %2259 = vst [vmem:[#allocation1 + $0x20] ss:$4 sm:$0xff] %v2053_v50  ;;  %v1855_v20 = vadd.f32 %v1702_v47, %v1272_v24  ;;  %v1856_v57 = vadd.f32 %v1703_v42, %v1273_v40  ;;  %v1857_v50 = vadd.f32 %v1704_v6, %v1274_v35  ;;  %v1612_v1 = vpop.f32.mrf.mxu2  ;;  %v2394_v35 = vpack.c.bf16 %v4848_v59, %v4848_v59 }
 0x2ed   : > { %2260 = vst [vmem:[#allocation1 + $0x21] ss:$4 sm:$0xff] %v2054_v46  ;;  %v1961_v46 = vadd.f32 %v4787_v41, %v1854_v33  ;;  %v1705_v16 = vrot.slane %v1612_v1, 2  ;;  %v1706_v0 = vrot.slane %v1612_v1, 4  ;;  %v2393_v33 = vpack.c.bf16 %v4840_v39, %v4840_v39 }
 0x2ee   : > { %2261 = vst [vmem:[#allocation1 + $0x22] ss:$4 sm:$0xff] %v2055_v49  ;;  %v1962_v56 = vadd.f32 %v4777_v54, %v1855_v20  ;;  %v1963_v3 = vadd.f32 %v4781_v48, %v1856_v57  ;;  %v1964_v15 = vadd.f32 %v4784_v18, %v1857_v50  ;;  %v1707_v49 = vrot.slane %v1612_v1, 6 }
 0x2ef   : > { %v2059_v34 = vmax.f32 %v1961_v46, 0.0  ;;  %v1860_v4 = vadd.f32 %v1706_v0, %v1276_v32 }
 0x2f0   : > { %v4850_v21 = vpop.f32.mrf.mxu1  ;;  %v2060_v7 = vmax.f32 %v1962_v56, 0.0  ;;  %v2061_v62 = vmax.f32 %v1963_v3, 0.0  ;;  %v2062_v12 = vmax.f32 %v1964_v15, 0.0  ;;  %v1861_v47 = vadd.f32 %v1707_v49, %v1277_v29  ;;  %3752 = vmatmul.msk.bf16.gmra.mxu2 %vm887_vm3, %v4798_v10 }
 0x2f2   : > { %v2262_v52 = vld.sshfl [vmem:[#allocation1] sm:$0xff pattern:$0x73625140]  ;;  %v1968_v20 = vadd.f32 %v4787_v41, %v1861_v47 }
 0x2f3   : > { %2264 = vst [vmem:[#allocation1] ss:$4 sm:$0xff] %v2056_v58  ;;  %v2395_v11 = vpack.c.bf16 %v2262_v52, %v2262_v52  ;;  %v1858_v58 = vadd.f32 %v1612_v1, %v1183_v37  ;;  %v1859_v52 = vadd.f32 %v1705_v16, %v1275_v28  ;;  %v2456_v37 = vunpack.c.l.b16 %v2394_v35  ;;  %v4885_v56 = vpop.f32.mrf.mxu0 }
 0x2f4   : > { %2265 = vst [vmem:[#allocation1 + $0x1] ss:$4 sm:$0xff] %v2057_v31  ;;  %v1186_v31 = vadd.f32 %v4750_v19, %v947_v60  ;;  %v1967_v60 = vadd.f32 %v4784_v18, %v1860_v4 }
 0x2f5   : > { %2266 = vst [vmem:[#allocation1 + $0x2] ss:$4 sm:$0xff] %v2058_v30  ;;  %v2263_v9 = vld.sshfl [vmem:[#allocation1 + $0x20] sm:$0xff pattern:$0x73625140]  ;;  %v2457_v24 = vunpack.c.l.b16 %v2395_v11  ;;  %v1965_v42 = vadd.f32 %v4777_v54, %v1858_v58  ;;  %v1966_v19 = vadd.f32 %v4781_v48, %v1859_v52  ;;  %v1615_v11 = vpop.f32.mrf.mxu2  ;;  %v1188_v52 = vadd.f32 %v4765_v5, %v4865_v53 }
 0x2f6   : > { %2267 = vst [vmem:[#allocation1 + $0x3] ss:$4 sm:$0xff] %v2059_v34  ;;  %v2396_v25 = vpack.c.bf16 %v2263_v9, %v2263_v9  ;;  %v1278_v59 = vrot.slane %v1186_v31, 2  ;;  %v1279_v50 = vrot.slane %v1186_v31, 4  ;;  %v2065_v15 = vmax.f32 %v1967_v60, 0.0 }
 0x2f7   : > { %2268 = vst [vmem:[#allocation1 + $0x20] ss:$4 sm:$0xff] %v2060_v7  ;;  %v2063_v57 = vmax.f32 %v1965_v42, 0.0  ;;  %v2064_v3 = vmax.f32 %v1966_v19, 0.0  ;;  %v2066_v34 = vmax.f32 %v1968_v20, 0.0  ;;  %v1280_v9 = vrot.slane %v1186_v31, 6 }
 0x2f8   : > { %v4860_v55 = vpop.f32.mrf.mxu1  ;;  %2269 = vst [vmem:[#allocation1 + $0x21] ss:$4 sm:$0xff] %v2061_v62  ;;  %v2458_v40 = vunpack.c.l.b16 %v2396_v25  ;;  %v1708_v10 = vrot.slane %v1615_v11, 2  ;;  %v1709_v25 = vrot.slane %v1615_v11, 4  ;;  %v1710_v28 = vrot.slane %v1615_v11, 6 }
 0x2f9   : > { %2270 = vst [vmem:[#allocation1 + $0x22] ss:$4 sm:$0xff] %v2062_v12  ;;  %v2455_v12 = vunpack.c.l.b16 %v2393_v33  ;;  %v1862_v32 = vadd.f32 %v1615_v11, %v1186_v31  ;;  %v1281_v5 = vrot.slane %v1188_v52, 2  ;;  %v1282_v53 = vrot.slane %v1188_v52, 4 }
 0x2fa   : > { %v4876_v6 = vpack.c.b16 %v2458_v40, %v2457_v24  ;;  %v1863_v58 = vadd.f32 %v1708_v10, %v1278_v59  ;;  %v1864_v24 = vadd.f32 %v1709_v25, %v1279_v50  ;;  %v1865_v40 = vadd.f32 %v1710_v28, %v1280_v9 }
 0x2fb   : > { %v4893_v0 = vpack.c.b16 %v2456_v37, %v2455_v12  ;;  %v1969_v35 = vadd.f32 %v4777_v54, %v1862_v32  ;;  %v1283_v37 = vrot.slane %v1188_v52, 6 }
 0x2fc   : > { %v2599_v39 = vrot.slane %v4876_v6, 1  ;;  %v2504_v7 = vshrl.u32 %v4876_v6, 16  ;;  %v2506_v62 = vshll.u32 %v4876_v6, 16  ;;  %v1970_v31 = vadd.f32 %v4781_v48, %v1863_v58 }
 0x2fd   : > { %v2271_v46 = vld.sshfl [vmem:[#allocation1] sm:$0xff pattern:$0x73625140]  ;;  %v1971_v42 = vadd.f32 %v4784_v18, %v1864_v24  ;;  %v1972_v33 = vadd.f32 %v4777_v54, %v1865_v40  ;;  %v2067_v19 = vmax.f32 %v1969_v35, 0.0 }
 0x2fe   : > { %2273 = vst [vmem:[#allocation1] ss:$4 sm:$0xff] %v2063_v57  ;;  %2613 = vrot.lane.b32.xlu1 %v2599_v39, %s3846_s15  ;;  %v2508_v16 = vrot.slane %v2506_v62, 1  ;;  %v2397_v49 = vpack.c.bf16 %v2271_v46, %v2271_v46  ;;  %v2068_v57 = vmax.f32 %v1970_v31, 0.0  ;;  %v2598_v46 = vrot.slane %v4893_v0, 1 }
 0x2ff   : > { %2274 = vst [vmem:[#allocation1 + $0x1] ss:$4 sm:$0xff] %v2064_v3  ;;  %v2069_v59 = vmax.f32 %v1971_v42, 0.0  ;;  %v2070_v50 = vmax.f32 %v1972_v33, 0.0  ;;  %v1617_v3 = vpop.f32.mrf.mxu2 }
 0x300   : > { %v4871_v30 = vpop.f32.mrf.mxu1  ;;  %v2272_v29 = vld.sshfl [vmem:[#allocation1 + $0x20] sm:$0xff pattern:$0x73625140]  ;;  %2275 = vst [vmem:[#allocation1 + $0x2] ss:$4 sm:$0xff] %v2065_v15  ;;  %v2509_v4 = vor.u32 %v2508_v16, %v2504_v7  ;;  %v2459_v60 = vunpack.c.l.b16 %v2397_v49  ;;  %v1711_v39 = vrot.slane %v1617_v3, 2  ;;  %v1866_v7 = vadd.f32 %v1617_v3, %v1188_v52 }
 0x301   : > { %2276 = vst [vmem:[#allocation1 + $0x3] ss:$4 sm:$0xff] %v2066_v34  ;;  %v2398_v47 = vpack.c.bf16 %v2272_v29, %v2272_v29  ;;  %v954_v34 = vpop.f32.mrf.mxu0  ;;  %v1712_v9 = vrot.slane %v1617_v3, 4  ;;  %v1713_v11 = vrot.slane %v1617_v3, 6  ;;  %v1191_v29 = vadd.f32 %v4769_v22, %v4885_v56 }
 0x302   : > { %2577 = vrot.lane.b32.xlu2 %v2509_v4, %s3845_s25  ;;  %2277 = vst [vmem:[#allocation1 + $0x20] ss:$4 sm:$0xff] %v2067_v19  ;;  %v1867_v10 = vadd.f32 %v1711_v39, %v1281_v5  ;;  %v1973_v32 = vadd.f32 %v4781_v48, %v1866_v7  ;;  %v2499_v22 = vshll.u32 %v4893_v0, 16 }
 0x303   : > { %v2460_v20 = vunpack.c.l.b16 %v2398_v47  ;;  %2278 = vst [vmem:[#allocation1 + $0x21] ss:$4 sm:$0xff] %v2068_v57  ;;  %v1868_v25 = vadd.f32 %v1712_v9, %v1282_v53  ;;  %v1869_v28 = vadd.f32 %v1713_v11, %v1283_v37  ;;  %v1284_v56 = vrot.slane %v1191_v29, 2 }
 0x304   : > { %2279 = vst [vmem:[#allocation1 + $0x22] ss:$4 sm:$0xff] %v2069_v59  ;;  %v1974_v58 = vadd.f32 %v4784_v18, %v1867_v10  ;;  %v2071_v35 = vmax.f32 %v1973_v32, 0.0  ;;  %v1285_v33 = vrot.slane %v1191_v29, 4  ;;  %v1193_v9 = vadd.f32 %v4789_v61, %v954_v34 }
 0x305   : > { %v4903_v15 = vpack.c.b16 %v2460_v20, %v2459_v60  ;;  %v1975_v24 = vadd.f32 %v4787_v41, %v1868_v25  ;;  %v1976_v40 = vadd.f32 %v4777_v54, %v1869_v28 }
 0x306   : > { %2611 = vrot.lane.b32.xlu1 %v2598_v46, %s3846_s15  ;;  %v2072_v47 = vmax.f32 %v1974_v58, 0.0  ;;  %v1286_v46 = vrot.slane %v1191_v29, 6  ;;  %v1287_v61 = vrot.slane %v1193_v9, 2 }
 0x307   : > { %v2600_v16 = vrot.slane %v4903_v15, 1  ;;  %v2513_v49 = vshll.u32 %v4903_v15, 16  ;;  %v2511_v52 = vshrl.u32 %v4903_v15, 16  ;;  %v2073_v31 = vmax.f32 %v1975_v24, 0.0  ;;  %v1620_v60 = vpop.f32.mrf.mxu2 }
 0x308   : > { %v4891_v1 = vpop.f32.mrf.mxu1  ;;  %v2280_v62 = vld.sshfl [vmem:[#allocation1] sm:$0xff pattern:$0x73625140]  ;;  %v2074_v42 = vmax.f32 %v1976_v40, 0.0  ;;  %v1714_v59 = vrot.slane %v1620_v60, 2  ;;  %v1715_v5 = vrot.slane %v1620_v60, 4 }
 0x309   : > { %2282 = vst [vmem:[#allocation1] ss:$4 sm:$0xff] %v2070_v50  ;;  %v2515_v4 = vrot.slane %v2513_v49, 1  ;;  %v2399_v20 = vpack.c.bf16 %v2280_v62, %v2280_v62  ;;  %v1870_v50 = vadd.f32 %v1620_v60, %v1191_v29  ;;  %v1716_v53 = vrot.slane %v1620_v60, 6  ;;  %v957_v39 = vpop.f32.mrf.mxu0 }
 0x30a   : > { %2615 = vrot.lane.b32.xlu2 %v2600_v16, %s3846_s15  ;;  %2283 = vst [vmem:[#allocation1 + $0x1] ss:$4 sm:$0xff] %v2071_v35  ;;  %v1871_v11 = vadd.f32 %v1714_v59, %v1284_v56  ;;  %v2501_v62 = vrot.slane %v2499_v22, 1  ;;  %v1872_v10 = vadd.f32 %v1715_v5, %v1285_v33  ;;  %v2497_v24 = vshrl.u32 %v4893_v0, 16 }
 0x30b   : > { %v2516_v19 = vor.u32 %v2515_v4, %v2511_v52  ;;  %v2281_v57 = vld.sshfl [vmem:[#allocation1 + $0x20] sm:$0xff pattern:$0x73625140]  ;;  %2284 = vst [vmem:[#allocation1 + $0x2] ss:$4 sm:$0xff] %v2072_v47  ;;  %v1977_v7 = vadd.f32 %v4781_v48, %v1870_v50  ;;  %v1873_v25 = vadd.f32 %v1716_v53, %v1286_v46  ;;  %v2461_v28 = vunpack.c.l.b16 %v2399_v20 }
 0x30c   : > { %2285 = vst [vmem:[#allocation1 + $0x3] ss:$4 sm:$0xff] %v2073_v31  ;;  %v2400_v3 = vpack.c.bf16 %v2281_v57, %v2281_v57  ;;  %v1978_v29 = vadd.f32 %v4784_v18, %v1871_v11  ;;  %v1979_v49 = vadd.f32 %v4777_v54, %v1872_v10  ;;  %v1288_v35 = vrot.slane %v1193_v9, 4 }
 0x30d   : > { %2579 = vrot.lane.b32.xlu0 %v2516_v19, %s3845_s25  ;;  %2286 = vst [vmem:[#allocation1 + $0x20] ss:$4 sm:$0xff] %v2074_v42  ;;  %v2075_v16 = vmax.f32 %v1977_v7, 0.0  ;;  %v1980_v58 = vadd.f32 %v4781_v48, %v1873_v25  ;;  %v2502_v47 = vor.u32 %v2501_v62, %v2497_v24  ;;  %v1289_v33 = vrot.slane %v1193_v9, 6 }
 0x30e   : > { %v2462_v32 = vunpack.c.l.b16 %v2400_v3  ;;  %v2076_v34 = vmax.f32 %v1978_v29, 0.0  ;;  %v2077_v52 = vmax.f32 %v1979_v49, 0.0  ;;  %v1196_v59 = vadd.f32 %v4800_v44, %v957_v39 }
 0x30f   : > { %2287 = vst [vmem:[#allocation1 + $0x21] ss:$4 sm:$0xff] %v2075_v16  ;;  %v2078_v4 = vmax.f32 %v1980_v58, 0.0  ;;  %v1622_v31 = vpop.f32.mrf.mxu2 }
 0x310   : > { %v4906_v12 = vpop.f32.mrf.mxu1  ;;  %v4928_v40 = vpack.c.b16 %v2462_v32, %v2461_v28  ;;  %2288 = vst [vmem:[#allocation1 + $0x22] ss:$4 sm:$0xff] %v2076_v34  ;;  %v1717_v22 = vrot.slane %v1622_v31, 2  ;;  %v1874_v56 = vadd.f32 %v1622_v31, %v1193_v9  ;;  %v1718_v19 = vrot.slane %v1622_v31, 4 }
 0x311   : > { %v1719_v60 = vrot.slane %v1622_v31, 6  ;;  %v959_v11 = vpop.f32.mrf.mxu0  ;;  %v1290_v32 = vrot.slane %v1196_v59, 2  ;;  %v1291_v44 = vrot.slane %v1196_v59, 4  ;;  %v1292_v39 = vrot.slane %v1196_v59, 6 }
 0x312   : > { %v2520_v57 = vshll.u32 %v4928_v40, 16  ;;  %v1875_v50 = vadd.f32 %v1717_v22, %v1287_v61  ;;  %v1981_v46 = vadd.f32 %v4784_v18, %v1874_v56  ;;  %v1876_v5 = vadd.f32 %v1718_v19, %v1288_v35 }
 0x313   : > { %v2289_v42 = vld.sshfl [vmem:[#allocation1] sm:$0xff pattern:$0x73625140]  ;;  %v1877_v53 = vadd.f32 %v1719_v60, %v1289_v33  ;;  %v2518_v3 = vshrl.u32 %v4928_v40, 16  ;;  %v2601_v24 = vrot.slane %v4928_v40, 1  ;;  %v1198_v31 = vadd.f32 %v4812_v51, %v959_v11 }
 0x314   : > { %2291 = vst [vmem:[#allocation1] ss:$4 sm:$0xff] %v2077_v52  ;;  %v2522_v9 = vrot.slane %v2520_v57, 1  ;;  %v1982_v7 = vadd.f32 %v4787_v41, %v1875_v50  ;;  %v2079_v62 = vmax.f32 %v1981_v46, 0.0  ;;  %v1983_v10 = vadd.f32 %v4777_v54, %v1876_v5 }
 0x315   : > { %2575 = vrot.lane.b32.xlu0 %v2502_v47, %s3845_s25  ;;  %2292 = vst [vmem:[#allocation1 + $0x1] ss:$4 sm:$0xff] %v2078_v4  ;;  %v1984_v25 = vadd.f32 %v4781_v48, %v1877_v53  ;;  %v2401_v34 = vpack.c.bf16 %v2289_v42, %v2289_v42  ;;  %v1293_v53 = vrot.slane %v1198_v31, 2  ;;  %v1294_v11 = vrot.slane %v1198_v31, 4 }
 0x316   : > { %v2523_v28 = vor.u32 %v2522_v9, %v2518_v3  ;;  %v2080_v29 = vmax.f32 %v1982_v7, 0.0  ;;  %2293 = vst [vmem:[#allocation1 + $0x2] ss:$4 sm:$0xff] %v2079_v62  ;;  %v2081_v49 = vmax.f32 %v1983_v10, 0.0 }
 0x317   : > { %v2290_v16 = vld.sshfl [vmem:[#allocation1 + $0x20] sm:$0xff pattern:$0x73625140]  ;;  %v2082_v58 = vmax.f32 %v1984_v25, 0.0  ;;  %v1625_v61 = vpop.f32.mrf.mxu2  ;;  %v2463_v42 = vunpack.c.l.b16 %v2401_v34  ;;  %v1295_v25 = vrot.slane %v1198_v31, 6 }
 0x318   : > { %v4920_v37 = vpop.f32.mrf.mxu1  ;;  %2581 = vrot.lane.b32.xlu2 %v2523_v28, %s3845_s25  ;;  %2294 = vst [vmem:[#allocation1 + $0x3] ss:$4 sm:$0xff] %v2080_v29  ;;  %v1720_v35 = vrot.slane %v1625_v61, 2  ;;  %v1721_v52 = vrot.slane %v1625_v61, 4  ;;  %v1722_v4 = vrot.slane %v1625_v61, 6  ;;  %v1878_v47 = vadd.f32 %v1625_v61, %v1196_v59 }
 0x319   : > { %2295 = vst [vmem:[#allocation1 + $0x20] ss:$4 sm:$0xff] %v2081_v49  ;;  %v2402_v56 = vpack.c.bf16 %v2290_v16, %v2290_v16  ;;  %v962_v9 = vpop.f32.mrf.mxu0 }
 0x31a   : > { %2296 = vst [vmem:[#allocation1 + $0x21] ss:$4 sm:$0xff] %v2082_v58  ;;  %v1879_v33 = vadd.f32 %v1720_v35, %v1290_v32  ;;  %v1880_v19 = vadd.f32 %v1721_v52, %v1291_v44  ;;  %v1881_v60 = vadd.f32 %v1722_v4, %v1292_v39  ;;  %v1985_v57 = vadd.f32 %v4784_v18, %v1878_v47 }
 0x31b   : > { %v2464_v50 = vunpack.c.l.b16 %v2402_v56  ;;  %v1201_v56 = vadd.f32 %v4828_v45, %v962_v9 }
 0x31c   : > { %v1986_v46 = vadd.f32 %v4777_v54, %v1879_v33  ;;  %v1987_v59 = vadd.f32 %v4781_v48, %v1880_v19  ;;  %v1988_v51 = vadd.f32 %v4784_v18, %v1881_v60  ;;  %v2083_v5 = vmax.f32 %v1985_v57, 0.0 }
 0x31d   : > { %2617 = vrot.lane.b32.xlu0 %v2601_v24, %s3846_s15  ;;  %v4950_v3 = vpack.c.b16 %v2464_v50, %v2463_v42  ;;  %v1298_v45 = vrot.slane %v1201_v56, 6 }
 0x31e   : > { %v2084_v7 = vmax.f32 %v1986_v46, 0.0  ;;  %v2085_v62 = vmax.f32 %v1987_v59, 0.0  ;;  %v2086_v10 = vmax.f32 %v1988_v51, 0.0  ;;  %2297 = vst [vmem:[#allocation1 + $0x22] ss:$4 sm:$0xff] %v2083_v5 }
 0x31f   : > { %v2298_v28 = vld.sshfl [vmem:[#allocation1] sm:$0xff pattern:$0x73625140]  ;;  %v1627_v32 = vpop.f32.mrf.mxu2  ;;  %v2602_v44 = vrot.slane %v4950_v3, 1  ;;  %v2527_v39 = vshll.u32 %v4950_v3, 16  ;;  %v2525_v61 = vshrl.u32 %v4950_v3, 16 }
 0x320   : > { %v4931_v20 = vpop.f32.mrf.mxu1  ;;  %2300 = vst [vmem:[#allocation1] ss:$4 sm:$0xff] %v2084_v7  ;;  %v1723_v29 = vrot.slane %v1627_v32, 2  ;;  %v1724_v16 = vrot.slane %v1627_v32, 4  ;;  %v1725_v49 = vrot.slane %v1627_v32, 6  ;;  %v1882_v58 = vadd.f32 %v1627_v32, %v1198_v31 }
 0x321   : > { %2301 = vst [vmem:[#allocation1 + $0x1] ss:$4 sm:$0xff] %v2085_v62  ;;  %2619 = vrot.lane.b32.xlu2 %v2602_v44, %s3846_s15  ;;  %v2529_v34 = vrot.slane %v2527_v39, 1  ;;  %v2403_v50 = vpack.c.bf16 %v2298_v28, %v2298_v28  ;;  %v964_v7 = vpop.f32.mrf.mxu0 }
 0x322   : > { %2302 = vst [vmem:[#allocation1 + $0x2] ss:$4 sm:$0xff] %v2086_v10  ;;  %v1883_v35 = vadd.f32 %v1723_v29, %v1293_v53  ;;  %v1884_v52 = vadd.f32 %v1724_v16, %v1294_v11  ;;  %v1885_v4 = vadd.f32 %v1725_v49, %v1295_v25  ;;  %v1989_v47 = vadd.f32 %v4787_v41, %v1882_v58 }
 0x323   : > { %v2530_v33 = vor.u32 %v2529_v34, %v2525_v61  ;;  %v1296_v53 = vrot.slane %v1201_v56, 2  ;;  %v1297_v11 = vrot.slane %v1201_v56, 4  ;;  %v1203_v44 = vadd.f32 %v4838_v38, %v964_v7 }
 0x324   : > { %v1990_v19 = vadd.f32 %v4777_v54, %v1883_v35  ;;  %v1991_v31 = vadd.f32 %v4781_v48, %v1884_v52  ;;  %v1992_v60 = vadd.f32 %v4784_v18, %v1885_v4  ;;  %v2087_v57 = vmax.f32 %v1989_v47, 0.0 }
 0x325   : > { %v2299_v42 = vld.sshfl [vmem:[#allocation1 + $0x20] sm:$0xff pattern:$0x73625140]  ;;  %2583 = vrot.lane.b32.xlu1 %v2530_v33, %s3845_s25  ;;  %v2465_v28 = vunpack.c.l.b16 %v2403_v50  ;;  %v1301_v50 = vrot.slane %v1203_v44, 6 }
 0x326   : > { %v2088_v46 = vmax.f32 %v1990_v19, 0.0  ;;  %v2089_v59 = vmax.f32 %v1991_v31, 0.0  ;;  %v2090_v51 = vmax.f32 %v1992_v60, 0.0  ;;  %2303 = vst [vmem:[#allocation1 + $0x3] ss:$4 sm:$0xff] %v2087_v57  ;;  %v2404_v5 = vpack.c.bf16 %v2299_v42, %v2299_v42 }
 0x327   : > { %v1630_v9 = vpop.f32.mrf.mxu2  ;;  %v1299_v19 = vrot.slane %v1203_v44, 2  ;;  %v1300_v42 = vrot.slane %v1203_v44, 4 }
 0x328   : > { %v4944_v22 = vpop.f32.mrf.mxu1  ;;  %2304 = vst [vmem:[#allocation1 + $0x20] ss:$4 sm:$0xff] %v2088_v46  ;;  %v1726_v62 = vrot.slane %v1630_v9, 2  ;;  %v1727_v10 = vrot.slane %v1630_v9, 4  ;;  %v1728_v25 = vrot.slane %v1630_v9, 6  ;;  %v1886_v32 = vadd.f32 %v1630_v9, %v1201_v56 }
 0x329   : > { %2305 = vst [vmem:[#allocation1 + $0x21] ss:$4 sm:$0xff] %v2089_v59  ;;  %v2466_v29 = vunpack.c.l.b16 %v2404_v5 }
 0x32a   : > { %2306 = vst [vmem:[#allocation1 + $0x22] ss:$4 sm:$0xff] %v2090_v51  ;;  %v1887_v16 = vadd.f32 %v1726_v62, %v1296_v53  ;;  %v1888_v49 = vadd.f32 %v1727_v10, %v1297_v11  ;;  %v1889_v58 = vadd.f32 %v1728_v25, %v1298_v45  ;;  %v1993_v61 = vadd.f32 %v4777_v54, %v1886_v32 }
 0x32b   : > { %v4966_v34 = vpack.c.b16 %v2466_v29, %v2465_v28  ;;  %v1206_v28 = vadd.f32 %v4850_v21, %v4611_v2 }
 0x32c   : > { %v1994_v35 = vadd.f32 %v4781_v48, %v1887_v16  ;;  %v1995_v52 = vadd.f32 %v4784_v18, %v1888_v49  ;;  %v1996_v4 = vadd.f32 %v4787_v41, %v1889_v58  ;;  %v2091_v47 = vmax.f32 %v1993_v61, 0.0 }
 0x32d   : > { %v2307_v38 = vld.sshfl [vmem:[#allocation1] sm:$0xff pattern:$0x73625140]  ;;  %v2603_v56 = vrot.slane %v4966_v34, 1  ;;  %v2534_v33 = vshll.u32 %v4966_v34, 16  ;;  %v2532_v59 = vshrl.u32 %v4966_v34, 16 }
 0x32e   : > { %v2092_v31 = vmax.f32 %v1994_v35, 0.0  ;;  %v2093_v60 = vmax.f32 %v1995_v52, 0.0  ;;  %v2094_v57 = vmax.f32 %v1996_v4, 0.0  ;;  %2309 = vst [vmem:[#allocation1] ss:$4 sm:$0xff] %v2091_v47  ;;  %v2405_v62 = vpack.c.bf16 %v2307_v38, %v2307_v38 }
 0x32f   : > { %2621 = vrot.lane.b32.xlu1 %v2603_v56, %s3846_s15  ;;  %v1632_v46 = vpop.f32.mrf.mxu2  ;;  %v2536_v51 = vrot.slane %v2534_v33, 1  ;;  %v1302_v38 = vrot.slane %v1206_v28, 2  ;;  %v1303_v56 = vrot.slane %v1206_v28, 4  ;;  %v1304_v33 = vrot.slane %v1206_v28, 6 }
 0x330   : > { %v4955_v24 = vpop.f32.mrf.mxu1  ;;  %2310 = vst [vmem:[#allocation1 + $0x1] ss:$4 sm:$0xff] %v2092_v31  ;;  %v1729_v5 = vrot.slane %v1632_v46, 2  ;;  %v1730_v53 = vrot.slane %v1632_v46, 4  ;;  %v1731_v11 = vrot.slane %v1632_v46, 6  ;;  %v1890_v45 = vadd.f32 %v1632_v46, %v1203_v44 }
 0x331   : > { %v2308_v9 = vld.sshfl [vmem:[#allocation1 + $0x20] sm:$0xff pattern:$0x73625140]  ;;  %2311 = vst [vmem:[#allocation1 + $0x2] ss:$4 sm:$0xff] %v2093_v60  ;;  %v2537_v7 = vor.u32 %v2536_v51, %v2532_v59  ;;  %v2467_v61 = vunpack.c.l.b16 %v2405_v62 }
 0x332   : > { %2312 = vst [vmem:[#allocation1 + $0x3] ss:$4 sm:$0xff] %v2094_v57  ;;  %v1891_v10 = vadd.f32 %v1729_v5, %v1299_v19  ;;  %v1892_v25 = vadd.f32 %v1730_v53, %v1300_v42  ;;  %v1893_v32 = vadd.f32 %v1731_v11, %v1301_v50  ;;  %v2406_v29 = vpack.c.bf16 %v2308_v9, %v2308_v9  ;;  %v4995_v9 = vld [vmem:[%s5545_s2] ss:$0 sm:$0xff] }
 0x333   : > { %2585 = vrot.lane.b32.xlu0 %v2537_v7, %s3845_s25  ;;  %v1208_v5 = vadd.f32 %v4860_v55, %v4618_v63 }
 0x334   : > { %v1998_v16 = vadd.f32 %v4781_v48, %v1891_v10  ;;  %v1999_v44 = vadd.f32 %v4784_v18, %v1892_v25  ;;  %v2000_v49 = vadd.f32 %v4777_v54, %v1893_v32  ;;  %v2468_v35 = vunpack.c.l.b16 %v2406_v29 }
 0x336   : > { %v2096_v52 = vmax.f32 %v1998_v16, 0.0  ;;  %v2097_v4 = vmax.f32 %v1999_v44, 0.0  ;;  %v2098_v47 = vmax.f32 %v2000_v49, 0.0  ;;  %v4982_v21 = vpack.c.b16 %v2468_v35, %v2467_v61 }
 0x337   : > { %v1635_v2 = vpop.f32.mrf.mxu2  ;;  %v1307_v35 = vrot.slane %v1208_v5, 6 }
 0x338   : > { %v1227_v39 = vpop.f32.mrf.mxu1  ;;  %2314 = vst [vmem:[#allocation1 + $0x21] ss:$4 sm:$0xff] %v2096_v52  ;;  %v1732_v19 = vrot.slane %v1635_v2, 2  ;;  %v1733_v31 = vrot.slane %v1635_v2, 4  ;;  %v1734_v60 = vrot.slane %v1635_v2, 6  ;;  %v1894_v57 = vadd.f32 %v1635_v2, %v1206_v28 }
 0x339   : > { %v1997_v39 = vadd.f32 %v4777_v54, %v1890_v45  ;;  %v2316_v42 = vld.sshfl [vmem:[#allocation1] sm:$0xff pattern:$0x73625140]  ;;  %2315 = vst [vmem:[#allocation1 + $0x22] ss:$4 sm:$0xff] %v2097_v4  ;;  %v2604_v54 = vrot.slane %v4982_v21, 1 }
 0x33a   : > { %2318 = vst [vmem:[#allocation1] ss:$4 sm:$0xff] %v2098_v47  ;;  %v1895_v50 = vadd.f32 %v1732_v19, %v1302_v38  ;;  %v1896_v46 = vadd.f32 %v1733_v31, %v1303_v56  ;;  %v1897_v59 = vadd.f32 %v1734_v60, %v1304_v33  ;;  %v2001_v51 = vadd.f32 %v4781_v48, %v1894_v57 }
 0x33b   : > { %v2095_v58 = vmax.f32 %v1997_v39, 0.0  ;;  %2623 = vrot.lane.b32.xlu0 %v2604_v54, %s3846_s15  ;;  %v2541_v53 = vshll.u32 %v4982_v21, 16  ;;  %v2539_v10 = vshrl.u32 %v4982_v21, 16  ;;  %v1305_v39 = vrot.slane %v1208_v5, 2 }
 0x33c   : > { %v2002_v11 = vadd.f32 %v4784_v18, %v1895_v50  ;;  %v2003_v45 = vadd.f32 %v4787_v41, %v1896_v46  ;;  %v2004_v7 = vadd.f32 %v4995_v9, %v1897_v59  ;;  %v2099_v62 = vmax.f32 %v2001_v51, 0.0 }
 0x33d   : > { %2313 = vst [vmem:[#allocation1 + $0x20] ss:$4 sm:$0xff] %v2095_v58  ;;  %v2543_v25 = vrot.slane %v2541_v53, 1  ;;  %v1306_v28 = vrot.slane %v1208_v5, 4  ;;  %v2407_v44 = vpack.c.bf16 %v2316_v42, %v2316_v42  ;;  %v1211_v38 = vadd.f32 %v4871_v30, %v4633_v13 }
 0x33e   : > { %v2100_v63 = vmax.f32 %v2002_v11, 0.0  ;;  %v2101_v55 = vmax.f32 %v2003_v45, 0.0  ;;  %v2102_v32 = vmax.f32 %v2004_v7, 0.0  ;;  %2319 = vst [vmem:[#allocation1 + $0x1] ss:$4 sm:$0xff] %v2099_v62 }
 0x33f   : > { %v2544_v29 = vor.u32 %v2543_v25, %v2539_v10  ;;  %v1637_v16 = vpop.f32.mrf.mxu2  ;;  %v2469_v31 = vunpack.c.l.b16 %v2407_v44  ;;  %v1308_v59 = vrot.slane %v1211_v38, 2  ;;  %v1309_v13 = vrot.slane %v1211_v38, 4 }
 0x340   : > { %2320 = vst [vmem:[#allocation1 + $0x2] ss:$4 sm:$0xff] %v2100_v63  ;;  %v1735_v58 = vrot.slane %v1637_v16, 2  ;;  %v1898_v61 = vadd.f32 %v1637_v16, %v1208_v5  ;;  %v1736_v52 = vrot.slane %v1637_v16, 4  ;;  %v1737_v4 = vrot.slane %v1637_v16, 6 }
 0x341   : > { %2321 = vst [vmem:[#allocation1 + $0x3] ss:$4 sm:$0xff] %v2101_v55  ;;  %2587 = vrot.lane.b32.xlu2 %v2544_v29, %s3845_s25  ;;  %v1310_v10 = vrot.slane %v1211_v38, 6 }
 0x342   : > { %v1899_v56 = vadd.f32 %v1735_v58, %v1305_v39  ;;  %v2005_v33 = vadd.f32 %v4781_v48, %v1898_v61  ;;  %v1900_v2 = vadd.f32 %v1736_v52, %v1306_v28  ;;  %v1901_v19 = vadd.f32 %v1737_v4, %v1307_v35 }
 0x344   : > { %v2317_v49 = vld.sshfl [vmem:[#allocation1 + $0x20] sm:$0xff pattern:$0x73625140]  ;;  %v2006_v57 = vadd.f32 %v4784_v18, %v1899_v56  ;;  %v2103_v42 = vmax.f32 %v2005_v33, 0.0  ;;  %v2007_v54 = vadd.f32 %v4995_v9, %v1900_v2  ;;  %v2008_v50 = vadd.f32 %v4781_v48, %v1901_v19 }
 0x345   : > { %v2408_v47 = vpack.c.bf16 %v2317_v49, %v2317_v49  ;;  %2322 = vst [vmem:[#allocation1 + $0x20] ss:$4 sm:$0xff] %v2102_v32  ;;  %v1213_v32 = vadd.f32 %v4891_v1, %v4640_v14 }
 0x346   : > { %v2104_v51 = vmax.f32 %v2006_v57, 0.0  ;;  %2323 = vst [vmem:[#allocation1 + $0x21] ss:$4 sm:$0xff] %v2103_v42  ;;  %v2105_v30 = vmax.f32 %v2007_v54, 0.0  ;;  %v2106_v5 = vmax.f32 %v2008_v50, 0.0  ;;  %v1216_v50 = vadd.f32 %v4906_v12, %v4649_v17 }
 0x347   : > { %v2470_v60 = vunpack.c.l.b16 %v2408_v47  ;;  %v1640_v53 = vpop.f32.mrf.mxu2  ;;  %v1311_v47 = vrot.slane %v1213_v32, 2  ;;  %v1313_v1 = vrot.slane %v1213_v32, 6 }
 0x348   : > { %v2325_v45 = vld.sshfl [vmem:[#allocation1] sm:$0xff pattern:$0x73625140]  ;;  %2324 = vst [vmem:[#allocation1 + $0x22] ss:$4 sm:$0xff] %v2104_v51  ;;  %v1738_v7 = vrot.slane %v1640_v53, 2  ;;  %v1902_v62 = vadd.f32 %v1640_v53, %v1211_v38 }
 0x349   : > { %v5006_v46 = vpack.c.b16 %v2470_v60, %v2469_v31  ;;  %2327 = vst [vmem:[#allocation1] ss:$4 sm:$0xff] %v2105_v30  ;;  %v1739_v25 = vrot.slane %v1640_v53, 4  ;;  %v1740_v63 = vrot.slane %v1640_v53, 6  ;;  %v1312_v38 = vrot.slane %v1213_v32, 4 }
 0x34a   : > { %2328 = vst [vmem:[#allocation1 + $0x1] ss:$4 sm:$0xff] %v2106_v5  ;;  %v1903_v39 = vadd.f32 %v1738_v7, %v1308_v59  ;;  %v2009_v28 = vadd.f32 %v4784_v18, %v1902_v62  ;;  %v2409_v31 = vpack.c.bf16 %v2325_v45, %v2325_v45  ;;  %v1314_v17 = vrot.slane %v1216_v50, 2 }
 0x34b   : > { %v2605_v11 = vrot.slane %v5006_v46, 1  ;;  %v2548_v55 = vshll.u32 %v5006_v46, 16  ;;  %v1904_v29 = vadd.f32 %v1739_v25, %v1309_v13  ;;  %v1905_v16 = vadd.f32 %v1740_v63, %v1310_v10 }
 0x34c   : > { %v2546_v44 = vshrl.u32 %v5006_v46, 16  ;;  %v2010_v58 = vadd.f32 %v4787_v41, %v1903_v39  ;;  %v2107_v61 = vmax.f32 %v2009_v28, 0.0  ;;  %v2471_v53 = vunpack.c.l.b16 %v2409_v31 }
 0x34d   : > { %2625 = vrot.lane.b32.xlu2 %v2605_v11, %s3846_s15  ;;  %v2550_v49 = vrot.slane %v2548_v55, 1  ;;  %v2011_v35 = vadd.f32 %v4995_v9, %v1904_v29  ;;  %v2012_v52 = vadd.f32 %v4781_v48, %v1905_v16 }
 0x34e   : > { %v2108_v14 = vmax.f32 %v2010_v58, 0.0  ;;  %2329 = vst [vmem:[#allocation1 + $0x2] ss:$4 sm:$0xff] %v2107_v61 }
 0x34f   : > { %v2551_v4 = vor.u32 %v2550_v49, %v2546_v44  ;;  %v2326_v56 = vld.sshfl [vmem:[#allocation1 + $0x20] sm:$0xff pattern:$0x73625140]  ;;  %v2109_v33 = vmax.f32 %v2011_v35, 0.0  ;;  %v2110_v2 = vmax.f32 %v2012_v52, 0.0  ;;  %v1642_v19 = vpop.f32.mrf.mxu2  ;;  %v1316_v44 = vrot.slane %v1216_v50, 6 }
 0x350   : > { %2330 = vst [vmem:[#allocation1 + $0x3] ss:$4 sm:$0xff] %v2108_v14  ;;  %v1741_v60 = vrot.slane %v1642_v19, 2  ;;  %v1742_v57 = vrot.slane %v1642_v19, 4  ;;  %v1743_v42 = vrot.slane %v1642_v19, 6  ;;  %v1906_v54 = vadd.f32 %v1642_v19, %v1213_v32 }
 0x351   : > { %2589 = vrot.lane.b32.xlu1 %v2551_v4, %s3845_s25  ;;  %2331 = vst [vmem:[#allocation1 + $0x20] ss:$4 sm:$0xff] %v2109_v33  ;;  %v2410_v59 = vpack.c.bf16 %v2326_v56, %v2326_v56  ;;  %v1315_v32 = vrot.slane %v1216_v50, 4 }
 0x352   : > { %2332 = vst [vmem:[#allocation1 + $0x21] ss:$4 sm:$0xff] %v2110_v2  ;;  %v1907_v51 = vadd.f32 %v1741_v60, %v1311_v47  ;;  %v1908_v13 = vadd.f32 %v1742_v57, %v1312_v38  ;;  %v1909_v30 = vadd.f32 %v1743_v42, %v1313_v1  ;;  %v2013_v5 = vadd.f32 %v4784_v18, %v1906_v54 }
 0x353   : > { %v2472_v11 = vunpack.c.l.b16 %v2410_v59  ;;  %v1218_v1 = vadd.f32 %v4920_v37, %v4657_v26 }
 0x354   : > { %v2014_v45 = vadd.f32 %v4995_v9, %v1907_v51  ;;  %v2015_v7 = vadd.f32 %v4781_v48, %v1908_v13  ;;  %v2016_v62 = vadd.f32 %v4784_v18, %v1909_v30  ;;  %v2111_v10 = vmax.f32 %v2013_v5, 0.0 }
 0x355   : > { %v5025_v25 = vpack.c.b16 %v2472_v11, %v2471_v53  ;;  %v1317_v13 = vrot.slane %v1218_v1, 2  ;;  %v1318_v26 = vrot.slane %v1218_v1, 4  ;;  %v1319_v37 = vrot.slane %v1218_v1, 6 }
 0x356   : > { %v2112_v12 = vmax.f32 %v2014_v45, 0.0  ;;  %v2113_v63 = vmax.f32 %v2015_v7, 0.0  ;;  %v2114_v55 = vmax.f32 %v2016_v62, 0.0  ;;  %2333 = vst [vmem:[#allocation1 + $0x22] ss:$4 sm:$0xff] %v2111_v10  ;;  %v1221_v7 = vadd.f32 %v4931_v20, %v4667_v36 }
 0x357   : > { %v2334_v39 = vld.sshfl [vmem:[#allocation1] sm:$0xff pattern:$0x73625140]  ;;  %v1645_v28 = vpop.f32.mrf.mxu2  ;;  %v2606_v29 = vrot.slane %v5025_v25, 1  ;;  %v2555_v16 = vshll.u32 %v5025_v25, 16  ;;  %v2553_v52 = vshrl.u32 %v5025_v25, 16 }
 0x358   : > { %2336 = vst [vmem:[#allocation1] ss:$4 sm:$0xff] %v2112_v12  ;;  %v1744_v49 = vrot.slane %v1645_v28, 2  ;;  %v1745_v58 = vrot.slane %v1645_v28, 4  ;;  %v1746_v61 = vrot.slane %v1645_v28, 6  ;;  %v1910_v35 = vadd.f32 %v1645_v28, %v1216_v50 }
 0x359   : > { %2337 = vst [vmem:[#allocation1 + $0x1] ss:$4 sm:$0xff] %v2113_v63  ;;  %2627 = vrot.lane.b32.xlu1 %v2606_v29, %s3846_s15  ;;  %v2557_v4 = vrot.slane %v2555_v16, 1  ;;  %v2411_v42 = vpack.c.bf16 %v2334_v39, %v2334_v39 }
 0x35a   : > { %2338 = vst [vmem:[#allocation1 + $0x2] ss:$4 sm:$0xff] %v2114_v55  ;;  %v1911_v47 = vadd.f32 %v1744_v49, %v1314_v17  ;;  %v1912_v38 = vadd.f32 %v1745_v58, %v1315_v32  ;;  %v1913_v14 = vadd.f32 %v1746_v61, %v1316_v44  ;;  %v2017_v56 = vadd.f32 %v4787_v41, %v1910_v35 }
 0x35b   : > { %v2558_v33 = vor.u32 %v2557_v4, %v2553_v52  ;;  %v2473_v62 = vunpack.c.l.b16 %v2411_v42  ;;  %v1320_v44 = vrot.slane %v1221_v7, 2  ;;  %v1321_v52 = vrot.slane %v1221_v7, 4 }
 0x35c   : > { %v2018_v2 = vadd.f32 %v4995_v9, %v1911_v47  ;;  %v2019_v19 = vadd.f32 %v4781_v48, %v1912_v38  ;;  %v2020_v31 = vadd.f32 %v4784_v18, %v1913_v14  ;;  %v2115_v57 = vmax.f32 %v2017_v56, 0.0 }
 0x35d   : > { %v2335_v60 = vld.sshfl [vmem:[#allocation1 + $0x20] sm:$0xff pattern:$0x73625140]  ;;  %2591 = vrot.lane.b32.xlu0 %v2558_v33, %s3845_s25  ;;  %v1322_v4 = vrot.slane %v1221_v7, 6 }
 0x35e   : > { %v2116_v54 = vmax.f32 %v2018_v2, 0.0  ;;  %v2117_v50 = vmax.f32 %v2019_v19, 0.0  ;;  %v2118_v59 = vmax.f32 %v2020_v31, 0.0  ;;  %v2412_v51 = vpack.c.bf16 %v2335_v60, %v2335_v60  ;;  %2339 = vst [vmem:[#allocation1 + $0x3] ss:$4 sm:$0xff] %v2115_v57 }
 0x35f   : > { %v1647_v30 = vpop.f32.mrf.mxu2 }
 0x360   : > { %2340 = vst [vmem:[#allocation1 + $0x20] ss:$4 sm:$0xff] %v2116_v54  ;;  %v1747_v5 = vrot.slane %v1647_v30, 2  ;;  %v1748_v53 = vrot.slane %v1647_v30, 4  ;;  %v1749_v11 = vrot.slane %v1647_v30, 6  ;;  %v1914_v45 = vadd.f32 %v1647_v30, %v1218_v1 }
 0x361   : > { %2341 = vst [vmem:[#allocation1 + $0x21] ss:$4 sm:$0xff] %v2117_v50  ;;  %v2474_v10 = vunpack.c.l.b16 %v2412_v51 }
 0x362   : > { %2342 = vst [vmem:[#allocation1 + $0x22] ss:$4 sm:$0xff] %v2118_v59  ;;  %v1915_v17 = vadd.f32 %v1747_v5, %v1317_v13  ;;  %v1916_v12 = vadd.f32 %v1748_v53, %v1318_v26  ;;  %v1917_v63 = vadd.f32 %v1749_v11, %v1319_v37  ;;  %v2021_v55 = vadd.f32 %v4995_v9, %v1914_v45 }
 0x363   : > { %v5041_v32 = vpack.c.b16 %v2474_v10, %v2473_v62  ;;  %v1223_v59 = vadd.f32 %v4944_v22, %v4673_v43  ;;  %v2392_v11 = vpack.c.bf16 %v4824_v27, %v4824_v27  ;;  %v2391_v43 = vpack.c.bf16 %v4814_v8, %v4814_v8 }
 0x364   : > { %v2022_v39 = vadd.f32 %v4781_v48, %v1915_v17  ;;  %v2023_v28 = vadd.f32 %v4784_v18, %v1916_v12  ;;  %v2024_v29 = vadd.f32 %v4787_v41, %v1917_v63  ;;  %v2119_v16 = vmax.f32 %v2021_v55, 0.0 }
 0x365   : > { %v2607_v36 = vrot.slane %v5041_v32, 1  ;;  %v2562_v20 = vshll.u32 %v5041_v32, 16  ;;  %v2343_v49 = vld.sshfl [vmem:[#allocation1] sm:$0xff pattern:$0x73625140]  ;;  %v2560_v38 = vshrl.u32 %v5041_v32, 16 }
 0x366   : > { %v2120_v58 = vmax.f32 %v2022_v39, 0.0  ;;  %v2121_v61 = vmax.f32 %v2023_v28, 0.0  ;;  %v2122_v35 = vmax.f32 %v2024_v29, 0.0  ;;  %2345 = vst [vmem:[#allocation1] ss:$4 sm:$0xff] %v2119_v16  ;;  %v2413_v60 = vpack.c.bf16 %v2343_v49, %v2343_v49 }
 0x367   : > { %2629 = vrot.lane.b32.xlu0 %v2607_v36, %s3846_s15  ;;  %v1650_v47 = vpop.f32.mrf.mxu2  ;;  %v2564_v14 = vrot.slane %v2562_v20, 1  ;;  %v1323_v22 = vrot.slane %v1223_v59, 2  ;;  %v1324_v10 = vrot.slane %v1223_v59, 4  ;;  %v1325_v17 = vrot.slane %v1223_v59, 6 }
 0x368   : > { %2346 = vst [vmem:[#allocation1 + $0x1] ss:$4 sm:$0xff] %v2120_v58  ;;  %v1750_v1 = vrot.slane %v1650_v47, 2  ;;  %v1751_v56 = vrot.slane %v1650_v47, 4  ;;  %v1752_v33 = vrot.slane %v1650_v47, 6  ;;  %v1918_v2 = vadd.f32 %v1650_v47, %v1221_v7 }
 0x369   : > { %v2344_v19 = vld.sshfl [vmem:[#allocation1 + $0x20] sm:$0xff pattern:$0x73625140]  ;;  %2347 = vst [vmem:[#allocation1 + $0x2] ss:$4 sm:$0xff] %v2121_v61  ;;  %v2565_v31 = vor.u32 %v2564_v14, %v2560_v38  ;;  %v2475_v5 = vunpack.c.l.b16 %v2413_v60  ;;  %v1226_v49 = vadd.f32 %v4955_v24, %v4655_v23 }
 0x36a   : > { %2348 = vst [vmem:[#allocation1 + $0x3] ss:$4 sm:$0xff] %v2122_v35  ;;  %v1919_v57 = vadd.f32 %v1750_v1, %v1320_v44  ;;  %v1920_v42 = vadd.f32 %v1751_v56, %v1321_v52  ;;  %v1921_v54 = vadd.f32 %v1752_v33, %v1322_v4  ;;  %v2025_v50 = vadd.f32 %v4995_v9, %v1918_v2  ;;  %v2424_v23 = vld [vmem:[%s5546_s3 + $0x14] sm:$0xf] }
 0x36b   : > { %2593 = vrot.lane.b32.xlu2 %v2565_v31, %s3845_s25  ;;  %v2414_v51 = vpack.c.bf16 %v2344_v19, %v2344_v19  ;;  %v2454_v44 = vunpack.c.l.b16 %v2392_v11  ;;  %v2453_v35 = vunpack.c.l.b16 %v2391_v43  ;;  %v2820_v19 = vunpack.c.l.b16 %v2424_v23 }
 0x36c   : > { %v2026_v13 = vadd.f32 %v4781_v48, %v1919_v57  ;;  %v2027_v26 = vadd.f32 %v4784_v18, %v1920_v42  ;;  %v2028_v37 = vadd.f32 %v4995_v9, %v1921_v54  ;;  %v2123_v30 = vmax.f32 %v2025_v50, 0.0 }
 0x36d   : > { %v2476_v53 = vunpack.c.l.b16 %v2414_v51  ;;  %v5073_v56 = vpack.c.b16 %v2454_v44, %v2453_v35  ;;  %v1326_v31 = vrot.slane %v1226_v49, 2  ;;  %v2822_v50 = vpack.c.b16 %v2820_v19, %v2820_v19 }
 0x36e   : > { %v2124_v45 = vmax.f32 %v2026_v13, 0.0  ;;  %v2125_v7 = vmax.f32 %v2027_v26, 0.0  ;;  %v2126_v62 = vmax.f32 %v2028_v37, 0.0  ;;  %2349 = vst [vmem:[#allocation1 + $0x20] ss:$4 sm:$0xff] %v2123_v30  ;;  %v2578_v13 = vpop.permute.xlu2 %2577 }
 0x36f   : > { %v1652_v12 = vpop.f32.mrf.mxu2  ;;  %v5061_v63 = vpack.c.b16 %v2476_v53, %v2475_v5  ;;  %v2845_v5 = vsel %vm2843_vm4, %v2822_v50, 0  ;;  %v2492_v44 = vshll.u32 %v5073_v56, 16 }
 0x370   : > { %2350 = vst [vmem:[#allocation1 + $0x21] ss:$4 sm:$0xff] %v2124_v45  ;;  %v1753_v55 = vrot.slane %v1652_v12, 2  ;;  %v1754_v39 = vrot.slane %v1652_v12, 4  ;;  %v1755_v28 = vrot.slane %v1652_v12, 6  ;;  %v1922_v29 = vadd.f32 %v1652_v12, %v1223_v59  ;;  %v2614_v26 = vpop.permute.xlu1 %2613  ;;  %2853 = vmatpush.bf16.msra.mxu2 %v2845_v5  ;;  %3819 = vmatpush.bf16.msra.mxu3 %v2845_v5 }
 0x371   : > { %v2352_v16 = vld.sshfl [vmem:[#allocation1] sm:$0xff pattern:$0x73625140]  ;;  %2351 = vst [vmem:[#allocation1 + $0x22] ss:$4 sm:$0xff] %v2125_v7  ;;  %v2608_v27 = vrot.slane %v5061_v63, 1 }
 0x372   : > { %2354 = vst [vmem:[#allocation1] ss:$4 sm:$0xff] %v2126_v62  ;;  %v1923_v36 = vadd.f32 %v1753_v55, %v1323_v22  ;;  %v1924_v20 = vadd.f32 %v1754_v39, %v1324_v10  ;;  %v1925_v8 = vadd.f32 %v1755_v28, %v1325_v17  ;;  %v2029_v58 = vadd.f32 %v4781_v48, %v1922_v29  ;;  %v3815_v55 = vld [vmem:[%s5546_s3 + $0xc] sm:$0xff] }
 0x373   : > { %2631 = vrot.lane.b32.xlu0 %v2608_v27, %s3846_s15  ;;  %v2569_v61 = vshll.u32 %v5061_v63, 16  ;;  %v2567_v14 = vshrl.u32 %v5061_v63, 16  ;;  %v2415_v57 = vpack.c.bf16 %v2352_v16, %v2352_v16  ;;  %v2597_v59 = vrot.slane %v5073_v56, 1 }
 0x374   : > { %v2030_v52 = vadd.f32 %v4784_v18, %v1923_v36  ;;  %v2031_v4 = vadd.f32 %v4787_v41, %v1924_v20  ;;  %v2032_v47 = vadd.f32 %v4995_v9, %v1925_v8  ;;  %v2127_v38 = vmax.f32 %v2029_v58, 0.0  ;;  %2854 = vmatpush.bf16.msra.mxu2 %v3815_v55  ;;  %3820 = vmatpush.bf16.msra.mxu3 %v3815_v55 }
 0x375   : > { %v2571_v1 = vrot.slane %v2569_v61, 1  ;;  %v2684_v11 = vunpack.c.l.b16 %v2415_v57  ;;  %v2421_v57 = vld [vmem:[%s5546_s3 + $0x8] sm:$0xf] }
 0x376   : > { %v2128_v24 = vmax.f32 %v2030_v52, 0.0  ;;  %v2129_v33 = vmax.f32 %v2031_v4, 0.0  ;;  %v2130_v2 = vmax.f32 %v2032_v47, 0.0  ;;  %2355 = vst [vmem:[#allocation1 + $0x1] ss:$4 sm:$0xff] %v2127_v38  ;;  %v2616_v36 = vpop.permute.xlu2 %2615  ;;  %v2494_v4 = vrot.slane %v2492_v44, 1 }
 0x377   : > { %v2572_v60 = vor.u32 %v2571_v1, %v2567_v14  ;;  %v1655_v41 = vpop.f32.mrf.mxu2  ;;  %v2490_v1 = vshrl.u32 %v5073_v56, 16  ;;  %v2963_v50 = vunpack.c.l.b16 %v2421_v57 }
 0x378   : > { %v2353_v9 = vld.sshfl [vmem:[#allocation1 + $0x20] sm:$0xff pattern:$0x73625140]  ;;  %2356 = vst [vmem:[#allocation1 + $0x2] ss:$4 sm:$0xff] %v2128_v24  ;;  %v1756_v42 = vrot.slane %v1655_v41, 2  ;;  %v1926_v54 = vadd.f32 %v1655_v41, %v1226_v49  ;;  %v2612_v20 = vpop.permute.xlu1 %2611 }
 0x379   : > { %2357 = vst [vmem:[#allocation1 + $0x3] ss:$4 sm:$0xff] %v2129_v33  ;;  %2595 = vrot.lane.b32.xlu1 %v2572_v60, %s3845_s25  ;;  %v2416_v51 = vpack.c.bf16 %v2353_v9, %v2353_v9  ;;  %v2495_v33 = vor.u32 %v2494_v4, %v2490_v1 }
 0x37a   : > { %2358 = vst [vmem:[#allocation1 + $0x20] ss:$4 sm:$0xff] %v2130_v2  ;;  %v1927_v37 = vadd.f32 %v1756_v42, %v1326_v31  ;;  %v2033_v30 = vadd.f32 %v4781_v48, %v1926_v54  ;;  %v2638_v48 = vsel %vm532_vm2, %v4876_v6, %v2578_v13  ;;  %v2965_v13 = vpack.c.b16 %v2963_v50, %v2963_v50 }
 0x37b   : > { %2609 = vrot.lane.b32.xlu0 %v2597_v59, %s3846_s15  ;;  %v2685_v45 = vunpack.c.l.b16 %v2416_v51 }
 0x37c   : > { %v2034_v7 = vadd.f32 %v4784_v18, %v1927_v37  ;;  %v2131_v62 = vmax.f32 %v2033_v30, 0.0  ;;  %v5094_v18 = vsel %vm2657_vm5, %v2638_v48, %v2614_v26 }
 0x37d   : > { %v5084_v43 = vpack.c.b16 %v2685_v45, %v2684_v11  ;;  %v5109_v58 = vrot.slane %v5094_v18, 2  ;;  %v5116_v35 = vrot.slane %v5094_v18, 4 }
 0x37e   : > { %v2132_v22 = vmax.f32 %v2034_v7, 0.0  ;;  %2359 = vst [vmem:[#allocation1 + $0x21] ss:$4 sm:$0xff] %v2131_v62  ;;  %v2582_v2 = vpop.permute.xlu2 %2581  ;;  %v2427_v62 = vld [vmem:[%s5546_s3 + $0x20] sm:$0xf] }
 0x37f   : > { %v2580_v53 = vpop.permute.xlu0 %2579  ;;  %v1657_v10 = vpop.f32.mrf.mxu2  ;;  %v2696_v17 = vrot.slane %v5084_v43, 1  ;;  %v2690_v12 = vshll.u32 %v5084_v43, 16  ;;  %v2688_v6 = vshrl.u32 %v5084_v43, 16  ;;  %v2642_v41 = vsel %vm532_vm2, %v4928_v40, %v2582_v2  ;;  %v3814_v2 = vld [vmem:[%s5546_s3] sm:$0xff] }
 0x380   : > { %v2361_v39 = vld.sshfl [vmem:[#allocation1] sm:$0xff pattern:$0x73625140]  ;;  %2360 = vst [vmem:[#allocation1 + $0x22] ss:$4 sm:$0xff] %v2132_v22  ;;  %v2640_v29 = vsel %vm532_vm2, %v4903_v15, %v2580_v53  ;;  %v2986_v53 = vsel %vm2843_vm4, %v2965_v13, 0  ;;  %v3179_v48 = vunpack.c.l.b16 %v2427_v62 }
 0x381   : > { %2747 = vst [vmem:[#allocation1 + $0x3] ss:$4 sm:$0xff] %v5094_v18  ;;  %2697 = vrot.lane.b32.xlu1 %v2696_v17, %s3846_s15  ;;  %v2692_v28 = vrot.slane %v2690_v12, 1  ;;  %v5112_v61 = vsel %vm2657_vm5, %v2640_v29, %v2616_v36  ;;  %v2417_v15 = vpack.c.bf16 %v2361_v39, %v2361_v39  ;;  %2994 = vmatpush.bf16.msrb.mxu3 %v2986_v53 }
 0x382   : > { %v5121_v38 = vrot.slane %v5112_v61, 2  ;;  %v5146_v26 = vrot.slane %v5112_v61, 4  ;;  %v3181_v12 = vpack.c.b16 %v3179_v48, %v3179_v48 }
 0x383   : > { %v2693_v27 = vor.u32 %v2692_v28, %v2688_v6  ;;  %v3098_v23 = vunpack.c.l.b16 %v2417_v15 }
 0x385   : > { %2694 = vrot.lane.b32.xlu2 %v2693_v27, %s3845_s25  ;;  %2995 = vmatpush.bf16.msrb.mxu3 %v3814_v2 }
 0x386   : > { %v2620_v45 = vpop.permute.xlu2 %2619 }
 0x387   : > { %v2576_v16 = vpop.permute.xlu0 %2575  ;;  %v2362_v52 = vld.sshfl [vmem:[#allocation1 + $0x20] sm:$0xff pattern:$0x73625140] }
 0x388   : > { %v2636_v8 = vsel %vm532_vm2, %v4893_v0, %v2576_v16  ;;  %2750 = vst [vmem:[#allocation1 + $0x20] ss:$4 sm:$0xff] %v5109_v58  ;;  %v2418_v47 = vpack.c.bf16 %v2362_v52, %v2362_v52 }
 0x389   : > { %v5105_v49 = vsel %vm2657_vm5, %v2636_v8, %v2612_v20  ;;  %2753 = vst [vmem:[#allocation1 + $0x21] ss:$4 sm:$0xff] %v5116_v35 }
 0x38a   : > { %2739 = vst [vmem:[#allocation1] ss:$4 sm:$0xff] %v5105_v49  ;;  %v2715_v0 = vrot.slane %v5105_v49, 2  ;;  %v2716_v14 = vrot.slane %v5105_v49, 4  ;;  %v3099_v24 = vunpack.c.l.b16 %v2418_v47 }
 0x38b   : > { %2755 = vst [vmem:[#allocation1 + $0x22] ss:$4 sm:$0xff] %v5112_v61 }
 0x38c   : > { %2758 = vst [vmem:[#allocation1 + $0x23] ss:$4 sm:$0xff] %v5121_v38  ;;  %v5130_v19 = vpack.c.b16 %v3099_v24, %v3098_v23 }
 0x38d   : > { %2742 = vst [vmem:[#allocation1 + $0x1] ss:$4 sm:$0xff] %v2715_v0  ;;  %2573 = vrot.lane.b32.xlu2 %v2495_v33, %s3845_s25 }
 0x38e   : > { %2745 = vst [vmem:[#allocation1 + $0x2] ss:$4 sm:$0xff] %v2716_v14  ;;  %v3104_v60 = vshll.u32 %v5130_v19, 16  ;;  %v3102_v42 = vshrl.u32 %v5130_v19, 16  ;;  %v3110_v37 = vrot.slane %v5130_v19, 1 }
 0x38f   : > { %v2618_v31 = vpop.permute.xlu0 %2617 }
 0x390   : > { %v5142_v9 = vsel %vm2657_vm5, %v2642_v41, %v2618_v31  ;;  %v3106_v54 = vrot.slane %v3104_v60, 1 }
 0x391   : > { %v5149_v40 = vrot.slane %v5142_v9, 2  ;;  %v5154_v5 = vrot.slane %v5142_v9, 4 }
 0x392   : > { %v3107_v51 = vor.u32 %v3106_v54, %v3102_v42 }
 0x393   : > { %v2760_v59 = vld.sshfl [vmem:[#allocation1 + $0x20] sm:$0xff pattern:$0x73625140] }
 0x394   : > { %3758 = vmatmul.msk.bf16.vlgmr.msra.gmra.mxu3 %vm2824_vm6, %v2760_v59  ;;  %3108 = vrot.lane.b32.xlu1 %v3107_v51, %s3845_s25 }
 0x395   : > { %v2759_v30 = vld.sshfl [vmem:[#allocation1] sm:$0xff pattern:$0x73625140]  ;;  %3111 = vrot.lane.b32.xlu2 %v3110_v37, %s3846_s15 }
 0x396   : > { %2762 = vst [vmem:[#allocation1] ss:$4 sm:$0xff] %v5146_v26  ;;  %3757 = vmatmul.msk.bf16.vlgmr.msra.gmra.mxu2 %vm2824_vm6, %v2759_v30 }
 0x397   : > { %2763 = vst [vmem:[#allocation1 + $0x1] ss:$4 sm:$0xff] %v5142_v9  ;;  %v2584_v11 = vpop.permute.xlu1 %2583 }
 0x398   : > { %2765 = vst [vmem:[#allocation1 + $0x2] ss:$4 sm:$0xff] %v5149_v40  ;;  %v2644_v7 = vsel %vm532_vm2, %v4950_v3, %v2584_v11  ;;  %v3202_v3 = vsel %vm2843_vm4, %v3181_v12, 0 }
 0x399   : > { %2767 = vst [vmem:[#allocation1 + $0x3] ss:$4 sm:$0xff] %v5154_v5  ;;  %v5170_v22 = vsel %vm2657_vm5, %v2644_v7, %v2620_v45  ;;  %3210 = vmatpush.bf16.msrb.mxu0 %v3202_v3 }
 0x39a   : > { %v5173_v10 = vrot.slane %v5170_v22, 2  ;;  %v5176_v17 = vrot.slane %v5170_v22, 4  ;;  %2768 = vst [vmem:[#allocation1 + $0x20] ss:$4 sm:$0xff] %v5170_v22 }
 0x39b   : > { %v2588_v44 = vpop.permute.xlu2 %2587 }
 0x39c   : > { %2770 = vst [vmem:[#allocation1 + $0x21] ss:$4 sm:$0xff] %v5173_v10  ;;  %v2648_v36 = vsel %vm532_vm2, %v4982_v21, %v2588_v44 }
 0x39d   : > { %2772 = vst [vmem:[#allocation1 + $0x22] ss:$4 sm:$0xff] %v5176_v17 }
 0x3a0   : > { %v2774_v55 = vld.sshfl [vmem:[#allocation1] sm:$0xff pattern:$0x73625140] }
 0x3a1   : > { %v2622_v6 = vpop.permute.xlu1 %2621 }
 0x3a4   : > { %3759 = vmatmul.msk.bf16.gmra.mxu3 %vm2824_vm6, %v2774_v55 }
 0x3a5   : > { %v2586_v39 = vpop.permute.xlu0 %2585 }
 0x3a6   : > { %v2646_v28 = vsel %vm532_vm2, %v4966_v34, %v2586_v39 }
 0x3a7   : > { %v5186_v29 = vsel %vm2657_vm5, %v2646_v28, %v2622_v6  ;;  %v2626_v4 = vpop.permute.xlu2 %2625 }
 0x3a8   : > { %v5189_v16 = vrot.slane %v5186_v29, 2  ;;  %v5192_v27 = vrot.slane %v5186_v29, 4  ;;  %2773 = vst [vmem:[#allocation1 + $0x23] ss:$4 sm:$0xff] %v5186_v29 }
 0x3aa   : > { %2777 = vst [vmem:[#allocation1] ss:$4 sm:$0xff] %v5189_v16 }
 0x3ab   : > { %2779 = vst [vmem:[#allocation1 + $0x1] ss:$4 sm:$0xff] %v5192_v27 }
 0x3ad   : > { %v2624_v34 = vpop.permute.xlu0 %2623 }
 0x3ae   : > { %v5200_v20 = vsel %vm2657_vm5, %v2648_v36, %v2624_v34 }
 0x3af   : > { %v2775_v8 = vld.sshfl [vmem:[#allocation1 + $0x20] sm:$0xff pattern:$0x73625140]  ;;  %v5203_v15 = vrot.slane %v5200_v20, 2  ;;  %v5206_v52 = vrot.slane %v5200_v20, 4 }
 0x3b0   : > { %2780 = vst [vmem:[#allocation1 + $0x2] ss:$4 sm:$0xff] %v5200_v20 }
 0x3b1   : > { %2782 = vst [vmem:[#allocation1 + $0x3] ss:$4 sm:$0xff] %v5203_v15 }
 0x3b2   : > { %2784 = vst [vmem:[#allocation1 + $0x20] ss:$4 sm:$0xff] %v5206_v52 }
 0x3b4   : > { %3760 = vmatmul.msk.bf16.gmra.mxu3 %vm2824_vm6, %v2775_v8 }
 0x3b8   : > { %v2790_v47 = vld.sshfl [vmem:[#allocation1] sm:$0xff pattern:$0x73625140] }
 0x3c3   : > { %v2590_v21 = vpop.permute.xlu1 %2589 }
 0x3c4   : > { %v2650_v1 = vsel %vm532_vm2, %v5006_v46, %v2590_v21  ;;  %3761 = vmatmul.msk.bf16.gmra.mxu3 %vm2824_vm6, %v2790_v47 }
 0x3c5   : > { %v5215_v23 = vsel %vm2657_vm5, %v2650_v1, %v2626_v4  ;;  %v2594_v50 = vpop.permute.xlu2 %2593 }
 0x3c6   : > { %v5219_v24 = vrot.slane %v5215_v23, 2  ;;  %v5222_v33 = vrot.slane %v5215_v23, 4  ;;  %2785 = vst [vmem:[#allocation1 + $0x21] ss:$4 sm:$0xff] %v5215_v23 }
 0x3c8   : > { %2787 = vst [vmem:[#allocation1 + $0x22] ss:$4 sm:$0xff] %v5219_v24 }
 0x3c9   : > { %2789 = vst [vmem:[#allocation1 + $0x23] ss:$4 sm:$0xff] %v5222_v33 }
 0x3cb   : > { %v2628_v31 = vpop.permute.xlu1 %2627 }
 0x3cf   : > { %v2592_v46 = vpop.permute.xlu0 %2591 }
 0x3d0   : > { %v2652_v60 = vsel %vm532_vm2, %v5025_v25, %v2592_v46  ;;  %v2791_v41 = vld.sshfl [vmem:[#allocation1 + $0x20] sm:$0xff pattern:$0x73625140]  ;;  %v2654_v25 = vsel %vm532_vm2, %v5041_v32, %v2594_v50 }
 0x3d1   : > { %v5233_v57 = vsel %vm2657_vm5, %v2652_v60, %v2628_v31 }
 0x3d2   : > { %v5236_v42 = vrot.slane %v5233_v57, 2  ;;  %v5239_v54 = vrot.slane %v5233_v57, 4  ;;  %2792 = vst [vmem:[#allocation1] ss:$4 sm:$0xff] %v5233_v57 }
 0x3d4   : > { %3762 = vmatmul.msk.bf16.gmra.mxu3 %vm2824_vm6, %v2791_v41  ;;  %2794 = vst [vmem:[#allocation1 + $0x1] ss:$4 sm:$0xff] %v5236_v42 }
 0x3d5   : > { %2796 = vst [vmem:[#allocation1 + $0x2] ss:$4 sm:$0xff] %v5239_v54 }
 0x3d9   : > { %v2630_v59 = vpop.permute.xlu0 %2629 }
 0x3da   : > { %v5248_v51 = vsel %vm2657_vm5, %v2654_v25, %v2630_v59 }
 0x3db   : > { %v5251_v13 = vrot.slane %v5248_v51, 2  ;;  %v5254_v37 = vrot.slane %v5248_v51, 4  ;;  %2797 = vst [vmem:[#allocation1 + $0x3] ss:$4 sm:$0xff] %v5248_v51 }
 0x3dd   : > { %2799 = vst [vmem:[#allocation1 + $0x20] ss:$4 sm:$0xff] %v5251_v13 }
 0x3de   : > { %2801 = vst [vmem:[#allocation1 + $0x21] ss:$4 sm:$0xff] %v5254_v37 }
 0x3df   : > { %v2695_v48 = vpop.permute.xlu2 %2694 }
 0x3e2   : > { %v2805_v30 = vld.sshfl [vmem:[#allocation1] sm:$0xff pattern:$0x73625140] }
 0x3e4   : > { %3763 = vmatmul.msk.bf16.gmra.mxu3 %vm2824_vm6, %v2805_v30 }
 0x3e5   : > { %v2632_v53 = vpop.permute.xlu0 %2631 }
 0x3eb   : > { %v2596_v32 = vpop.permute.xlu1 %2595 }
 0x3ec   : > { %v2656_v11 = vsel %vm532_vm2, %v5061_v63, %v2596_v32  ;;  %v2700_v63 = vsel %vm532_vm2, %v5084_v43, %v2695_v48  ;;  %v2574_v43 = vpop.permute.xlu2 %2573 }
 0x3ed   : > { %v5263_v45 = vsel %vm2657_vm5, %v2656_v11, %v2632_v53  ;;  %v2634_v44 = vsel %vm532_vm2, %v5073_v56, %v2574_v43  ;;  %v5428_v11 = vld [vmem:[%s5547_s4] ss:$0 sm:$0xff] }
 0x3ee   : > { %v5266_v7 = vrot.slane %v5263_v45, 2  ;;  %v5269_v62 = vrot.slane %v5263_v45, 4  ;;  %2802 = vst [vmem:[#allocation1 + $0x22] ss:$4 sm:$0xff] %v5263_v45 }
 0x3f0   : > { %2804 = vst [vmem:[#allocation1 + $0x23] ss:$4 sm:$0xff] %v5266_v7 }
 0x3f1   : > { %2808 = vst [vmem:[#allocation1] ss:$4 sm:$0xff] %v5269_v62 }
 0x3f3   : > { %v2698_v3 = vpop.permute.xlu1 %2697 }
 0x3f4   : > { %v5284_v55 = vsel %vm2657_vm5, %v2700_v63, %v2698_v3  ;;  %v5431_v63 = vrot.slane %v5428_v11, 4 }
 0x3f5   : > { %v2737_v39 = vrot.slane %v5284_v55, 2  ;;  %v2738_v6 = vrot.slane %v5284_v55, 4  ;;  %2809 = vst [vmem:[#allocation1 + $0x1] ss:$4 sm:$0xff] %v5284_v55 }
 0x3f7   : > { %v2806_v12 = vld.sshfl [vmem:[#allocation1 + $0x20] sm:$0xff pattern:$0x73625140]  ;;  %2811 = vst [vmem:[#allocation1 + $0x2] ss:$4 sm:$0xff] %v2737_v39 }
 0x3f8   : > { %2914 = vst [vmem:[#allocation1 + $0x20] ss:$4 sm:$0xff] %v2715_v0  ;;  %3764 = vmatmul.msk.bf16.gmra.mxu3 %vm2824_vm6, %v2806_v12  ;;  %v3816_v0 = vld [vmem:[%s5546_s3 + $0x18] sm:$0xff] }
 0x3f9   : > { %2916 = vst [vmem:[#allocation1 + $0x21] ss:$4 sm:$0xff] %v2716_v14  ;;  %3211 = vmatpush.bf16.msrb.mxu0 %v3816_v0  ;;  %v2610_v14 = vpop.permute.xlu0 %2609 }
 0x3fa   : > { %2918 = vst [vmem:[#allocation1 + $0x22] ss:$4 sm:$0xff] %v5094_v18  ;;  %v2659_v36 = vsel %vm2657_vm5, %v2634_v44, %v2610_v14 }
 0x3fb   : > { %2920 = vst [vmem:[#allocation1 + $0x23] ss:$4 sm:$0xff] %v5109_v58  ;;  %v2902_v34 = vrot.slane %v2659_v36, 2  ;;  %v2903_v21 = vrot.slane %v2659_v36, 4 }
 0x3fc   : > { %2813 = vst [vmem:[#allocation1 + $0x3] ss:$4 sm:$0xff] %v2738_v6 }
 0x402   : > { %v2922_v28 = vld.sshfl [vmem:[#allocation1 + $0x20] sm:$0xff pattern:$0x73625140] }
 0x403   : > { %2927 = vst [vmem:[#allocation1 + $0x20] ss:$4 sm:$0xff] %v5142_v9  ;;  %v2814_v8 = vld.sshfl [vmem:[#allocation1] sm:$0xff pattern:$0x73625140] }
 0x404   : > { %2928 = vst [vmem:[#allocation1 + $0x21] ss:$4 sm:$0xff] %v5149_v40 }
 0x405   : > { %2929 = vst [vmem:[#allocation1 + $0x22] ss:$4 sm:$0xff] %v5154_v5 }
 0x406   : > { %2930 = vst [vmem:[#allocation1 + $0x23] ss:$4 sm:$0xff] %v5170_v22 }
 0x407   : > { %2904 = vst [vmem:[#allocation1] ss:$4 sm:$0xff] %v2659_v36 }
 0x408   : > { %3765 = vmatmul.msk.bf16.gmra.mxu3 %vm2824_vm6, %v2814_v8  ;;  %2907 = vst [vmem:[#allocation1 + $0x1] ss:$4 sm:$0xff] %v2902_v34 }
 0x409   : > { %2910 = vst [vmem:[#allocation1 + $0x2] ss:$4 sm:$0xff] %v2903_v21 }
 0x40a   : > { %2912 = vst [vmem:[#allocation1 + $0x3] ss:$4 sm:$0xff] %v5105_v49 }
 0x40d   : > { %v5305_v56 = vld.sshfl [vmem:[#allocation1 + $0x20] sm:$0xff pattern:$0x73625140] }
 0x40e   : > { %2937 = vst [vmem:[#allocation1 + $0x20] ss:$4 sm:$0xff] %v5192_v27 }
 0x40f   : > { %2938 = vst [vmem:[#allocation1 + $0x21] ss:$4 sm:$0xff] %v5200_v20 }
 0x410   : > { %2939 = vst [vmem:[#allocation1 + $0x22] ss:$4 sm:$0xff] %v5203_v15 }
 0x411   : > { %2940 = vst [vmem:[#allocation1 + $0x23] ss:$4 sm:$0xff] %v5206_v52  ;;  %v2921_v4 = vld.sshfl [vmem:[#allocation1] sm:$0xff pattern:$0x73625140] }
 0x412   : > { %2923 = vst [vmem:[#allocation1] ss:$4 sm:$0xff] %v5116_v35 }
 0x413   : > { %2924 = vst [vmem:[#allocation1 + $0x1] ss:$4 sm:$0xff] %v5112_v61 }
 0x414   : > { %2925 = vst [vmem:[#allocation1 + $0x2] ss:$4 sm:$0xff] %v5121_v38 }
 0x415   : > { %2926 = vst [vmem:[#allocation1 + $0x3] ss:$4 sm:$0xff] %v5146_v26 }
 0x417   : > { %v5315_v49 = vpop.f32.mrf.mxu3 }
 0x418   : > { %v5317_v47 = vld.sshfl [vmem:[#allocation1 + $0x20] sm:$0xff pattern:$0x73625140]  ;;  %3770 = vmatmul.msk.bf16.vlgmr.msrb.gmra.mxu3 %vm2824_vm6, %v2921_v4 }
 0x419   : > { %2947 = vst [vmem:[#allocation1 + $0x20] ss:$4 sm:$0xff] %v5236_v42  ;;  %v2856_v32 = vpop.f32.mrf.mxu2 }
 0x41a   : > { %2948 = vst [vmem:[#allocation1 + $0x21] ss:$4 sm:$0xff] %v5239_v54 }
 0x41b   : > { %2949 = vst [vmem:[#allocation1 + $0x22] ss:$4 sm:$0xff] %v5248_v51 }
 0x41c   : > { %2950 = vst [vmem:[#allocation1 + $0x23] ss:$4 sm:$0xff] %v5251_v13  ;;  %v2931_v1 = vld.sshfl [vmem:[#allocation1] sm:$0xff pattern:$0x73625140] }
 0x41d   : > { %2933 = vst [vmem:[#allocation1] ss:$4 sm:$0xff] %v5173_v10 }
 0x41e   : > { %2934 = vst [vmem:[#allocation1 + $0x1] ss:$4 sm:$0xff] %v5176_v17 }
 0x41f   : > { %v5325_v2 = vpop.f32.mrf.mxu3  ;;  %2935 = vst [vmem:[#allocation1 + $0x2] ss:$4 sm:$0xff] %v5186_v29 }
 0x420   : > { %2936 = vst [vmem:[#allocation1 + $0x3] ss:$4 sm:$0xff] %v5189_v16 }
 0x423   : > { %v5330_v46 = vld.sshfl [vmem:[#allocation1 + $0x20] sm:$0xff pattern:$0x73625140] }
 0x424   : > { %3128 = vst [vmem:[#allocation1 + $0x20] ss:$4 sm:$0xff] %v5121_v38 }
 0x425   : > { %3130 = vst [vmem:[#allocation1 + $0x21] ss:$4 sm:$0xff] %v5146_v26 }
 0x426   : > { %3132 = vst [vmem:[#allocation1 + $0x22] ss:$4 sm:$0xff] %v5142_v9 }
 0x427   : > { %v5334_v31 = vpop.f32.mrf.mxu3  ;;  %v2941_v60 = vld.sshfl [vmem:[#allocation1] sm:$0xff pattern:$0x73625140]  ;;  %3134 = vst [vmem:[#allocation1 + $0x23] ss:$4 sm:$0xff] %v5149_v40 }
 0x428   : > { %3771 = vmatmul.msk.bf16.gmra.mxu3 %vm2824_vm6, %v2922_v28  ;;  %2943 = vst [vmem:[#allocation1] ss:$4 sm:$0xff] %v5215_v23 }
 0x429   : > { %2944 = vst [vmem:[#allocation1 + $0x1] ss:$4 sm:$0xff] %v5219_v24 }
 0x42a   : > { %2945 = vst [vmem:[#allocation1 + $0x2] ss:$4 sm:$0xff] %v5222_v33 }
 0x42b   : > { %2946 = vst [vmem:[#allocation1 + $0x3] ss:$4 sm:$0xff] %v5233_v57 }
 0x42e   : > { %v3136_v26 = vld.sshfl [vmem:[#allocation1 + $0x20] sm:$0xff pattern:$0x73625140] }
 0x42f   : > { %v5343_v38 = vpop.f32.mrf.mxu3  ;;  %3141 = vst [vmem:[#allocation1 + $0x20] ss:$4 sm:$0xff] %v5186_v29 }
 0x430   : > { %3142 = vst [vmem:[#allocation1 + $0x21] ss:$4 sm:$0xff] %v5189_v16 }
 0x431   : > { %3143 = vst [vmem:[#allocation1 + $0x22] ss:$4 sm:$0xff] %v5192_v27 }
 0x432   : > { %v2951_v9 = vld.sshfl [vmem:[#allocation1] sm:$0xff pattern:$0x73625140]  ;;  %3144 = vst [vmem:[#allocation1 + $0x23] ss:$4 sm:$0xff] %v5200_v20 }
 0x433   : > { %2953 = vst [vmem:[#allocation1] ss:$4 sm:$0xff] %v5254_v37 }
 0x434   : > { %2954 = vst [vmem:[#allocation1 + $0x1] ss:$4 sm:$0xff] %v5263_v45 }
 0x435   : > { %2955 = vst [vmem:[#allocation1 + $0x2] ss:$4 sm:$0xff] %v5266_v7 }
 0x436   : > { %2956 = vst [vmem:[#allocation1 + $0x3] ss:$4 sm:$0xff] %v5269_v62 }
 0x437   : > { %v5353_v40 = vpop.f32.mrf.mxu3 }
 0x438   : > { %3772 = vmatmul.msk.bf16.gmra.mxu3 %vm2824_vm6, %v2931_v1 }
 0x439   : > { %v3146_v29 = vld.sshfl [vmem:[#allocation1 + $0x20] sm:$0xff pattern:$0x73625140] }
 0x43a   : > { %3151 = vst [vmem:[#allocation1 + $0x20] ss:$4 sm:$0xff] %v5222_v33 }
 0x43b   : > { %3152 = vst [vmem:[#allocation1 + $0x21] ss:$4 sm:$0xff] %v5233_v57 }
 0x43c   : > { %3153 = vst [vmem:[#allocation1 + $0x22] ss:$4 sm:$0xff] %v5236_v42 }
 0x43d   : > { %v2957_v16 = vld.sshfl [vmem:[#allocation1] sm:$0xff pattern:$0x73625140]  ;;  %3154 = vst [vmem:[#allocation1 + $0x23] ss:$4 sm:$0xff] %v5239_v54 }
 0x43e   : > { %3120 = vst [vmem:[#allocation1] ss:$4 sm:$0xff] %v5094_v18 }
 0x43f   : > { %v5361_v27 = vpop.f32.mrf.mxu3  ;;  %3122 = vst [vmem:[#allocation1 + $0x1] ss:$4 sm:$0xff] %v5109_v58 }
 0x440   : > { %3124 = vst [vmem:[#allocation1 + $0x2] ss:$4 sm:$0xff] %v5116_v35 }
 0x441   : > { %3126 = vst [vmem:[#allocation1 + $0x3] ss:$4 sm:$0xff] %v5112_v61 }
 0x444   : > { %v3156_v20 = vld.sshfl [vmem:[#allocation1 + $0x20] sm:$0xff pattern:$0x73625140] }
 0x445   : > { %3161 = vst [vmem:[#allocation1 + $0x20] ss:$4 sm:$0xff] %v5266_v7 }
 0x446   : > { %3162 = vst [vmem:[#allocation1 + $0x21] ss:$4 sm:$0xff] %v5269_v62 }
 0x447   : > { %v5367_v33 = vpop.f32.mrf.mxu3  ;;  %3163 = vst [vmem:[#allocation1 + $0x22] ss:$4 sm:$0xff] %v5284_v55 }
 0x448   : > { %v3135_v41 = vld.sshfl [vmem:[#allocation1] sm:$0xff pattern:$0x73625140]  ;;  %3773 = vmatmul.msk.bf16.gmra.mxu3 %vm2824_vm6, %v5305_v56  ;;  %3164 = vst [vmem:[#allocation1 + $0x23] ss:$4 sm:$0xff] %v2737_v39  ;;  %v2858_v39 = vpop.f32.mrf.mxu2 }
 0x449   : > { %3783 = vmatmul.msk.bf16.vlgmr.msrb.gmra.mxu0 %vm2824_vm6, %v3135_v41  ;;  %3137 = vst [vmem:[#allocation1] ss:$4 sm:$0xff] %v5154_v5 }
 0x44a   : > { %3138 = vst [vmem:[#allocation1 + $0x1] ss:$4 sm:$0xff] %v5170_v22  ;;  %v3109_v22 = vpop.permute.xlu1 %3108 }
 0x44b   : > { %3139 = vst [vmem:[#allocation1 + $0x2] ss:$4 sm:$0xff] %v5173_v10  ;;  %v3114_v10 = vsel %vm532_vm2, %v5130_v19, %v3109_v22 }
 0x44c   : > { %3140 = vst [vmem:[#allocation1 + $0x3] ss:$4 sm:$0xff] %v5176_v17  ;;  %v3112_v17 = vpop.permute.xlu2 %3111 }
 0x44f   : > { %v5380_v18 = vpop.f32.mrf.mxu3 }
 0x453   : > { %v3145_v58 = vld.sshfl [vmem:[#allocation1] sm:$0xff pattern:$0x73625140] }
 0x454   : > { %3147 = vst [vmem:[#allocation1] ss:$4 sm:$0xff] %v5203_v15  ;;  %v3116_v15 = vsel %vm2657_vm5, %v3114_v10, %v3112_v17 }
 0x455   : > { %3148 = vst [vmem:[#allocation1 + $0x1] ss:$4 sm:$0xff] %v5206_v52  ;;  %v3119_v57 = vrot.slane %v3116_v15, 4 }
 0x456   : > { %3149 = vst [vmem:[#allocation1 + $0x2] ss:$4 sm:$0xff] %v5215_v23 }
 0x457   : > { %v5385_v61 = vpop.f32.mrf.mxu3  ;;  %3150 = vst [vmem:[#allocation1 + $0x3] ss:$4 sm:$0xff] %v5219_v24  ;;  %v3118_v24 = vrot.slane %v3116_v15, 2 }
 0x458   : > { %3774 = vmatmul.msk.bf16.gmra.mxu3 %vm2824_vm6, %v2941_v60 }
 0x459   : > { %3784 = vmatmul.msk.bf16.gmra.mxu0 %vm2824_vm6, %v3136_v26 }
 0x45e   : > { %v3155_v35 = vld.sshfl [vmem:[#allocation1] sm:$0xff pattern:$0x73625140] }
 0x45f   : > { %v5390_v5 = vpop.f32.mrf.mxu3  ;;  %3157 = vst [vmem:[#allocation1] ss:$4 sm:$0xff] %v5248_v51 }
 0x460   : > { %3158 = vst [vmem:[#allocation1 + $0x1] ss:$4 sm:$0xff] %v5251_v13 }
 0x461   : > { %3159 = vst [vmem:[#allocation1 + $0x2] ss:$4 sm:$0xff] %v5254_v37  ;;  %v3166_v37 = vld.sshfl [vmem:[#allocation1 + $0x20] sm:$0xff pattern:$0x73625140] }
 0x462   : > { %3160 = vst [vmem:[#allocation1 + $0x3] ss:$4 sm:$0xff] %v5263_v45 }
 0x467   : > { %v5399_v52 = vpop.f32.mrf.mxu3 }
 0x468   : > { %3775 = vmatmul.msk.bf16.gmra.mxu3 %vm2824_vm6, %v5317_v47 }
 0x469   : > { %3785 = vmatmul.msk.bf16.gmra.mxu0 %vm2824_vm6, %v3145_v58  ;;  %v3165_v23 = vld.sshfl [vmem:[#allocation1] sm:$0xff pattern:$0x73625140] }
 0x46a   : > { %3167 = vst [vmem:[#allocation1] ss:$4 sm:$0xff] %v2738_v6 }
 0x46b   : > { %3168 = vst [vmem:[#allocation1 + $0x1] ss:$4 sm:$0xff] %v3116_v15 }
 0x46c   : > { %3170 = vst [vmem:[#allocation1 + $0x2] ss:$4 sm:$0xff] %v3118_v24 }
 0x46d   : > { %3172 = vst [vmem:[#allocation1 + $0x3] ss:$4 sm:$0xff] %v3119_v57 }
 0x46f   : > { %v5406_v19 = vpop.f32.mrf.mxu3 }
 0x474   : > { %v3173_v3 = vld.sshfl [vmem:[#allocation1] sm:$0xff pattern:$0x73625140] }
 0x478   : > { %3776 = vmatmul.msk.bf16.gmra.mxu3 %vm2824_vm6, %v2951_v9 }
 0x479   : > { %3786 = vmatmul.msk.bf16.gmra.mxu0 %vm2824_vm6, %v3146_v29 }
 0x47b   : > { %v5410_v42 = vpop.f32.mrf.mxu3 }
 0x483   : > { %v5412_v54 = vpop.f32.mrf.mxu3 }
 0x488   : > { %3777 = vmatmul.msk.bf16.gmra.mxu3 %vm2824_vm6, %v5330_v46 }
 0x489   : > { %3787 = vmatmul.msk.bf16.gmra.mxu0 %vm2824_vm6, %v3155_v35 }
 0x48b   : > { %v5417_v50 = vpop.f32.mrf.mxu3 }
 0x493   : > { %v5419_v25 = vpop.f32.mrf.mxu3 }
 0x498   : > { %3778 = vmatmul.msk.bf16.gmra.mxu3 %vm2824_vm6, %v2957_v16 }
 0x499   : > { %3788 = vmatmul.msk.bf16.gmra.mxu0 %vm2824_vm6, %v3156_v20 }
 0x49b   : > { %v2997_v59 = vpop.f32.mrf.mxu3 }
 0x49c   : > { %v2998_v53 = vadd.f32 %v2997_v59, %v2856_v32 }
 0x49e   : > { %v3060_v62 = vrot.slane %v2998_v53, 4 }
 0x4a3   : > { %v2999_v51 = vpop.f32.mrf.mxu3 }
 0x4a4   : > { %v3000_v6 = vadd.f32 %v2999_v51, %v2858_v39 }
 0x4a6   : > { %v3061_v36 = vrot.slane %v3000_v6, 4 }
 0x4a9   : > { %3789 = vmatmul.msk.bf16.gmra.mxu0 %vm2824_vm6, %v3165_v23 }
 0x4ab   : > { %v3002_v13 = vpop.f32.mrf.mxu3 }
 0x4ac   : > { %v3003_v47 = vadd.f32 %v3002_v13, %v5315_v49 }
 0x4ae   : > { %v3062_v29 = vrot.slane %v3003_v47, 4 }
 0x4b3   : > { %v3004_v30 = vpop.f32.mrf.mxu3 }
 0x4b4   : > { %v3005_v35 = vadd.f32 %v3004_v30, %v5325_v2 }
 0x4b6   : > { %v3063_v24 = vrot.slane %v3005_v35, 4 }
 0x4b9   : > { %3790 = vmatmul.msk.bf16.gmra.mxu0 %vm2824_vm6, %v3166_v37 }
 0x4bb   : > { %v3007_v7 = vpop.f32.mrf.mxu3 }
 0x4bc   : > { %v3008_v2 = vadd.f32 %v3007_v7, %v5334_v31 }
 0x4c3   : > { %v3009_v21 = vpop.f32.mrf.mxu3 }
 0x4c4   : > { %v3010_v7 = vadd.f32 %v3009_v21, %v5343_v38 }
 0x4c6   : > { %v3213_v45 = vpop.f32.mrf.mxu0 }
 0x4c7   : > { %v3276_v48 = vrot.slane %v3213_v45, 4  ;;  %v3312_v12 = vadd.f32 %v3213_v45, %v2998_v53 }
 0x4c9   : > { %v3313_v55 = vadd.f32 %v3276_v48, %v3060_v62  ;;  %v3353_v0 = vadd.f32 %v5428_v11, %v3312_v12  ;;  %3791 = vmatmul.msk.bf16.gmra.mxu0 %vm2824_vm6, %v3173_v3  ;;  %v3064_v12 = vrot.slane %v3008_v2, 4 }
 0x4cb   : > { %v3354_v43 = vadd.f32 %v5431_v63, %v3313_v55  ;;  %v3389_v14 = vmax.f32 %v3353_v0, 0.0  ;;  %v3012_v58 = vpop.f32.mrf.mxu3 }
 0x4cc   : > { %v3013_v38 = vadd.f32 %v3012_v58, %v5353_v40 }
 0x4cd   : > { %v3390_v28 = vmax.f32 %v3354_v43, 0.0  ;;  %3461 = vst [vmem:[#allocation1] ss:$2 sm:$0xff] %v3389_v14 }
 0x4ce   : > { %v3215_v44 = vpop.f32.mrf.mxu0 }
 0x4cf   : > { %3463 = vst [vmem:[#allocation1 + $0x1] ss:$2 sm:$0xff] %v3390_v28  ;;  %v3277_v34 = vrot.slane %v3215_v44, 4  ;;  %v3314_v8 = vadd.f32 %v3215_v44, %v3000_v6 }
 0x4d1   : > { %v3315_v56 = vadd.f32 %v3277_v34, %v3061_v36  ;;  %v3355_v4 = vadd.f32 %v5428_v11, %v3314_v8  ;;  %v3065_v36 = vrot.slane %v3010_v7, 4 }
 0x4d3   : > { %v3356_v1 = vadd.f32 %v5428_v11, %v3315_v56  ;;  %v3391_v46 = vmax.f32 %v3355_v4, 0.0  ;;  %v3014_v53 = vpop.f32.mrf.mxu3 }
 0x4d4   : > { %v3015_v40 = vadd.f32 %v3014_v53, %v5361_v27 }
 0x4d5   : > { %v3392_v60 = vmax.f32 %v3356_v1, 0.0  ;;  %3465 = vst [vmem:[#allocation1 + $0x10] ss:$2 sm:$0xff] %v3391_v46 }
 0x4d6   : > { %v3218_v26 = vpop.f32.mrf.mxu0  ;;  %v3466_v9 = vld.sshfl [vmem:[#allocation1] sm:$0xff pattern:$0x75316420] }
 0x4d7   : > { %3469 = vst [vmem:[#allocation1 + $0x20] ss:$2 sm:$0xff] %v3392_v60  ;;  %v3278_v16 = vrot.slane %v3218_v26, 4  ;;  %v3316_v20 = vadd.f32 %v3218_v26, %v3003_v47  ;;  %v3066_v26 = vrot.slane %v3013_v38, 4 }
 0x4d8   : > { %3550 = vst.msk [vmem:[%s5443_s12] sm:$0xff] %vm532_vm2, %v3466_v9 }
 0x4d9   : > { %v3317_v49 = vadd.f32 %v3278_v16, %v3062_v29  ;;  %v3357_v41 = vadd.f32 %v5431_v63, %v3316_v20 }
 0x4db   : > { %v3358_v22 = vadd.f32 %v5428_v11, %v3317_v49  ;;  %v3393_v10 = vmax.f32 %v3357_v41, 0.0  ;;  %v3017_v44 = vpop.f32.mrf.mxu3 }
 0x4dc   : > { %v3467_v17 = vld.sshfl [vmem:[#allocation1 + $0x10] sm:$0xff pattern:$0x75316420] }
 0x4dd   : > { %v3394_v15 = vmax.f32 %v3358_v22, 0.0  ;;  %3471 = vst [vmem:[#allocation1 + $0x21] ss:$2 sm:$0xff] %v3393_v10 }
 0x4de   : > { %v3220_v23 = vpop.f32.mrf.mxu0  ;;  %3552 = vst.msk [vmem:[%s5443_s12 + $0x8] sm:$0xf] %vm3551_vm7, %v3467_v17 }
 0x4df   : > { %3473 = vst [vmem:[#allocation1 + $0x30] ss:$2 sm:$0xff] %v3394_v15  ;;  %v3279_v57 = vrot.slane %v3220_v23, 4  ;;  %v3318_v59 = vadd.f32 %v3220_v23, %v3005_v35  ;;  %v3067_v15 = vrot.slane %v3015_v40, 4 }
 0x4e1   : > { %v3319_v51 = vadd.f32 %v3279_v57, %v3063_v24  ;;  %v3359_v13 = vadd.f32 %v5428_v11, %v3318_v59 }
 0x4e3   : > { %v3360_v37 = vadd.f32 %v5431_v63, %v3319_v51  ;;  %v3395_v30 = vmax.f32 %v3359_v13, 0.0  ;;  %v3019_v16 = vpop.f32.mrf.mxu3  ;;  %v3018_v51 = vadd.f32 %v3017_v44, %v5367_v33 }
 0x4e4   : > { %v3474_v32 = vld.sshfl [vmem:[#allocation1 + $0x20] sm:$0xff pattern:$0x75316420] }
 0x4e5   : > { %v3396_v45 = vmax.f32 %v3360_v37, 0.0  ;;  %3476 = vst [vmem:[#allocation1] ss:$2 sm:$0xff] %v3395_v30  ;;  %v3068_v53 = vrot.slane %v3018_v51, 4 }
 0x4e6   : > { %v3223_v62 = vpop.f32.mrf.mxu0  ;;  %3553 = vst.msk [vmem:[%s5443_s12 + $0x10] sm:$0xff] %vm532_vm2, %v3474_v32  ;;  %v3475_v48 = vld.sshfl [vmem:[#allocation1 + $0x30] sm:$0xff pattern:$0x75316420] }
 0x4e7   : > { %v3280_v3 = vrot.slane %v3223_v62, 4  ;;  %v3320_v55 = vadd.f32 %v3223_v62, %v3008_v2  ;;  %3477 = vst [vmem:[#allocation1 + $0x1] ss:$2 sm:$0xff] %v3396_v45 }
 0x4e8   : > { %3554 = vst.msk [vmem:[%s5443_s12 + $0x18] sm:$0xf] %vm3551_vm7, %v3475_v48 }
 0x4e9   : > { %v3321_v0 = vadd.f32 %v3280_v3, %v3064_v12  ;;  %v3361_v31 = vadd.f32 %v5428_v11, %v3320_v55  ;;  %v3020_v3 = vadd.f32 %v3019_v16, %v5380_v18 }
 0x4eb   : > { %v3362_v39 = vadd.f32 %v5428_v11, %v3321_v0  ;;  %v3397_v6 = vmax.f32 %v3361_v31, 0.0  ;;  %v3022_v59 = vpop.f32.mrf.mxu3 }
 0x4ec   : > { %v3023_v18 = vadd.f32 %v3022_v59, %v5385_v61 }
 0x4ed   : > { %v3398_v43 = vmax.f32 %v3362_v39, 0.0  ;;  %3478 = vst [vmem:[#allocation1 + $0x10] ss:$2 sm:$0xff] %v3397_v6  ;;  %v3069_v6 = vrot.slane %v3020_v3, 4 }
 0x4ee   : > { %v3479_v14 = vld.sshfl [vmem:[#allocation1] sm:$0xff pattern:$0x75316420]  ;;  %v3225_v28 = vpop.f32.mrf.mxu0 }
 0x4ef   : > { %3481 = vst [vmem:[#allocation1 + $0x20] ss:$2 sm:$0xff] %v3398_v43  ;;  %v3281_v34 = vrot.slane %v3225_v28, 4  ;;  %v3322_v8 = vadd.f32 %v3225_v28, %v3010_v7 }
 0x4f0   : > { %3555 = vst.msk [vmem:[%s5443_s12 + $0x20] sm:$0xff] %vm532_vm2, %v3479_v14 }
 0x4f1   : > { %v3323_v56 = vadd.f32 %v3281_v34, %v3065_v36  ;;  %v3363_v4 = vadd.f32 %v5431_v63, %v3322_v8 }
 0x4f3   : > { %v3364_v21 = vadd.f32 %v5428_v11, %v3323_v56  ;;  %v3399_v47 = vmax.f32 %v3363_v4, 0.0  ;;  %v3024_v0 = vpop.f32.mrf.mxu3 }
 0x4f4   : > { %v3480_v1 = vld.sshfl [vmem:[#allocation1 + $0x10] sm:$0xff pattern:$0x75316420] }
 0x4f5   : > { %v3400_v46 = vmax.f32 %v3364_v21, 0.0  ;;  %3482 = vst [vmem:[#allocation1 + $0x21] ss:$2 sm:$0xff] %v3399_v47  ;;  %v3070_v47 = vrot.slane %v3023_v18, 4 }
 0x4f6   : > { %v3228_v60 = vpop.f32.mrf.mxu0  ;;  %3556 = vst.msk [vmem:[%s5443_s12 + $0x28] sm:$0xf] %vm3551_vm7, %v3480_v1 }
 0x4f7   : > { %3483 = vst [vmem:[#allocation1 + $0x30] ss:$2 sm:$0xff] %v3400_v46  ;;  %v3282_v9 = vrot.slane %v3228_v60, 4  ;;  %v3324_v29 = vadd.f32 %v3228_v60, %v3013_v38 }
 0x4f9   : > { %v3325_v20 = vadd.f32 %v3282_v9, %v3066_v26  ;;  %v3365_v49 = vadd.f32 %v5428_v11, %v3324_v29  ;;  %v3025_v26 = vadd.f32 %v3024_v0, %v5390_v5 }
 0x4fb   : > { %v3366_v41 = vadd.f32 %v5431_v63, %v3325_v20  ;;  %v3401_v58 = vmax.f32 %v3365_v49, 0.0  ;;  %v3027_v4 = vpop.f32.mrf.mxu3 }
 0x4fc   : > { %v3484_v35 = vld.sshfl [vmem:[#allocation1 + $0x20] sm:$0xff pattern:$0x75316420]  ;;  %v3028_v5 = vadd.f32 %v3027_v4, %v5399_v52 }
 0x4fd   : > { %3557 = vst.msk [vmem:[%s5443_s12 + $0x30] sm:$0xff] %vm532_vm2, %v3484_v35  ;;  %v3402_v22 = vmax.f32 %v3366_v41, 0.0 }
 0x4fe   : > { %3486 = vst [vmem:[#allocation1] ss:$2 sm:$0xff] %v3401_v58  ;;  %v3230_v10 = vpop.f32.mrf.mxu0  ;;  %v3485_v17 = vld.sshfl [vmem:[#allocation1 + $0x30] sm:$0xff pattern:$0x75316420] }
 0x4ff   : > { %3487 = vst [vmem:[#allocation1 + $0x1] ss:$2 sm:$0xff] %v3402_v22  ;;  %v3283_v23 = vrot.slane %v3230_v10, 4  ;;  %v3326_v24 = vadd.f32 %v3230_v10, %v3015_v40  ;;  %v3071_v40 = vrot.slane %v3025_v26, 4 }
 0x500   : > { %3558 = vst.msk [vmem:[%s5443_s12 + $0x38] sm:$0xf] %vm3551_vm7, %v3485_v17 }
 0x501   : > { %v3327_v57 = vadd.f32 %v3283_v23, %v3067_v15  ;;  %v3367_v27 = vadd.f32 %v5428_v11, %v3326_v24 }
 0x503   : > { %v3368_v13 = vadd.f32 %v5428_v11, %v3327_v57  ;;  %v3403_v2 = vmax.f32 %v3367_v27, 0.0  ;;  %v3029_v35 = vpop.f32.mrf.mxu3  ;;  %v3072_v27 = vrot.slane %v3028_v5, 4 }
 0x504   : > { %v3030_v52 = vadd.f32 %v3029_v35, %v5406_v19 }
 0x505   : > { %v3404_v37 = vmax.f32 %v3368_v13, 0.0  ;;  %3488 = vst [vmem:[#allocation1 + $0x10] ss:$2 sm:$0xff] %v3403_v2 }
 0x506   : > { %v3489_v30 = vld.sshfl [vmem:[#allocation1] sm:$0xff pattern:$0x75316420]  ;;  %v3233_v32 = vpop.f32.mrf.mxu0 }
 0x507   : > { %3559 = vst.msk [vmem:[%s5443_s12 + $0x40] sm:$0xff] %vm532_vm2, %v3489_v30  ;;  %v3284_v45 = vrot.slane %v3233_v32, 4  ;;  %v3328_v62 = vadd.f32 %v3233_v32, %v3018_v51 }
 0x508   : > { %3491 = vst [vmem:[#allocation1 + $0x20] ss:$2 sm:$0xff] %v3404_v37 }
 0x509   : > { %v3329_v48 = vadd.f32 %v3284_v45, %v3068_v53  ;;  %v3369_v12 = vadd.f32 %v5431_v63, %v3328_v62 }
 0x50b   : > { %v3370_v33 = vadd.f32 %v5428_v11, %v3329_v48  ;;  %v3405_v55 = vmax.f32 %v3369_v12, 0.0  ;;  %v3032_v37 = vpop.f32.mrf.mxu3  ;;  %v3073_v12 = vrot.slane %v3030_v52, 4 }
 0x50c   : > { %v3490_v31 = vld.sshfl [vmem:[#allocation1 + $0x10] sm:$0xff pattern:$0x75316420]  ;;  %v3033_v0 = vadd.f32 %v3032_v37, %v5410_v42 }
 0x50d   : > { %v3406_v7 = vmax.f32 %v3370_v33, 0.0  ;;  %3492 = vst [vmem:[#allocation1 + $0x21] ss:$2 sm:$0xff] %v3405_v55 }
 0x50e   : > { %v3235_v39 = vpop.f32.mrf.mxu0  ;;  %3560 = vst.msk [vmem:[%s5443_s12 + $0x48] sm:$0xf] %vm3551_vm7, %v3490_v31 }
 0x50f   : > { %3493 = vst [vmem:[#allocation1 + $0x30] ss:$2 sm:$0xff] %v3406_v7  ;;  %v3285_v43 = vrot.slane %v3235_v39, 4  ;;  %v3330_v14 = vadd.f32 %v3235_v39, %v3020_v3 }
 0x511   : > { %v3331_v28 = vadd.f32 %v3285_v43, %v3069_v6  ;;  %v3371_v44 = vadd.f32 %v5428_v11, %v3330_v14 }
 0x513   : > { %v3372_v36 = vadd.f32 %v5431_v63, %v3331_v28  ;;  %v3407_v34 = vmax.f32 %v3371_v44, 0.0  ;;  %v3034_v39 = vpop.f32.mrf.mxu3  ;;  %v3074_v28 = vrot.slane %v3033_v0, 4 }
 0x514   : > { %v3494_v8 = vld.sshfl [vmem:[#allocation1 + $0x20] sm:$0xff pattern:$0x75316420]  ;;  %v3035_v42 = vadd.f32 %v3034_v39, %v5412_v54 }
 0x515   : > { %3561 = vst.msk [vmem:[%s5443_s12 + $0x50] sm:$0xff] %vm532_vm2, %v3494_v8  ;;  %v3408_v56 = vmax.f32 %v3372_v36, 0.0 }
 0x516   : > { %3496 = vst [vmem:[#allocation1] ss:$2 sm:$0xff] %v3407_v34  ;;  %v3238_v38 = vpop.f32.mrf.mxu0  ;;  %v3495_v21 = vld.sshfl [vmem:[#allocation1 + $0x30] sm:$0xff pattern:$0x75316420] }
 0x517   : > { %3497 = vst [vmem:[#allocation1 + $0x1] ss:$2 sm:$0xff] %v3408_v56  ;;  %v3286_v1 = vrot.slane %v3238_v38, 4  ;;  %v3332_v46 = vadd.f32 %v3238_v38, %v3023_v18 }
 0x518   : > { %3562 = vst.msk [vmem:[%s5443_s12 + $0x58] sm:$0xf] %vm3551_vm7, %v3495_v21 }
 0x519   : > { %v3333_v60 = vadd.f32 %v3286_v1, %v3070_v47  ;;  %v3373_v61 = vadd.f32 %v5428_v11, %v3332_v46  ;;  %v3075_v1 = vrot.slane %v3035_v42, 4 }
 0x51b   : > { %v3374_v9 = vadd.f32 %v5428_v11, %v3333_v60  ;;  %v3409_v29 = vmax.f32 %v3373_v61, 0.0  ;;  %v3037_v21 = vpop.f32.mrf.mxu3 }
 0x51c   : > { %v3038_v54 = vadd.f32 %v3037_v21, %v5417_v50 }
 0x51d   : > { %v3410_v16 = vmax.f32 %v3374_v9, 0.0  ;;  %3498 = vst [vmem:[#allocation1 + $0x10] ss:$2 sm:$0xff] %v3409_v29 }
 0x51e   : > { %v3499_v20 = vld.sshfl [vmem:[#allocation1] sm:$0xff pattern:$0x75316420]  ;;  %v3240_v49 = vpop.f32.mrf.mxu0 }
 0x51f   : > { %3563 = vst.msk [vmem:[%s5443_s12 + $0x60] sm:$0xff] %vm532_vm2, %v3499_v20  ;;  %v3287_v41 = vrot.slane %v3240_v49, 4  ;;  %v3334_v58 = vadd.f32 %v3240_v49, %v3025_v26 }
 0x520   : > { %3501 = vst [vmem:[#allocation1 + $0x20] ss:$2 sm:$0xff] %v3410_v16 }
 0x521   : > { %v3335_v22 = vadd.f32 %v3287_v41, %v3071_v40  ;;  %v3375_v10 = vadd.f32 %v5431_v63, %v3334_v58  ;;  %v3076_v41 = vrot.slane %v3038_v54, 4 }
 0x523   : > { %v3376_v17 = vadd.f32 %v5428_v11, %v3335_v22  ;;  %v3411_v15 = vmax.f32 %v3375_v10, 0.0  ;;  %v3039_v22 = vpop.f32.mrf.mxu3 }
 0x524   : > { %v3500_v23 = vld.sshfl [vmem:[#allocation1 + $0x10] sm:$0xff pattern:$0x75316420] }
 0x525   : > { %v3412_v24 = vmax.f32 %v3376_v17, 0.0  ;;  %3502 = vst [vmem:[#allocation1 + $0x21] ss:$2 sm:$0xff] %v3411_v15 }
 0x526   : > { %v3243_v57 = vpop.f32.mrf.mxu0  ;;  %3564 = vst.msk [vmem:[%s5443_s12 + $0x68] sm:$0xf] %vm3551_vm7, %v3500_v23 }
 0x527   : > { %3503 = vst [vmem:[#allocation1 + $0x30] ss:$2 sm:$0xff] %v3412_v24  ;;  %v3288_v59 = vrot.slane %v3243_v57, 4  ;;  %v3336_v51 = vadd.f32 %v3243_v57, %v3028_v5  ;;  %v3040_v5 = vadd.f32 %v3039_v22, %v5419_v25 }
 0x529   : > { %v3337_v13 = vadd.f32 %v3288_v59, %v3072_v27  ;;  %v3377_v2 = vadd.f32 %v5428_v11, %v3336_v51  ;;  %v3077_v27 = vrot.slane %v3040_v5, 4 }
 0x52b   : > { %v3378_v30 = vadd.f32 %v5431_v63, %v3337_v13  ;;  %v3413_v32 = vmax.f32 %v3377_v2, 0.0 }
 0x52c   : > { %v3504_v53 = vld.sshfl [vmem:[#allocation1 + $0x20] sm:$0xff pattern:$0x75316420] }
 0x52d   : > { %3565 = vst.msk [vmem:[%s5443_s12 + $0x70] sm:$0xff] %vm532_vm2, %v3504_v53  ;;  %v3414_v45 = vmax.f32 %v3378_v30, 0.0 }
 0x52e   : > { %3506 = vst [vmem:[#allocation1] ss:$2 sm:$0xff] %v3413_v32  ;;  %v3245_v62 = vpop.f32.mrf.mxu0  ;;  %v3505_v48 = vld.sshfl [vmem:[#allocation1 + $0x30] sm:$0xff pattern:$0x75316420] }
 0x52f   : > { %3507 = vst [vmem:[#allocation1 + $0x1] ss:$2 sm:$0xff] %v3414_v45  ;;  %v3289_v3 = vrot.slane %v3245_v62, 4  ;;  %v3338_v33 = vadd.f32 %v3245_v62, %v3030_v52 }
 0x530   : > { %3566 = vst.msk [vmem:[%s5443_s12 + $0x78] sm:$0xf] %vm3551_vm7, %v3505_v48 }
 0x531   : > { %v3339_v55 = vadd.f32 %v3289_v3, %v3073_v12  ;;  %v3379_v19 = vadd.f32 %v5428_v11, %v3338_v33 }
 0x533   : > { %v3380_v31 = vadd.f32 %v5428_v11, %v3339_v55  ;;  %v3415_v7 = vmax.f32 %v3379_v19, 0.0 }
 0x535   : > { %v3416_v6 = vmax.f32 %v3380_v31, 0.0  ;;  %3508 = vst [vmem:[#allocation1 + $0x10] ss:$2 sm:$0xff] %v3415_v7 }
 0x536   : > { %v3509_v43 = vld.sshfl [vmem:[#allocation1] sm:$0xff pattern:$0x75316420]  ;;  %v3248_v14 = vpop.f32.mrf.mxu0 }
 0x537   : > { %3567 = vst.msk [vmem:[%s5443_s12 + $0x80] sm:$0xff] %vm532_vm2, %v3509_v43  ;;  %v3290_v44 = vrot.slane %v3248_v14, 4  ;;  %v3340_v18 = vadd.f32 %v3248_v14, %v3033_v0 }
 0x538   : > { %3511 = vst [vmem:[#allocation1 + $0x20] ss:$2 sm:$0xff] %v3416_v6 }
 0x539   : > { %v3341_v36 = vadd.f32 %v3290_v44, %v3074_v28  ;;  %v3381_v34 = vadd.f32 %v5431_v63, %v3340_v18 }
 0x53b   : > { %v3382_v8 = vadd.f32 %v5428_v11, %v3341_v36  ;;  %v3417_v56 = vmax.f32 %v3381_v34, 0.0 }
 0x53c   : > { %v3510_v4 = vld.sshfl [vmem:[#allocation1 + $0x10] sm:$0xff pattern:$0x75316420] }
 0x53d   : > { %v3418_v38 = vmax.f32 %v3382_v8, 0.0  ;;  %3512 = vst [vmem:[#allocation1 + $0x21] ss:$2 sm:$0xff] %v3417_v56 }
 0x53e   : > { %v3250_v47 = vpop.f32.mrf.mxu0  ;;  %3568 = vst.msk [vmem:[%s5443_s12 + $0x88] sm:$0xf] %vm3551_vm7, %v3510_v4 }
 0x53f   : > { %3513 = vst [vmem:[#allocation1 + $0x30] ss:$2 sm:$0xff] %v3418_v38  ;;  %v3291_v46 = vrot.slane %v3250_v47, 4  ;;  %v3342_v60 = vadd.f32 %v3250_v47, %v3035_v42 }
 0x541   : > { %v3343_v61 = vadd.f32 %v3291_v46, %v3075_v1  ;;  %v3383_v26 = vadd.f32 %v5428_v11, %v3342_v60 }
 0x543   : > { %v3384_v9 = vadd.f32 %v5431_v63, %v3343_v61  ;;  %v3419_v29 = vmax.f32 %v3383_v26, 0.0 }
 0x544   : > { %v3514_v16 = vld.sshfl [vmem:[#allocation1 + $0x20] sm:$0xff pattern:$0x75316420] }
 0x545   : > { %3569 = vst.msk [vmem:[%s5443_s12 + $0x90] sm:$0xff] %vm532_vm2, %v3514_v16  ;;  %v3420_v20 = vmax.f32 %v3384_v9, 0.0 }
 0x546   : > { %3516 = vst [vmem:[#allocation1] ss:$2 sm:$0xff] %v3419_v29  ;;  %v3253_v49 = vpop.f32.mrf.mxu0  ;;  %v3515_v40 = vld.sshfl [vmem:[#allocation1 + $0x30] sm:$0xff pattern:$0x75316420] }
 0x547   : > { %3517 = vst [vmem:[#allocation1 + $0x1] ss:$2 sm:$0xff] %v3420_v20  ;;  %v3292_v58 = vrot.slane %v3253_v49, 4  ;;  %v3344_v35 = vadd.f32 %v3253_v49, %v3038_v54 }
 0x548   : > { %3570 = vst.msk [vmem:[%s5443_s12 + $0x98] sm:$0xf] %vm3551_vm7, %v3515_v40 }
 0x549   : > { %v3345_v10 = vadd.f32 %v3292_v58, %v3076_v41  ;;  %v3385_v50 = vadd.f32 %v5428_v11, %v3344_v35 }
 0x54b   : > { %v3386_v17 = vadd.f32 %v5428_v11, %v3345_v10  ;;  %v3421_v15 = vmax.f32 %v3385_v50, 0.0 }
 0x54d   : > { %v3422_v23 = vmax.f32 %v3386_v17, 0.0  ;;  %3518 = vst [vmem:[#allocation1 + $0x10] ss:$2 sm:$0xff] %v3421_v15 }
 0x54e   : > { %v3519_v24 = vld.sshfl [vmem:[#allocation1] sm:$0xff pattern:$0x75316420]  ;;  %v3255_v57 = vpop.f32.mrf.mxu0 }
 0x54f   : > { %3571 = vst.msk [vmem:[%s5443_s12 + $0xa0] sm:$0xff] %vm532_vm2, %v3519_v24  ;;  %v3293_v59 = vrot.slane %v3255_v57, 4  ;;  %v3346_v51 = vadd.f32 %v3255_v57, %v3040_v5 }
 0x550   : > { %3521 = vst [vmem:[#allocation1 + $0x20] ss:$2 sm:$0xff] %v3422_v23 }
 0x551   : > { %v3347_v13 = vadd.f32 %v3293_v59, %v3077_v27  ;;  %v3387_v2 = vadd.f32 %v5431_v63, %v3346_v51 }
 0x553   : > { %v3388_v25 = vadd.f32 %v5428_v11, %v3347_v13  ;;  %v3423_v37 = vmax.f32 %v3387_v2, 0.0 }
 0x554   : > { %v3520_v52 = vld.sshfl [vmem:[#allocation1 + $0x10] sm:$0xff pattern:$0x75316420] }
 0x555   : > { %3572 = vst.msk [vmem:[%s5443_s12 + $0xa8] sm:$0xf] %vm3551_vm7, %v3520_v52  ;;  %v3424_v30 = vmax.f32 %v3388_v25, 0.0 }
 0x556   : > { %3522 = vst [vmem:[#allocation1 + $0x21] ss:$2 sm:$0xff] %v3423_v37 }
 0x557   : > { %3523 = vst [vmem:[#allocation1 + $0x30] ss:$2 sm:$0xff] %v3424_v30 }
 0x55d   : > { %v3524_v32 = vld.sshfl [vmem:[#allocation1 + $0x20] sm:$0xff pattern:$0x75316420] }
 0x55e   : > { %v3525_v53 = vld.sshfl [vmem:[#allocation1 + $0x30] sm:$0xff pattern:$0x75316420]  ;;  %3573 = vst.msk [vmem:[%s5443_s12 + $0xb0] sm:$0xff] %vm532_vm2, %v3524_v32 }
 0x55f   : > { %3574 = vst.msk [vmem:[%s5443_s12 + $0xb8] sm:$0xf] %vm3551_vm7, %v3525_v53 }
 0x560 PF: > { %s15_s18 = sadd.s32 1, %s3842_s18  }
 0x561   : > { %p12_p4 = scmp.ge.s32.totalorder %s15_s18, 4  }
 0x563   :  { %14 = sbr.rel (!%p12_p4) target bundleno = 1 (0x1), region = 123 }

</bundles_post_ra>
